<compile_context>
chip_gen: v7x
topology: tpu7x:2x2x1
jax: 0.10.0
libtpu: 0.0.40
codegen_flags: <defaults>
</compile_context>

<pallas_src>
import math
from functools import partial

import jax
import jax.numpy as jnp
from jax.experimental import pallas as pl
from jax.experimental.pallas import tpu as pltpu


# ----------------------------- in-kernel helpers -----------------------------

def _erf_f32(x):
    # Abramowitz & Stegun 7.1.26 rational approximation, |err| < 1.5e-7
    # (fp32-accurate stand-in for lax.erf; preserves exact-GELU semantics
    # without relying on an erf lowering rule in Mosaic).
    a1, a2, a3 = 0.254829592, -0.284496736, 1.421413741
    a4, a5, p = -1.453152027, 1.061405429, 0.3275911
    ax = jnp.abs(x)
    t = 1.0 / (1.0 + p * ax)
    poly = ((((a5 * t + a4) * t + a3) * t + a2) * t + a1) * t
    y = 1.0 - poly * jnp.exp(-ax * ax)
    return jnp.where(x < 0.0, -y, y)


def _gelu_exact(x):
    return 0.5 * x * (1.0 + _erf_f32(x * 0.7071067811865476))


def _layernorm_f32(x, gamma, beta, eps):
    mean = jnp.mean(x, axis=-1, keepdims=True)
    xc = x - mean
    var = jnp.mean(xc * xc, axis=-1, keepdims=True)
    return xc * jax.lax.rsqrt(var + eps) * gamma + beta


# ----------------------------- Pallas kernels -----------------------------

def ln_linear_kernel(x_ref, g_ref, b_ref, w_ref, bias_ref, o_ref, *, eps):
    # Fused LayerNorm -> matmul -> +bias over a (TM, C) row tile.
    x = x_ref[...].astype(jnp.float32)
    xn = _layernorm_f32(x, g_ref[...].astype(jnp.float32),
                        b_ref[...].astype(jnp.float32), eps)
    acc = jnp.dot(xn, w_ref[...].astype(jnp.float32),
                  preferred_element_type=jnp.float32)
    o_ref[...] = (acc + bias_ref[...].astype(jnp.float32)).astype(o_ref.dtype)


def mlp_kernel(x_ref, g_ref, b_ref, w1_ref, b1_ref, w2_ref, b2_ref, o_ref, *, eps):
    # Fused norm2 -> fc1 -> exact GELU -> fc2 -> residual over a (TM, C) tile.
    x = x_ref[...].astype(jnp.float32)
    xn = _layernorm_f32(x, g_ref[...].astype(jnp.float32),
                        b_ref[...].astype(jnp.float32), eps)
    h = jnp.dot(xn, w1_ref[...].astype(jnp.float32),
                preferred_element_type=jnp.float32) + b1_ref[...].astype(jnp.float32)
    h = _gelu_exact(h)
    y = jnp.dot(h, w2_ref[...].astype(jnp.float32),
                preferred_element_type=jnp.float32) + b2_ref[...].astype(jnp.float32)
    o_ref[...] = (x + y).astype(o_ref.dtype)


def attn_proj_kernel(q_ref, kv_ref, rel_ref, e_ref, pw_ref, pb_ref, res_ref, o_ref,
                     *, num_heads, head_dim, scale):
    # Per-batch attention over all heads + fused output projection + residual.
    #   q_ref   : (1, Nq, C)           lane-dense projected queries
    #   kv_ref  : (1, Nk, 2C)          [k_proj | v_proj] of the key sequence
    #   rel_ref : (1, H, Nq, Kc)       decomposed rel-pos terms [t|h|w]
    #   e_ref   : (Kc, Nk)             one-hot expansion: rel @ e == additive bias
    #   pw/pb   : (C, C) / (1, C)      output projection
    #   res_ref : (1, Nq, C)           residual (block shortcut)
    C = num_heads * head_dim
    q = q_ref[0].astype(jnp.float32)                       # (Nq, C)
    kv = kv_ref[0].astype(jnp.float32)                     # (Nk, 2C)
    e = e_ref[...].astype(jnp.float32)                     # (Kc, Nk)
    pw = pw_ref[...].astype(jnp.float32)                   # (C, C)
    acc = res_ref[0].astype(jnp.float32) + pb_ref[...].astype(jnp.float32)

    for h in range(num_heads):                             # static, fully unrolled
        lo = h * head_dim
        qh = q[:, lo:lo + head_dim] * scale                # (Nq, D)
        kh = kv[:, lo:lo + head_dim]                       # (Nk, D)
        vh = kv[:, C + lo:C + lo + head_dim]               # (Nk, D)
        rel_h = rel_ref[0, h].astype(jnp.float32)          # (Nq, Kc)

        # scores + decomposed rel-pos bias (bias reconstructed in-register).
        s = (jnp.dot(qh, kh.T, preferred_element_type=jnp.float32)
             + jnp.dot(rel_h, e, preferred_element_type=jnp.float32))
        m = jnp.max(s, axis=-1, keepdims=True)
        p = jnp.exp(s - m)
        denom = jnp.sum(p, axis=-1, keepdims=True)
        oh = jnp.dot(p, vh, preferred_element_type=jnp.float32) \
            * pl.reciprocal(denom, approx=True)
        # Fold this head's slice of the output projection directly into acc:
        #   concat_h(oh) @ pw  ==  sum_h oh @ pw[h*D:(h+1)*D, :]
        acc = acc + jnp.dot(oh, pw[lo:lo + head_dim, :],
                            preferred_element_type=jnp.float32)

    o_ref[0] = acc.astype(o_ref.dtype)


# ----------------------------- Pallas wrappers -----------------------------

_VMEM_LIMIT = 32 * 1024 * 1024  # fits scoped VMEM on v5e/v6e/v7x


def ln_linear(x2d, gamma, beta, w, b, *, eps=1e-6, tm=512):
    M, K = x2d.shape
    N = w.shape[1]
    TM = min(tm, M)
    return pl.pallas_call(
        partial(ln_linear_kernel, eps=eps),
        out_shape=jax.ShapeDtypeStruct((M, N), x2d.dtype),
        grid=(pl.cdiv(M, TM),),
        in_specs=[pl.BlockSpec((TM, K), lambda i: (i, 0)),
                  pl.BlockSpec((1, K), lambda i: (0, 0)),
                  pl.BlockSpec((1, K), lambda i: (0, 0)),
                  pl.BlockSpec((K, N), lambda i: (0, 0)),
                  pl.BlockSpec((1, N), lambda i: (0, 0))],
        out_specs=pl.BlockSpec((TM, N), lambda i: (i, 0)),
        compiler_params=pltpu.CompilerParams(
            dimension_semantics=("parallel",),
            vmem_limit_bytes=_VMEM_LIMIT),
    )(x2d, gamma.reshape(1, K), beta.reshape(1, K), w, b.reshape(1, N))


def mlp_block(x2d, gamma, beta, w1, b1, w2, b2, *, eps=1e-6, tm=512):
    M, C = x2d.shape
    hid = w1.shape[1]
    TM = min(tm, M)
    return pl.pallas_call(
        partial(mlp_kernel, eps=eps),
        out_shape=jax.ShapeDtypeStruct((M, C), x2d.dtype),
        grid=(pl.cdiv(M, TM),),
        in_specs=[pl.BlockSpec((TM, C), lambda i: (i, 0)),
                  pl.BlockSpec((1, C), lambda i: (0, 0)),
                  pl.BlockSpec((1, C), lambda i: (0, 0)),
                  pl.BlockSpec((C, hid), lambda i: (0, 0)),
                  pl.BlockSpec((1, hid), lambda i: (0, 0)),
                  pl.BlockSpec((hid, C), lambda i: (0, 0)),
                  pl.BlockSpec((1, C), lambda i: (0, 0))],
        out_specs=pl.BlockSpec((TM, C), lambda i: (i, 0)),
        compiler_params=pltpu.CompilerParams(
            dimension_semantics=("parallel",),
            vmem_limit_bytes=_VMEM_LIMIT),
    )(x2d, gamma.reshape(1, C), beta.reshape(1, C), w1, b1.reshape(1, hid),
      w2, b2.reshape(1, C))


def attention_proj(qp, kv, rel_cat, e_cat, proj_w, proj_b, shortcut,
                   num_heads, head_dim, scale):
    B, Nq, C = qp.shape
    Nk = kv.shape[1]
    Kc = e_cat.shape[0]
    return pl.pallas_call(
        partial(attn_proj_kernel, num_heads=num_heads, head_dim=head_dim, scale=scale),
        out_shape=jax.ShapeDtypeStruct((B, Nq, C), qp.dtype),
        grid=(B,),
        in_specs=[pl.BlockSpec((1, Nq, C), lambda b: (b, 0, 0)),
                  pl.BlockSpec((1, Nk, 2 * C), lambda b: (b, 0, 0)),
                  pl.BlockSpec((1, num_heads, Nq, Kc), lambda b: (b, 0, 0, 0)),
                  pl.BlockSpec((Kc, Nk), lambda b: (0, 0)),
                  pl.BlockSpec((C, C), lambda b: (0, 0)),
                  pl.BlockSpec((1, C), lambda b: (0, 0)),
                  pl.BlockSpec((1, Nq, C), lambda b: (b, 0, 0))],
        out_specs=pl.BlockSpec((1, Nq, C), lambda b: (b, 0, 0)),
        compiler_params=pltpu.CompilerParams(
            dimension_semantics=("parallel",),
            vmem_limit_bytes=_VMEM_LIMIT),
    )(qp, kv, rel_cat, e_cat, proj_w, proj_b.reshape(1, C), shortcut)


# --------------------- relative-position bias (JAX glue) -------------------

def get_rel_pos(q_size, k_size, rel_pos):
    # rel_pos already has length 2*max(q_size, k_size) - 1 (forward thw equals
    # the constructor thw), so _interpolate in the reference is the identity.
    q_ratio = max(k_size / q_size, 1.0)
    k_ratio = max(q_size / k_size, 1.0)
    dist = (jnp.arange(q_size, dtype=jnp.float32)[:, None] * q_ratio
            - (jnp.arange(k_size, dtype=jnp.float32)[None, :] + (1.0 - k_size)) * k_ratio)
    # dist >= 0 given the (1 - k_size) offset, so int32 truncation == .long().
    return rel_pos[dist.astype(jnp.int32)]            # (q_size, k_size, head_dim)


def decomposed_rel_cat(qp, q_thw, kv_thw, rel_pos_t, rel_pos_h, rel_pos_w, num_heads):
    # qp: (B, Nq, num_heads, head_dim) -- unscaled projected queries.
    # Returns the concatenated per-axis rel terms (B, H, Nq, kt+kh+kw); the
    # full (B, H, Nq, Nk) bias is reconstructed inside the attention kernel.
    q_t, q_h, q_w = q_thw
    k_t, k_h, k_w = kv_thw
    B = qp.shape[0]
    Rt = get_rel_pos(q_t, k_t, rel_pos_t)
    Rh = get_rel_pos(q_h, k_h, rel_pos_h)
    Rw = get_rel_pos(q_w, k_w, rel_pos_w)
    q6 = qp.reshape(B, q_t, q_h, q_w, num_heads, -1)
    rel_t_q = jnp.einsum('bthwnc,tkc->bnthwk', q6, Rt)
    rel_h_q = jnp.einsum('bthwnc,hkc->bnthwk', q6, Rh)
    rel_w_q = jnp.einsum('bthwnc,wkc->bnthwk', q6, Rw)
    Nq = q_t * q_h * q_w
    return jnp.concatenate([rel_t_q.reshape(B, num_heads, Nq, k_t),
                            rel_h_q.reshape(B, num_heads, Nq, k_h),
                            rel_w_q.reshape(B, num_heads, Nq, k_w)], axis=-1)


def make_bias_expand(kv_thw, dtype=jnp.float32):
    # (Kc, Nk) one-hot expansion so that  rel_cat @ e  ==  decomposed bias
    # (key index n = kt*(k_h*k_w) + kh*k_w + kw, matching the reference reshape).
    k_t, k_h, k_w = kv_thw
    n = jnp.arange(k_t * k_h * k_w)
    e_t = jax.nn.one_hot(n // (k_h * k_w), k_t, dtype=dtype)
    e_h = jax.nn.one_hot((n // k_w) % k_h, k_h, dtype=dtype)
    e_w = jax.nn.one_hot(n % k_w, k_w, dtype=dtype)
    return jnp.concatenate([e_t, e_h, e_w], axis=-1).T       # (Kc, Nk)


# ------------------------------ Cross3DBlock --------------------------------

def cross3d_block_forward(q, k, params, q_thw, kv_thw, num_heads):
    B, Nq, C = q.shape
    Nk = k.shape[1]
    head_dim = C // num_heads
    scale = 1.0 / math.sqrt(head_dim)

    # Fused LN(norm_q) + q projection  (row-tiled, pipelined).
    qp2d = ln_linear(q.reshape(B * Nq, C), params['norm_q_w'], params['norm_q_b'],
                     params['q_w'], params['q_b'])

    # Fused LN(norm_k) + concatenated k/v projection -> (B*Nk, 2C); kn read once.
    kv_w = jnp.concatenate([params['k_w'], params['v_w']], axis=1)
    kv_b = jnp.concatenate([params['k_b'], params['v_b']], axis=0)
    kv2d = ln_linear(k.reshape(B * Nk, C), params['norm_k_w'], params['norm_k_b'],
                     kv_w, kv_b)

    # Small decomposed rel-pos terms + one-hot expansion matrix (JAX glue).
    rel_cat = decomposed_rel_cat(qp2d.reshape(B, Nq, num_heads, head_dim),
                                 q_thw, kv_thw, params['rel_pos_t'],
                                 params['rel_pos_h'], params['rel_pos_w'], num_heads)
    e_cat = make_bias_expand(kv_thw)

    # Attention over all heads + output projection + residual, one kernel.
    x = attention_proj(qp2d.reshape(B, Nq, C), kv2d.reshape(B, Nk, 2 * C),
                       rel_cat, e_cat, params['proj_w'], params['proj_b'],
                       q, num_heads, head_dim, scale)          # (B, Nq, C)

    # Fused MLP: norm2 + fc1 + exact GELU + fc2 + residual.
    out = mlp_block(x.reshape(B * Nq, C), params['norm2_w'], params['norm2_b'],
                    params['fc1_w'], params['fc1_b'],
                    params['fc2_w'], params['fc2_b'])
    return out.reshape(B, Nq, C)


# --------------------------------- main --------------------------------------

def make_params(key, dim, num_heads, mlp_ratio, q_thw, kv_thw):
    head_dim = dim // num_heads
    hidden = int(dim * mlp_ratio)
    ks = jax.random.split(key, 16)

    def tn(k, shape):  # deterministic stand-in for trunc_normal_(std=0.02)
        return jax.random.normal(k, shape, jnp.float32) * 0.02

    return dict(
        norm_q_w=jnp.ones((dim,), jnp.float32), norm_q_b=jnp.zeros((dim,), jnp.float32),
        norm_k_w=jnp.ones((dim,), jnp.float32), norm_k_b=jnp.zeros((dim,), jnp.float32),
        norm2_w=jnp.ones((dim,), jnp.float32),  norm2_b=jnp.zeros((dim,), jnp.float32),
        q_w=tn(ks[0], (dim, dim)), q_b=jnp.zeros((dim,), jnp.float32),
        k_w=tn(ks[1], (dim, dim)), k_b=jnp.zeros((dim,), jnp.float32),
        v_w=tn(ks[2], (dim, dim)), v_b=jnp.zeros((dim,), jnp.float32),
        proj_w=tn(ks[3], (dim, dim)), proj_b=jnp.zeros((dim,), jnp.float32),
        fc1_w=tn(ks[4], (dim, hidden)), fc1_b=jnp.zeros((hidden,), jnp.float32),
        fc2_w=tn(ks[5], (hidden, dim)), fc2_b=jnp.zeros((dim,), jnp.float32),
        # PyTorch inits rel_pos_* to zeros; use small nonzero values so the
        # bias path is actually exercised (still deterministic).
        rel_pos_t=tn(ks[6], (2 * max(q_thw[0], kv_thw[0]) - 1, head_dim)),
        rel_pos_h=tn(ks[7], (2 * max(q_thw[1], kv_thw[1]) - 1, head_dim)),
        rel_pos_w=tn(ks[8], (2 * max(q_thw[2], kv_thw[2]) - 1, head_dim)),
    )


if __name__ == "__main__":
    dim = 32
    num_heads = 4
    mlp_ratio = 4.0
    q_thw = (2, 4, 4)
    kv_thw = (2, 4, 4)
    B = 2
    Nq = q_thw[0] * q_thw[1] * q_thw[2]
    Nk = kv_thw[0] * kv_thw[1] * kv_thw[2]

    key = jax.random.PRNGKey(0)
    kq, kk, kp = jax.random.split(key, 3)
    q = jax.random.normal(kq, (B, Nq, dim), jnp.float32)
    k = jax.random.normal(kk, (B, Nk, dim), jnp.float32)
    params = make_params(kp, dim, num_heads, mlp_ratio, q_thw, kv_thw)

    fwd = jax.jit(cross3d_block_forward, static_argnums=(3, 4, 5))
    out = fwd(q, k, params, q_thw, kv_thw, num_heads)
    jax.block_until_ready(out)
    assert out.shape == (B, Nq, dim)
    print("KERNEL_OK")
</pallas_src>

<mosaic_0001>
module attributes {stable_mosaic.version = 11 : i64} {
  func.func @ln_linear_kernel(%arg0: i32, %arg1: memref<64x32xf32, #tpu.memory_space<vmem>>, %arg2: memref<1x32xf32, #tpu.memory_space<vmem>>, %arg3: memref<1x32xf32, #tpu.memory_space<vmem>>, %arg4: memref<32x32xf32, #tpu.memory_space<vmem>>, %arg5: memref<1x32xf32, #tpu.memory_space<vmem>>, %arg6: memref<64x32xf32, #tpu.memory_space<vmem>>) attributes {dimension_semantics = [#tpu.dimension_semantics<parallel>], iteration_bounds = array<i64: 1>, scalar_prefetch = 0 : i64, scratch_operands = 0 : i64, tpu.core_type = #tpu.core_type<tc>, window_params = [{transform_indices = @transform_0, window_bounds = array<i64: 64, 32>}, {pipeline_mode = #tpu.pipeline_mode<synchronous>, transform_indices = @transform_1, window_bounds = array<i64: 1, 32>}, {pipeline_mode = #tpu.pipeline_mode<synchronous>, transform_indices = @transform_2, window_bounds = array<i64: 1, 32>}, {pipeline_mode = #tpu.pipeline_mode<synchronous>, transform_indices = @transform_3, window_bounds = array<i64: 32, 32>}, {pipeline_mode = #tpu.pipeline_mode<synchronous>, transform_indices = @transform_4, window_bounds = array<i64: 1, 32>}, {transform_indices = @transform_5, window_bounds = array<i64: 64, 32>}]} {
    %c0 = arith.constant 0 : index
    %c0_0 = arith.constant 0 : index
    %0 = vector.load %arg1[%c0, %c0_0] : memref<64x32xf32, #tpu.memory_space<vmem>>, vector<64x32xf32>
    %c0_1 = arith.constant 0 : index
    %c0_2 = arith.constant 0 : index
    %1 = vector.load %arg2[%c0_1, %c0_2] : memref<1x32xf32, #tpu.memory_space<vmem>>, vector<1x32xf32>
    %c0_3 = arith.constant 0 : index
    %c0_4 = arith.constant 0 : index
    %2 = vector.load %arg3[%c0_3, %c0_4] : memref<1x32xf32, #tpu.memory_space<vmem>>, vector<1x32xf32>
    %cst = arith.constant dense<0.000000e+00> : vector<64xf32>
    %3 = vector.multi_reduction <add>, %0, %cst [1] : vector<64x32xf32> to vector<64xf32>
    %4 = vector.shape_cast %3 : vector<64xf32> to vector<64x1xf32>
    %cst_5 = arith.constant 3.200000e+01 : f32
    %5 = vector.broadcast %cst_5 : f32 to vector<64x1xf32>
    %6 = arith.divf %4, %5 : vector<64x1xf32>
    %7 = vector.broadcast %6 : vector<64x1xf32> to vector<64x32xf32>
    %8 = arith.subf %0, %7 : vector<64x32xf32>
    %9 = arith.mulf %8, %8 : vector<64x32xf32>
    %cst_6 = arith.constant dense<0.000000e+00> : vector<64xf32>
    %10 = vector.multi_reduction <add>, %9, %cst_6 [1] : vector<64x32xf32> to vector<64xf32>
    %11 = vector.shape_cast %10 : vector<64xf32> to vector<64x1xf32>
    %cst_7 = arith.constant 3.200000e+01 : f32
    %12 = vector.broadcast %cst_7 : f32 to vector<64x1xf32>
    %13 = arith.divf %11, %12 : vector<64x1xf32>
    %cst_8 = arith.constant 9.99999997E-7 : f32
    %14 = vector.broadcast %cst_8 : f32 to vector<64x1xf32>
    %15 = arith.addf %13, %14 : vector<64x1xf32>
    %16 = math.rsqrt %15 : vector<64x1xf32>
    %17 = vector.broadcast %16 : vector<64x1xf32> to vector<64x32xf32>
    %18 = arith.mulf %8, %17 : vector<64x32xf32>
    %19 = vector.broadcast %1 : vector<1x32xf32> to vector<64x32xf32>
    %20 = arith.mulf %18, %19 : vector<64x32xf32>
    %21 = vector.broadcast %2 : vector<1x32xf32> to vector<64x32xf32>
    %22 = arith.addf %20, %21 : vector<64x32xf32>
    %c0_9 = arith.constant 0 : index
    %c0_10 = arith.constant 0 : index
    %23 = vector.load %arg4[%c0_9, %c0_10] : memref<32x32xf32, #tpu.memory_space<vmem>>, vector<32x32xf32>
    %cst_11 = arith.constant dense<0.000000e+00> : vector<64x32xf32>
    %24 = tpu.matmul %22, %23, %cst_11 {dimension_numbers = #tpu.dot_dimension_numbers<[1], [0], [0], [1], [0, 0, 1, 1], [], []>} : vector<64x32xf32>, vector<32x32xf32>, vector<64x32xf32> -> vector<64x32xf32>
    %c0_12 = arith.constant 0 : index
    %c0_13 = arith.constant 0 : index
    %25 = vector.load %arg5[%c0_12, %c0_13] : memref<1x32xf32, #tpu.memory_space<vmem>>, vector<1x32xf32>
    %26 = vector.broadcast %25 : vector<1x32xf32> to vector<64x32xf32>
    %27 = arith.addf %24, %26 : vector<64x32xf32>
    %c0_14 = arith.constant 0 : index
    %c0_15 = arith.constant 0 : index
    %28 = vector.load %arg6[%c0_14, %c0_15] : memref<64x32xf32, #tpu.memory_space<vmem>>, vector<64x32xf32>
    tpu.vector_store %arg6[%c0_14, %c0_15], %27 {strides = array<i32>} : memref<64x32xf32, #tpu.memory_space<vmem>>, vector<64x32xf32>,
    return
  }
  func.func @transform_0(%arg0: i32) -> (i32, i32) {
    %c0_i32 = arith.constant 0 : i32
    %c0_i32_0 = arith.constant 0 : i32
    return %arg0, %c0_i32 : i32, i32
  }
  func.func @transform_1(%arg0: i32) -> (i32, i32) {
    %c0_i32 = arith.constant 0 : i32
    %c0_i32_0 = arith.constant 0 : i32
    %c0_i32_1 = arith.constant 0 : i32
    return %c0_i32, %c0_i32_0 : i32, i32
  }
  func.func @transform_2(%arg0: i32) -> (i32, i32) {
    %c0_i32 = arith.constant 0 : i32
    %c0_i32_0 = arith.constant 0 : i32
    %c0_i32_1 = arith.constant 0 : i32
    return %c0_i32, %c0_i32_0 : i32, i32
  }
  func.func @transform_3(%arg0: i32) -> (i32, i32) {
    %c0_i32 = arith.constant 0 : i32
    %c0_i32_0 = arith.constant 0 : i32
    %c0_i32_1 = arith.constant 0 : i32
    return %c0_i32, %c0_i32_0 : i32, i32
  }
  func.func @transform_4(%arg0: i32) -> (i32, i32) {
    %c0_i32 = arith.constant 0 : i32
    %c0_i32_0 = arith.constant 0 : i32
    %c0_i32_1 = arith.constant 0 : i32
    return %c0_i32, %c0_i32_0 : i32, i32
  }
  func.func @transform_5(%arg0: i32) -> (i32, i32) {
    %c0_i32 = arith.constant 0 : i32
    %c0_i32_0 = arith.constant 0 : i32
    return %arg0, %c0_i32 : i32, i32
  }
}

module attributes {stable_mosaic.version = 11 : i64} {
  func.func @ln_linear_kernel(%arg0: i32, %arg1: memref<64x32xf32, #tpu.memory_space<vmem>>, %arg2: memref<1x32xf32, #tpu.memory_space<vmem>>, %arg3: memref<1x32xf32, #tpu.memory_space<vmem>>, %arg4: memref<32x64xf32, #tpu.memory_space<vmem>>, %arg5: memref<1x64xf32, #tpu.memory_space<vmem>>, %arg6: memref<64x64xf32, #tpu.memory_space<vmem>>) attributes {dimension_semantics = [#tpu.dimension_semantics<parallel>], iteration_bounds = array<i64: 1>, scalar_prefetch = 0 : i64, scratch_operands = 0 : i64, tpu.core_type = #tpu.core_type<tc>, window_params = [{transform_indices = @transform_0, window_bounds = array<i64: 64, 32>}, {pipeline_mode = #tpu.pipeline_mode<synchronous>, transform_indices = @transform_1, window_bounds = array<i64: 1, 32>}, {pipeline_mode = #tpu.pipeline_mode<synchronous>, transform_indices = @transform_2, window_bounds = array<i64: 1, 32>}, {pipeline_mode = #tpu.pipeline_mode<synchronous>, transform_indices = @transform_3, window_bounds = array<i64: 32, 64>}, {pipeline_mode = #tpu.pipeline_mode<synchronous>, transform_indices = @transform_4, window_bounds = array<i64: 1, 64>}, {transform_indices = @transform_5, window_bounds = array<i64: 64, 64>}]} {
    %c0 = arith.constant 0 : index
    %c0_0 = arith.constant 0 : index
    %0 = vector.load %arg1[%c0, %c0_0] : memref<64x32xf32, #tpu.memory_space<vmem>>, vector<64x32xf32>
    %c0_1 = arith.constant 0 : index
    %c0_2 = arith.constant 0 : index
    %1 = vector.load %arg2[%c0_1, %c0_2] : memref<1x32xf32, #tpu.memory_space<vmem>>, vector<1x32xf32>
    %c0_3 = arith.constant 0 : index
    %c0_4 = arith.constant 0 : index
    %2 = vector.load %arg3[%c0_3, %c0_4] : memref<1x32xf32, #tpu.memory_space<vmem>>, vector<1x32xf32>
    %cst = arith.constant dense<0.000000e+00> : vector<64xf32>
    %3 = vector.multi_reduction <add>, %0, %cst [1] : vector<64x32xf32> to vector<64xf32>
    %4 = vector.shape_cast %3 : vector<64xf32> to vector<64x1xf32>
    %cst_5 = arith.constant 3.200000e+01 : f32
    %5 = vector.broadcast %cst_5 : f32 to vector<64x1xf32>
    %6 = arith.divf %4, %5 : vector<64x1xf32>
    %7 = vector.broadcast %6 : vector<64x1xf32> to vector<64x32xf32>
    %8 = arith.subf %0, %7 : vector<64x32xf32>
    %9 = arith.mulf %8, %8 : vector<64x32xf32>
    %cst_6 = arith.constant dense<0.000000e+00> : vector<64xf32>
    %10 = vector.multi_reduction <add>, %9, %cst_6 [1] : vector<64x32xf32> to vector<64xf32>
    %11 = vector.shape_cast %10 : vector<64xf32> to vector<64x1xf32>
    %cst_7 = arith.constant 3.200000e+01 : f32
    %12 = vector.broadcast %cst_7 : f32 to vector<64x1xf32>
    %13 = arith.divf %11, %12 : vector<64x1xf32>
    %cst_8 = arith.constant 9.99999997E-7 : f32
    %14 = vector.broadcast %cst_8 : f32 to vector<64x1xf32>
    %15 = arith.addf %13, %14 : vector<64x1xf32>
    %16 = math.rsqrt %15 : vector<64x1xf32>
    %17 = vector.broadcast %16 : vector<64x1xf32> to vector<64x32xf32>
    %18 = arith.mulf %8, %17 : vector<64x32xf32>
    %19 = vector.broadcast %1 : vector<1x32xf32> to vector<64x32xf32>
    %20 = arith.mulf %18, %19 : vector<64x32xf32>
    %21 = vector.broadcast %2 : vector<1x32xf32> to vector<64x32xf32>
    %22 = arith.addf %20, %21 : vector<64x32xf32>
    %c0_9 = arith.constant 0 : index
    %c0_10 = arith.constant 0 : index
    %23 = vector.load %arg4[%c0_9, %c0_10] : memref<32x64xf32, #tpu.memory_space<vmem>>, vector<32x64xf32>
    %cst_11 = arith.constant dense<0.000000e+00> : vector<64x64xf32>
    %24 = tpu.matmul %22, %23, %cst_11 {dimension_numbers = #tpu.dot_dimension_numbers<[1], [0], [0], [1], [0, 0, 1, 1], [], []>} : vector<64x32xf32>, vector<32x64xf32>, vector<64x64xf32> -> vector<64x64xf32>
    %c0_12 = arith.constant 0 : index
    %c0_13 = arith.constant 0 : index
    %25 = vector.load %arg5[%c0_12, %c0_13] : memref<1x64xf32, #tpu.memory_space<vmem>>, vector<1x64xf32>
    %26 = vector.broadcast %25 : vector<1x64xf32> to vector<64x64xf32>
    %27 = arith.addf %24, %26 : vector<64x64xf32>
    %c0_14 = arith.constant 0 : index
    %c0_15 = arith.constant 0 : index
    %28 = vector.load %arg6[%c0_14, %c0_15] : memref<64x64xf32, #tpu.memory_space<vmem>>, vector<64x64xf32>
    tpu.vector_store %arg6[%c0_14, %c0_15], %27 {strides = array<i32>} : memref<64x64xf32, #tpu.memory_space<vmem>>, vector<64x64xf32>,
    return
  }
  func.func @transform_0(%arg0: i32) -> (i32, i32) {
    %c0_i32 = arith.constant 0 : i32
    %c0_i32_0 = arith.constant 0 : i32
    return %arg0, %c0_i32 : i32, i32
  }
  func.func @transform_1(%arg0: i32) -> (i32, i32) {
    %c0_i32 = arith.constant 0 : i32
    %c0_i32_0 = arith.constant 0 : i32
    %c0_i32_1 = arith.constant 0 : i32
    return %c0_i32, %c0_i32_0 : i32, i32
  }
  func.func @transform_2(%arg0: i32) -> (i32, i32) {
    %c0_i32 = arith.constant 0 : i32
    %c0_i32_0 = arith.constant 0 : i32
    %c0_i32_1 = arith.constant 0 : i32
    return %c0_i32, %c0_i32_0 : i32, i32
  }
  func.func @transform_3(%arg0: i32) -> (i32, i32) {
    %c0_i32 = arith.constant 0 : i32
    %c0_i32_0 = arith.constant 0 : i32
    %c0_i32_1 = arith.constant 0 : i32
    return %c0_i32, %c0_i32_0 : i32, i32
  }
  func.func @transform_4(%arg0: i32) -> (i32, i32) {
    %c0_i32 = arith.constant 0 : i32
    %c0_i32_0 = arith.constant 0 : i32
    %c0_i32_1 = arith.constant 0 : i32
    return %c0_i32, %c0_i32_0 : i32, i32
  }
  func.func @transform_5(%arg0: i32) -> (i32, i32) {
    %c0_i32 = arith.constant 0 : i32
    %c0_i32_0 = arith.constant 0 : i32
    return %arg0, %c0_i32 : i32, i32
  }
}

module attributes {stable_mosaic.version = 11 : i64} {
  func.func @mlp_kernel(%arg0: i32, %arg1: memref<64x32xf32, #tpu.memory_space<vmem>>, %arg2: memref<1x32xf32, #tpu.memory_space<vmem>>, %arg3: memref<1x32xf32, #tpu.memory_space<vmem>>, %arg4: memref<32x128xf32, #tpu.memory_space<vmem>>, %arg5: memref<1x128xf32, #tpu.memory_space<vmem>>, %arg6: memref<128x32xf32, #tpu.memory_space<vmem>>, %arg7: memref<1x32xf32, #tpu.memory_space<vmem>>, %arg8: memref<64x32xf32, #tpu.memory_space<vmem>>) attributes {dimension_semantics = [#tpu.dimension_semantics<parallel>], iteration_bounds = array<i64: 1>, scalar_prefetch = 0 : i64, scratch_operands = 0 : i64, tpu.core_type = #tpu.core_type<tc>, window_params = [{transform_indices = @transform_0, window_bounds = array<i64: 64, 32>}, {pipeline_mode = #tpu.pipeline_mode<synchronous>, transform_indices = @transform_1, window_bounds = array<i64: 1, 32>}, {pipeline_mode = #tpu.pipeline_mode<synchronous>, transform_indices = @transform_2, window_bounds = array<i64: 1, 32>}, {pipeline_mode = #tpu.pipeline_mode<synchronous>, transform_indices = @transform_3, window_bounds = array<i64: 32, 128>}, {pipeline_mode = #tpu.pipeline_mode<synchronous>, transform_indices = @transform_4, window_bounds = array<i64: 1, 128>}, {pipeline_mode = #tpu.pipeline_mode<synchronous>, transform_indices = @transform_5, window_bounds = array<i64: 128, 32>}, {pipeline_mode = #tpu.pipeline_mode<synchronous>, transform_indices = @transform_6, window_bounds = array<i64: 1, 32>}, {transform_indices = @transform_7, window_bounds = array<i64: 64, 32>}]} {
    %c0 = arith.constant 0 : index
    %c0_0 = arith.constant 0 : index
    %0 = vector.load %arg1[%c0, %c0_0] : memref<64x32xf32, #tpu.memory_space<vmem>>, vector<64x32xf32>
    %c0_1 = arith.constant 0 : index
    %c0_2 = arith.constant 0 : index
    %1 = vector.load %arg2[%c0_1, %c0_2] : memref<1x32xf32, #tpu.memory_space<vmem>>, vector<1x32xf32>
    %c0_3 = arith.constant 0 : index
    %c0_4 = arith.constant 0 : index
    %2 = vector.load %arg3[%c0_3, %c0_4] : memref<1x32xf32, #tpu.memory_space<vmem>>, vector<1x32xf32>
    %cst = arith.constant dense<0.000000e+00> : vector<64xf32>
    %3 = vector.multi_reduction <add>, %0, %cst [1] : vector<64x32xf32> to vector<64xf32>
    %4 = vector.shape_cast %3 : vector<64xf32> to vector<64x1xf32>
    %cst_5 = arith.constant 3.200000e+01 : f32
    %5 = vector.broadcast %cst_5 : f32 to vector<64x1xf32>
    %6 = arith.divf %4, %5 : vector<64x1xf32>
    %7 = vector.broadcast %6 : vector<64x1xf32> to vector<64x32xf32>
    %8 = arith.subf %0, %7 : vector<64x32xf32>
    %9 = arith.mulf %8, %8 : vector<64x32xf32>
    %cst_6 = arith.constant dense<0.000000e+00> : vector<64xf32>
    %10 = vector.multi_reduction <add>, %9, %cst_6 [1] : vector<64x32xf32> to vector<64xf32>
    %11 = vector.shape_cast %10 : vector<64xf32> to vector<64x1xf32>
    %cst_7 = arith.constant 3.200000e+01 : f32
    %12 = vector.broadcast %cst_7 : f32 to vector<64x1xf32>
    %13 = arith.divf %11, %12 : vector<64x1xf32>
    %cst_8 = arith.constant 9.99999997E-7 : f32
    %14 = vector.broadcast %cst_8 : f32 to vector<64x1xf32>
    %15 = arith.addf %13, %14 : vector<64x1xf32>
    %16 = math.rsqrt %15 : vector<64x1xf32>
    %17 = vector.broadcast %16 : vector<64x1xf32> to vector<64x32xf32>
    %18 = arith.mulf %8, %17 : vector<64x32xf32>
    %19 = vector.broadcast %1 : vector<1x32xf32> to vector<64x32xf32>
    %20 = arith.mulf %18, %19 : vector<64x32xf32>
    %21 = vector.broadcast %2 : vector<1x32xf32> to vector<64x32xf32>
    %22 = arith.addf %20, %21 : vector<64x32xf32>
    %c0_9 = arith.constant 0 : index
    %c0_10 = arith.constant 0 : index
    %23 = vector.load %arg4[%c0_9, %c0_10] : memref<32x128xf32, #tpu.memory_space<vmem>>, vector<32x128xf32>
    %cst_11 = arith.constant dense<0.000000e+00> : vector<64x128xf32>
    %24 = tpu.matmul %22, %23, %cst_11 {dimension_numbers = #tpu.dot_dimension_numbers<[1], [0], [0], [1], [0, 0, 1, 1], [], []>} : vector<64x32xf32>, vector<32x128xf32>, vector<64x128xf32> -> vector<64x128xf32>
    %c0_12 = arith.constant 0 : index
    %c0_13 = arith.constant 0 : index
    %25 = vector.load %arg5[%c0_12, %c0_13] : memref<1x128xf32, #tpu.memory_space<vmem>>, vector<1x128xf32>
    %26 = vector.broadcast %25 : vector<1x128xf32> to vector<64x128xf32>
    %27 = arith.addf %24, %26 : vector<64x128xf32>
    %cst_14 = arith.constant 5.000000e-01 : f32
    %28 = vector.broadcast %cst_14 : f32 to vector<64x128xf32>
    %29 = arith.mulf %28, %27 : vector<64x128xf32>
    %cst_15 = arith.constant 0.707106769 : f32
    %30 = vector.broadcast %cst_15 : f32 to vector<64x128xf32>
    %31 = arith.mulf %27, %30 : vector<64x128xf32>
    %32 = math.absf %31 : vector<64x128xf32>
    %cst_16 = arith.constant 0.327591091 : f32
    %33 = vector.broadcast %cst_16 : f32 to vector<64x128xf32>
    %34 = arith.mulf %33, %32 : vector<64x128xf32>
    %cst_17 = arith.constant 1.000000e+00 : f32
    %35 = vector.broadcast %cst_17 : f32 to vector<64x128xf32>
    %36 = arith.addf %35, %34 : vector<64x128xf32>
    %cst_18 = arith.constant 1.000000e+00 : f32
    %37 = vector.broadcast %cst_18 : f32 to vector<64x128xf32>
    %38 = arith.divf %37, %36 : vector<64x128xf32>
    %cst_19 = arith.constant 1.06140542 : f32
    %39 = vector.broadcast %cst_19 : f32 to vector<64x128xf32>
    %40 = arith.mulf %39, %38 : vector<64x128xf32>
    %cst_20 = arith.constant -1.45315206 : f32
    %41 = vector.broadcast %cst_20 : f32 to vector<64x128xf32>
    %42 = arith.addf %40, %41 : vector<64x128xf32>
    %43 = arith.mulf %42, %38 : vector<64x128xf32>
    %cst_21 = arith.constant 1.42141378 : f32
    %44 = vector.broadcast %cst_21 : f32 to vector<64x128xf32>
    %45 = arith.addf %43, %44 : vector<64x128xf32>
    %46 = arith.mulf %45, %38 : vector<64x128xf32>
    %cst_22 = arith.constant -0.284496725 : f32
    %47 = vector.broadcast %cst_22 : f32 to vector<64x128xf32>
    %48 = arith.addf %46, %47 : vector<64x128xf32>
    %49 = arith.mulf %48, %38 : vector<64x128xf32>
    %cst_23 = arith.constant 0.254829586 : f32
    %50 = vector.broadcast %cst_23 : f32 to vector<64x128xf32>
    %51 = arith.addf %49, %50 : vector<64x128xf32>
    %52 = arith.mulf %51, %38 : vector<64x128xf32>
    %cst_24 = arith.constant 0.000000e+00 : f32
    %53 = vector.broadcast %cst_24 : f32 to vector<64x128xf32>
    %54 = arith.subf %53, %32 : vector<64x128xf32>
    %55 = arith.mulf %54, %32 : vector<64x128xf32>
    %56 = math.exp %55 : vector<64x128xf32>
    %57 = arith.mulf %52, %56 : vector<64x128xf32>
    %cst_25 = arith.constant 1.000000e+00 : f32
    %58 = vector.broadcast %cst_25 : f32 to vector<64x128xf32>
    %59 = arith.subf %58, %57 : vector<64x128xf32>
    %cst_26 = arith.constant 0.000000e+00 : f32
    %60 = vector.broadcast %cst_26 : f32 to vector<64x128xf32>
    %61 = arith.cmpf olt, %31, %60 : vector<64x128xf32>
    %cst_27 = arith.constant 0.000000e+00 : f32
    %62 = vector.broadcast %cst_27 : f32 to vector<64x128xf32>
    %63 = arith.subf %62, %59 : vector<64x128xf32>
    %64 = arith.select %61, %63, %59 : vector<64x128xi1>, vector<64x128xf32>
    %cst_28 = arith.constant 1.000000e+00 : f32
    %65 = vector.broadcast %cst_28 : f32 to vector<64x128xf32>
    %66 = arith.addf %65, %64 : vector<64x128xf32>
    %67 = arith.mulf %29, %66 : vector<64x128xf32>
    %c0_29 = arith.constant 0 : index
    %c0_30 = arith.constant 0 : index
    %68 = vector.load %arg6[%c0_29, %c0_30] : memref<128x32xf32, #tpu.memory_space<vmem>>, vector<128x32xf32>
    %cst_31 = arith.constant dense<0.000000e+00> : vector<64x32xf32>
    %69 = tpu.matmul %67, %68, %cst_31 {dimension_numbers = #tpu.dot_dimension_numbers<[1], [0], [0], [1], [0, 0, 1, 1], [], []>} : vector<64x128xf32>, vector<128x32xf32>, vector<64x32xf32> -> vector<64x32xf32>
    %c0_32 = arith.constant 0 : index
    %c0_33 = arith.constant 0 : index
    %70 = vector.load %arg7[%c0_32, %c0_33] : memref<1x32xf32, #tpu.memory_space<vmem>>, vector<1x32xf32>
    %71 = vector.broadcast %70 : vector<1x32xf32> to vector<64x32xf32>
    %72 = arith.addf %69, %71 : vector<64x32xf32>
    %73 = arith.addf %0, %72 : vector<64x32xf32>
    %c0_34 = arith.constant 0 : index
    %c0_35 = arith.constant 0 : index
    %74 = vector.load %arg8[%c0_34, %c0_35] : memref<64x32xf32, #tpu.memory_space<vmem>>, vector<64x32xf32>
    tpu.vector_store %arg8[%c0_34, %c0_35], %73 {strides = array<i32>} : memref<64x32xf32, #tpu.memory_space<vmem>>, vector<64x32xf32>,
    return
  }
  func.func @transform_0(%arg0: i32) -> (i32, i32) {
    %c0_i32 = arith.constant 0 : i32
    %c0_i32_0 = arith.constant 0 : i32
    return %arg0, %c0_i32 : i32, i32
  }
  func.func @transform_1(%arg0: i32) -> (i32, i32) {
    %c0_i32 = arith.constant 0 : i32
    %c0_i32_0 = arith.constant 0 : i32
    %c0_i32_1 = arith.constant 0 : i32
    return %c0_i32, %c0_i32_0 : i32, i32
  }
  func.func @transform_2(%arg0: i32) -> (i32, i32) {
    %c0_i32 = arith.constant 0 : i32
    %c0_i32_0 = arith.constant 0 : i32
    %c0_i32_1 = arith.constant 0 : i32
    return %c0_i32, %c0_i32_0 : i32, i32
  }
  func.func @transform_3(%arg0: i32) -> (i32, i32) {
    %c0_i32 = arith.constant 0 : i32
    %c0_i32_0 = arith.constant 0 : i32
    %c0_i32_1 = arith.constant 0 : i32
    return %c0_i32, %c0_i32_0 : i32, i32
  }
  func.func @transform_4(%arg0: i32) -> (i32, i32) {
    %c0_i32 = arith.constant 0 : i32
    %c0_i32_0 = arith.constant 0 : i32
    %c0_i32_1 = arith.constant 0 : i32
    return %c0_i32, %c0_i32_0 : i32, i32
  }
  func.func @transform_5(%arg0: i32) -> (i32, i32) {
    %c0_i32 = arith.constant 0 : i32
    %c0_i32_0 = arith.constant 0 : i32
    %c0_i32_1 = arith.constant 0 : i32
    return %c0_i32, %c0_i32_0 : i32, i32
  }
  func.func @transform_6(%arg0: i32) -> (i32, i32) {
    %c0_i32 = arith.constant 0 : i32
    %c0_i32_0 = arith.constant 0 : i32
    %c0_i32_1 = arith.constant 0 : i32
    return %c0_i32, %c0_i32_0 : i32, i32
  }
  func.func @transform_7(%arg0: i32) -> (i32, i32) {
    %c0_i32 = arith.constant 0 : i32
    %c0_i32_0 = arith.constant 0 : i32
    return %arg0, %c0_i32 : i32, i32
  }
}

module attributes {stable_mosaic.version = 11 : i64} {
  func.func @attn_proj_kernel(%arg0: i32, %arg1: memref<1x32x32xf32, #tpu.memory_space<vmem>>, %arg2: memref<1x32x64xf32, #tpu.memory_space<vmem>>, %arg3: memref<1x4x32x10xf32, #tpu.memory_space<vmem>>, %arg4: memref<10x32xf32, #tpu.memory_space<vmem>>, %arg5: memref<32x32xf32, #tpu.memory_space<vmem>>, %arg6: memref<1x32xf32, #tpu.memory_space<vmem>>, %arg7: memref<1x32x32xf32, #tpu.memory_space<vmem>>, %arg8: memref<1x32x32xf32, #tpu.memory_space<vmem>>) attributes {dimension_semantics = [#tpu.dimension_semantics<parallel>], iteration_bounds = array<i64: 2>, scalar_prefetch = 0 : i64, scratch_operands = 0 : i64, tpu.core_type = #tpu.core_type<tc>, window_params = [{transform_indices = @transform_0, window_bounds = array<i64: 1, 32, 32>}, {transform_indices = @transform_1, window_bounds = array<i64: 1, 32, 64>}, {transform_indices = @transform_2, window_bounds = array<i64: 1, 4, 32, 10>}, {pipeline_mode = #tpu.pipeline_mode<synchronous>, transform_indices = @transform_3, window_bounds = array<i64: 10, 32>}, {pipeline_mode = #tpu.pipeline_mode<synchronous>, transform_indices = @transform_4, window_bounds = array<i64: 32, 32>}, {pipeline_mode = #tpu.pipeline_mode<synchronous>, transform_indices = @transform_5, window_bounds = array<i64: 1, 32>}, {transform_indices = @transform_6, window_bounds = array<i64: 1, 32, 32>}, {transform_indices = @transform_7, window_bounds = array<i64: 1, 32, 32>}]} {
    %c0 = arith.constant 0 : index
    %c0_0 = arith.constant 0 : index
    %c0_1 = arith.constant 0 : index
    %0 = vector.load %arg1[%c0, %c0_0, %c0_1] : memref<1x32x32xf32, #tpu.memory_space<vmem>>, vector<1x32x32xf32>
    %1 = vector.shape_cast %0 : vector<1x32x32xf32> to vector<32x32xf32>
    %c0_2 = arith.constant 0 : index
    %c0_3 = arith.constant 0 : index
    %c0_4 = arith.constant 0 : index
    %2 = vector.load %arg2[%c0_2, %c0_3, %c0_4] : memref<1x32x64xf32, #tpu.memory_space<vmem>>, vector<1x32x64xf32>
    %3 = vector.shape_cast %2 : vector<1x32x64xf32> to vector<32x64xf32>
    %c0_5 = arith.constant 0 : index
    %c0_6 = arith.constant 0 : index
    %4 = vector.load %arg4[%c0_5, %c0_6] : memref<10x32xf32, #tpu.memory_space<vmem>>, vector<10x32xf32>
    %c0_7 = arith.constant 0 : index
    %c0_8 = arith.constant 0 : index
    %5 = vector.load %arg5[%c0_7, %c0_8] : memref<32x32xf32, #tpu.memory_space<vmem>>, vector<32x32xf32>
    %c0_9 = arith.constant 0 : index
    %c0_10 = arith.constant 0 : index
    %c0_11 = arith.constant 0 : index
    %6 = vector.load %arg7[%c0_9, %c0_10, %c0_11] : memref<1x32x32xf32, #tpu.memory_space<vmem>>, vector<1x32x32xf32>
    %7 = vector.shape_cast %6 : vector<1x32x32xf32> to vector<32x32xf32>
    %c0_12 = arith.constant 0 : index
    %c0_13 = arith.constant 0 : index
    %8 = vector.load %arg6[%c0_12, %c0_13] : memref<1x32xf32, #tpu.memory_space<vmem>>, vector<1x32xf32>
    %9 = vector.broadcast %8 : vector<1x32xf32> to vector<32x32xf32>
    %10 = arith.addf %7, %9 : vector<32x32xf32>
    %11 = vector.extract_strided_slice %1 {offsets = [0, 0], sizes = [32, 8], strides = [1, 1]} : vector<32x32xf32> to vector<32x8xf32>
    %cst = arith.constant 0.353553385 : f32
    %12 = vector.broadcast %cst : f32 to vector<32x8xf32>
    %13 = arith.mulf %11, %12 : vector<32x8xf32>
    %14 = vector.extract_strided_slice %3 {offsets = [0, 0], sizes = [32, 8], strides = [1, 1]} : vector<32x64xf32> to vector<32x8xf32>
    %15 = vector.extract_strided_slice %3 {offsets = [0, 32], sizes = [32, 8], strides = [1, 1]} : vector<32x64xf32> to vector<32x8xf32>
    %c0_14 = arith.constant 0 : index
    %c0_15 = arith.constant 0 : index
    %c0_16 = arith.constant 0 : index
    %c0_17 = arith.constant 0 : index
    %16 = vector.load %arg3[%c0_14, %c0_15, %c0_16, %c0_17] : memref<1x4x32x10xf32, #tpu.memory_space<vmem>>, vector<1x1x32x10xf32>
    %17 = vector.shape_cast %16 : vector<1x1x32x10xf32> to vector<32x10xf32>
    %18 = tpu.transpose %14, [1, 0] : vector<32x8xf32> -> vector<8x32xf32>
    %cst_18 = arith.constant dense<0.000000e+00> : vector<32x32xf32>
    %19 = tpu.matmul %13, %18, %cst_18 {dimension_numbers = #tpu.dot_dimension_numbers<[1], [0], [0], [1], [0, 0, 1, 1], [], []>} : vector<32x8xf32>, vector<8x32xf32>, vector<32x32xf32> -> vector<32x32xf32>
    %cst_19 = arith.constant dense<0.000000e+00> : vector<32x32xf32>
    %20 = tpu.matmul %17, %4, %cst_19 {dimension_numbers = #tpu.dot_dimension_numbers<[1], [0], [0], [1], [0, 0, 1, 1], [], []>} : vector<32x10xf32>, vector<10x32xf32>, vector<32x32xf32> -> vector<32x32xf32>
    %21 = arith.addf %19, %20 : vector<32x32xf32>
    %cst_20 = arith.constant dense<0xFF800000> : vector<32xf32>
    %22 = vector.multi_reduction <maximumf>, %21, %cst_20 [1] : vector<32x32xf32> to vector<32xf32>
    %23 = vector.shape_cast %22 : vector<32xf32> to vector<32x1xf32>
    %24 = vector.broadcast %23 : vector<32x1xf32> to vector<32x32xf32>
    %25 = arith.subf %21, %24 : vector<32x32xf32>
    %26 = math.exp %25 : vector<32x32xf32>
    %cst_21 = arith.constant dense<0.000000e+00> : vector<32xf32>
    %27 = vector.multi_reduction <add>, %26, %cst_21 [1] : vector<32x32xf32> to vector<32xf32>
    %28 = vector.shape_cast %27 : vector<32xf32> to vector<32x1xf32>
    %cst_22 = arith.constant dense<0.000000e+00> : vector<32x8xf32>
    %29 = tpu.matmul %26, %15, %cst_22 {dimension_numbers = #tpu.dot_dimension_numbers<[1], [0], [0], [1], [0, 0, 1, 1], [], []>} : vector<32x32xf32>, vector<32x8xf32>, vector<32x8xf32> -> vector<32x8xf32>
    %30 = tpu.reciprocal %28 {approx = true} : vector<32x1xf32> -> vector<32x1xf32>
    %31 = vector.broadcast %30 : vector<32x1xf32> to vector<32x8xf32>
    %32 = arith.mulf %29, %31 : vector<32x8xf32>
    %33 = vector.extract_strided_slice %5 {offsets = [0, 0], sizes = [8, 32], strides = [1, 1]} : vector<32x32xf32> to vector<8x32xf32>
    %cst_23 = arith.constant dense<0.000000e+00> : vector<32x32xf32>
    %34 = tpu.matmul %32, %33, %cst_23 {dimension_numbers = #tpu.dot_dimension_numbers<[1], [0], [0], [1], [0, 0, 1, 1], [], []>} : vector<32x8xf32>, vector<8x32xf32>, vector<32x32xf32> -> vector<32x32xf32>
    %35 = arith.addf %10, %34 : vector<32x32xf32>
    %36 = vector.extract_strided_slice %1 {offsets = [0, 8], sizes = [32, 8], strides = [1, 1]} : vector<32x32xf32> to vector<32x8xf32>
    %cst_24 = arith.constant 0.353553385 : f32
    %37 = vector.broadcast %cst_24 : f32 to vector<32x8xf32>
    %38 = arith.mulf %36, %37 : vector<32x8xf32>
    %39 = vector.extract_strided_slice %3 {offsets = [0, 8], sizes = [32, 8], strides = [1, 1]} : vector<32x64xf32> to vector<32x8xf32>
    %40 = vector.extract_strided_slice %3 {offsets = [0, 40], sizes = [32, 8], strides = [1, 1]} : vector<32x64xf32> to vector<32x8xf32>
    %c0_25 = arith.constant 0 : index
    %c1 = arith.constant 1 : index
    %c0_26 = arith.constant 0 : index
    %c0_27 = arith.constant 0 : index
    %41 = vector.load %arg3[%c0_25, %c1, %c0_26, %c0_27] : memref<1x4x32x10xf32, #tpu.memory_space<vmem>>, vector<1x1x32x10xf32>
    %42 = vector.shape_cast %41 : vector<1x1x32x10xf32> to vector<32x10xf32>
    %43 = tpu.transpose %39, [1, 0] : vector<32x8xf32> -> vector<8x32xf32>
    %cst_28 = arith.constant dense<0.000000e+00> : vector<32x32xf32>
    %44 = tpu.matmul %38, %43, %cst_28 {dimension_numbers = #tpu.dot_dimension_numbers<[1], [0], [0], [1], [0, 0, 1, 1], [], []>} : vector<32x8xf32>, vector<8x32xf32>, vector<32x32xf32> -> vector<32x32xf32>
    %cst_29 = arith.constant dense<0.000000e+00> : vector<32x32xf32>
    %45 = tpu.matmul %42, %4, %cst_29 {dimension_numbers = #tpu.dot_dimension_numbers<[1], [0], [0], [1], [0, 0, 1, 1], [], []>} : vector<32x10xf32>, vector<10x32xf32>, vector<32x32xf32> -> vector<32x32xf32>
    %46 = arith.addf %44, %45 : vector<32x32xf32>
    %cst_30 = arith.constant dense<0xFF800000> : vector<32xf32>
    %47 = vector.multi_reduction <maximumf>, %46, %cst_30 [1] : vector<32x32xf32> to vector<32xf32>
    %48 = vector.shape_cast %47 : vector<32xf32> to vector<32x1xf32>
    %49 = vector.broadcast %48 : vector<32x1xf32> to vector<32x32xf32>
    %50 = arith.subf %46, %49 : vector<32x32xf32>
    %51 = math.exp %50 : vector<32x32xf32>
    %cst_31 = arith.constant dense<0.000000e+00> : vector<32xf32>
    %52 = vector.multi_reduction <add>, %51, %cst_31 [1] : vector<32x32xf32> to vector<32xf32>
    %53 = vector.shape_cast %52 : vector<32xf32> to vector<32x1xf32>
    %cst_32 = arith.constant dense<0.000000e+00> : vector<32x8xf32>
    %54 = tpu.matmul %51, %40, %cst_32 {dimension_numbers = #tpu.dot_dimension_numbers<[1], [0], [0], [1], [0, 0, 1, 1], [], []>} : vector<32x32xf32>, vector<32x8xf32>, vector<32x8xf32> -> vector<32x8xf32>
    %55 = tpu.reciprocal %53 {approx = true} : vector<32x1xf32> -> vector<32x1xf32>
    %56 = vector.broadcast %55 : vector<32x1xf32> to vector<32x8xf32>
    %57 = arith.mulf %54, %56 : vector<32x8xf32>
    %58 = vector.extract_strided_slice %5 {offsets = [8, 0], sizes = [8, 32], strides = [1, 1]} : vector<32x32xf32> to vector<8x32xf32>
    %cst_33 = arith.constant dense<0.000000e+00> : vector<32x32xf32>
    %59 = tpu.matmul %57, %58, %cst_33 {dimension_numbers = #tpu.dot_dimension_numbers<[1], [0], [0], [1], [0, 0, 1, 1], [], []>} : vector<32x8xf32>, vector<8x32xf32>, vector<32x32xf32> -> vector<32x32xf32>
    %60 = arith.addf %35, %59 : vector<32x32xf32>
    %61 = vector.extract_strided_slice %1 {offsets = [0, 16], sizes = [32, 8], strides = [1, 1]} : vector<32x32xf32> to vector<32x8xf32>
    %cst_34 = arith.constant 0.353553385 : f32
    %62 = vector.broadcast %cst_34 : f32 to vector<32x8xf32>
    %63 = arith.mulf %61, %62 : vector<32x8xf32>
    %64 = vector.extract_strided_slice %3 {offsets = [0, 16], sizes = [32, 8], strides = [1, 1]} : vector<32x64xf32> to vector<32x8xf32>
    %65 = vector.extract_strided_slice %3 {offsets = [0, 48], sizes = [32, 8], strides = [1, 1]} : vector<32x64xf32> to vector<32x8xf32>
    %c0_35 = arith.constant 0 : index
    %c2 = arith.constant 2 : index
    %c0_36 = arith.constant 0 : index
    %c0_37 = arith.constant 0 : index
    %66 = vector.load %arg3[%c0_35, %c2, %c0_36, %c0_37] : memref<1x4x32x10xf32, #tpu.memory_space<vmem>>, vector<1x1x32x10xf32>
    %67 = vector.shape_cast %66 : vector<1x1x32x10xf32> to vector<32x10xf32>
    %68 = tpu.transpose %64, [1, 0] : vector<32x8xf32> -> vector<8x32xf32>
    %cst_38 = arith.constant dense<0.000000e+00> : vector<32x32xf32>
    %69 = tpu.matmul %63, %68, %cst_38 {dimension_numbers = #tpu.dot_dimension_numbers<[1], [0], [0], [1], [0, 0, 1, 1], [], []>} : vector<32x8xf32>, vector<8x32xf32>, vector<32x32xf32> -> vector<32x32xf32>
    %cst_39 = arith.constant dense<0.000000e+00> : vector<32x32xf32>
    %70 = tpu.matmul %67, %4, %cst_39 {dimension_numbers = #tpu.dot_dimension_numbers<[1], [0], [0], [1], [0, 0, 1, 1], [], []>} : vector<32x10xf32>, vector<10x32xf32>, vector<32x32xf32> -> vector<32x32xf32>
    %71 = arith.addf %69, %70 : vector<32x32xf32>
    %cst_40 = arith.constant dense<0xFF800000> : vector<32xf32>
    %72 = vector.multi_reduction <maximumf>, %71, %cst_40 [1] : vector<32x32xf32> to vector<32xf32>
    %73 = vector.shape_cast %72 : vector<32xf32> to vector<32x1xf32>
    %74 = vector.broadcast %73 : vector<32x1xf32> to vector<32x32xf32>
    %75 = arith.subf %71, %74 : vector<32x32xf32>
    %76 = math.exp %75 : vector<32x32xf32>
    %cst_41 = arith.constant dense<0.000000e+00> : vector<32xf32>
    %77 = vector.multi_reduction <add>, %76, %cst_41 [1] : vector<32x32xf32> to vector<32xf32>
    %78 = vector.shape_cast %77 : vector<32xf32> to vector<32x1xf32>
    %cst_42 = arith.constant dense<0.000000e+00> : vector<32x8xf32>
    %79 = tpu.matmul %76, %65, %cst_42 {dimension_numbers = #tpu.dot_dimension_numbers<[1], [0], [0], [1], [0, 0, 1, 1], [], []>} : vector<32x32xf32>, vector<32x8xf32>, vector<32x8xf32> -> vector<32x8xf32>
    %80 = tpu.reciprocal %78 {approx = true} : vector<32x1xf32> -> vector<32x1xf32>
    %81 = vector.broadcast %80 : vector<32x1xf32> to vector<32x8xf32>
    %82 = arith.mulf %79, %81 : vector<32x8xf32>
    %83 = vector.extract_strided_slice %5 {offsets = [16, 0], sizes = [8, 32], strides = [1, 1]} : vector<32x32xf32> to vector<8x32xf32>
    %cst_43 = arith.constant dense<0.000000e+00> : vector<32x32xf32>
    %84 = tpu.matmul %82, %83, %cst_43 {dimension_numbers = #tpu.dot_dimension_numbers<[1], [0], [0], [1], [0, 0, 1, 1], [], []>} : vector<32x8xf32>, vector<8x32xf32>, vector<32x32xf32> -> vector<32x32xf32>
    %85 = arith.addf %60, %84 : vector<32x32xf32>
    %86 = vector.extract_strided_slice %1 {offsets = [0, 24], sizes = [32, 8], strides = [1, 1]} : vector<32x32xf32> to vector<32x8xf32>
    %cst_44 = arith.constant 0.353553385 : f32
    %87 = vector.broadcast %cst_44 : f32 to vector<32x8xf32>
    %88 = arith.mulf %86, %87 : vector<32x8xf32>
    %89 = vector.extract_strided_slice %3 {offsets = [0, 24], sizes = [32, 8], strides = [1, 1]} : vector<32x64xf32> to vector<32x8xf32>
    %90 = vector.extract_strided_slice %3 {offsets = [0, 56], sizes = [32, 8], strides = [1, 1]} : vector<32x64xf32> to vector<32x8xf32>
    %c0_45 = arith.constant 0 : index
    %c3 = arith.constant 3 : index
    %c0_46 = arith.constant 0 : index
    %c0_47 = arith.constant 0 : index
    %91 = vector.load %arg3[%c0_45, %c3, %c0_46, %c0_47] : memref<1x4x32x10xf32, #tpu.memory_space<vmem>>, vector<1x1x32x10xf32>
    %92 = vector.shape_cast %91 : vector<1x1x32x10xf32> to vector<32x10xf32>
    %93 = tpu.transpose %89, [1, 0] : vector<32x8xf32> -> vector<8x32xf32>
    %cst_48 = arith.constant dense<0.000000e+00> : vector<32x32xf32>
    %94 = tpu.matmul %88, %93, %cst_48 {dimension_numbers = #tpu.dot_dimension_numbers<[1], [0], [0], [1], [0, 0, 1, 1], [], []>} : vector<32x8xf32>, vector<8x32xf32>, vector<32x32xf32> -> vector<32x32xf32>
    %cst_49 = arith.constant dense<0.000000e+00> : vector<32x32xf32>
    %95 = tpu.matmul %92, %4, %cst_49 {dimension_numbers = #tpu.dot_dimension_numbers<[1], [0], [0], [1], [0, 0, 1, 1], [], []>} : vector<32x10xf32>, vector<10x32xf32>, vector<32x32xf32> -> vector<32x32xf32>
    %96 = arith.addf %94, %95 : vector<32x32xf32>
    %cst_50 = arith.constant dense<0xFF800000> : vector<32xf32>
    %97 = vector.multi_reduction <maximumf>, %96, %cst_50 [1] : vector<32x32xf32> to vector<32xf32>
    %98 = vector.shape_cast %97 : vector<32xf32> to vector<32x1xf32>
    %99 = vector.broadcast %98 : vector<32x1xf32> to vector<32x32xf32>
    %100 = arith.subf %96, %99 : vector<32x32xf32>
    %101 = math.exp %100 : vector<32x32xf32>
    %cst_51 = arith.constant dense<0.000000e+00> : vector<32xf32>
    %102 = vector.multi_reduction <add>, %101, %cst_51 [1] : vector<32x32xf32> to vector<32xf32>
    %103 = vector.shape_cast %102 : vector<32xf32> to vector<32x1xf32>
    %cst_52 = arith.constant dense<0.000000e+00> : vector<32x8xf32>
    %104 = tpu.matmul %101, %90, %cst_52 {dimension_numbers = #tpu.dot_dimension_numbers<[1], [0], [0], [1], [0, 0, 1, 1], [], []>} : vector<32x32xf32>, vector<32x8xf32>, vector<32x8xf32> -> vector<32x8xf32>
    %105 = tpu.reciprocal %103 {approx = true} : vector<32x1xf32> -> vector<32x1xf32>
    %106 = vector.broadcast %105 : vector<32x1xf32> to vector<32x8xf32>
    %107 = arith.mulf %104, %106 : vector<32x8xf32>
    %108 = vector.extract_strided_slice %5 {offsets = [24, 0], sizes = [8, 32], strides = [1, 1]} : vector<32x32xf32> to vector<8x32xf32>
    %cst_53 = arith.constant dense<0.000000e+00> : vector<32x32xf32>
    %109 = tpu.matmul %107, %108, %cst_53 {dimension_numbers = #tpu.dot_dimension_numbers<[1], [0], [0], [1], [0, 0, 1, 1], [], []>} : vector<32x8xf32>, vector<8x32xf32>, vector<32x32xf32> -> vector<32x32xf32>
    %110 = arith.addf %85, %109 : vector<32x32xf32>
    %c0_54 = arith.constant 0 : index
    %c0_55 = arith.constant 0 : index
    %c0_56 = arith.constant 0 : index
    %111 = vector.load %arg8[%c0_54, %c0_55, %c0_56] : memref<1x32x32xf32, #tpu.memory_space<vmem>>, vector<1x32x32xf32>
    %112 = vector.shape_cast %111 : vector<1x32x32xf32> to vector<32x32xf32>
    %113 = vector.shape_cast %110 : vector<32x32xf32> to vector<1x32x32xf32>
    tpu.vector_store %arg8[%c0_54, %c0_55, %c0_56], %113 {strides = array<i32>} : memref<1x32x32xf32, #tpu.memory_space<vmem>>, vector<1x32x32xf32>,
    return
  }
  func.func @transform_0(%arg0: i32) -> (i32, i32, i32) {
    %c0_i32 = arith.constant 0 : i32
    %c0_i32_0 = arith.constant 0 : i32
    %c0_i32_1 = arith.constant 0 : i32
    return %arg0, %c0_i32, %c0_i32_0 : i32, i32, i32
  }
  func.func @transform_1(%arg0: i32) -> (i32, i32, i32) {
    %c0_i32 = arith.constant 0 : i32
    %c0_i32_0 = arith.constant 0 : i32
    %c0_i32_1 = arith.constant 0 : i32
    return %arg0, %c0_i32, %c0_i32_0 : i32, i32, i32
  }
  func.func @transform_2(%arg0: i32) -> (i32, i32, i32, i32) {
    %c0_i32 = arith.constant 0 : i32
    %c0_i32_0 = arith.constant 0 : i32
    %c0_i32_1 = arith.constant 0 : i32
    %c0_i32_2 = arith.constant 0 : i32
    return %arg0, %c0_i32, %c0_i32_0, %c0_i32_1 : i32, i32, i32, i32
  }
  func.func @transform_3(%arg0: i32) -> (i32, i32) {
    %c0_i32 = arith.constant 0 : i32
    %c0_i32_0 = arith.constant 0 : i32
    %c0_i32_1 = arith.constant 0 : i32
    return %c0_i32, %c0_i32_0 : i32, i32
  }
  func.func @transform_4(%arg0: i32) -> (i32, i32) {
    %c0_i32 = arith.constant 0 : i32
    %c0_i32_0 = arith.constant 0 : i32
    %c0_i32_1 = arith.constant 0 : i32
    return %c0_i32, %c0_i32_0 : i32, i32
  }
  func.func @transform_5(%arg0: i32) -> (i32, i32) {
    %c0_i32 = arith.constant 0 : i32
    %c0_i32_0 = arith.constant 0 : i32
    %c0_i32_1 = arith.constant 0 : i32
    return %c0_i32, %c0_i32_0 : i32, i32
  }
  func.func @transform_6(%arg0: i32) -> (i32, i32, i32) {
    %c0_i32 = arith.constant 0 : i32
    %c0_i32_0 = arith.constant 0 : i32
    %c0_i32_1 = arith.constant 0 : i32
    return %arg0, %c0_i32, %c0_i32_0 : i32, i32, i32
  }
  func.func @transform_7(%arg0: i32) -> (i32, i32, i32) {
    %c0_i32 = arith.constant 0 : i32
    %c0_i32_0 = arith.constant 0 : i32
    %c0_i32_1 = arith.constant 0 : i32
    return %arg0, %c0_i32, %c0_i32_0 : i32, i32, i32
  }
}

</mosaic_0001>

<bundles_post_ra>
// kernel: cross3d_block_forward.4
= control target key start
LH: loop header
LB: loop body
LE: loop exit
PB: predicated region body
PF: predicated region fallthrough
CT: control target
= control target key end

     0   :  { %10 = vsyncpa [#allocation3], 0  ;;  %s425_s18 = smov [#allocation2]   ;;  %s606_s0 = inlined_call_operand.vmem [shape: f32[64,32], index: 0, kind: input, shape index: {}]   ;;  %s607_s1 = inlined_call_operand.vmem [shape: f32[1,32], index: 1, kind: input, shape index: {}]   ;;  %s608_s2 = inlined_call_operand.vmem [shape: f32[1,32], index: 2, kind: input, shape index: {}]   ;;  %s609_s3 = inlined_call_operand.vmem [shape: f32[32,32], index: 3, kind: input, shape index: {}]   ;;  %s610_s4 = inlined_call_operand.hbm [shape: f32[1,32], index: 4, kind: input, shape index: {}]   ;;  %s611_s5 = inlined_call_operand.vmem [shape: f32[64,32], index: 5, kind: output, shape index: {}]  }
   0x1   :  { %s25_s19 = sshll.u32 %s425_s18, 4  ;;  %s401_s22 = scalar_lea.hbm %s610_s4, 16  ;;  %s26_s19 = int_to_ptr.vmem [resolvable:$true] %s25_s19 }
   0x2   :  { %p402_p0 = scmp.ne.s32.totalorder %s610_s4, %s401_s22  ;;  %p405_p1 = scmp.lt.u32.totalorder %s401_s22, %s610_s4 }
   0x4   :  { %p407_p2 = pnand %p405_p1, %p402_p0 }
   0x6   :  { %410 = shalt.err (!%p407_p2)
}
   0x7   :  { %s411_s27 = scalar_lea.vmem %s26_s19, 16  ;;  %s415_s28 = scalar_lea.vmem %s26_s19, 32 }
   0x8   :  { %p412_p3 = scmp.ne.s32.totalorder %s26_s19, %s411_s27  ;;  %p416_p4 = scmp.lt.s32.totalorder %s26_s19, %s26_s19 }
   0x9   :  { %p417_p5 = scmp.lt.s32.totalorder %s415_s28, %s411_s27 }
   0xb   :  { %p418_p6 = por %p417_p5, %p416_p4 }
   0xd   :  { %p419_p7 = pnand %p418_p6, %p412_p3 }
   0xf   :  { %422 = shalt.err (!%p419_p7)
}
  0x10   :  { %28 = dma.hbm_to_vmem [thread:$0]  %s610_s4, 16, %s26_s19, [#allocation3]  }
  0x11   :  { %423 = dma.done.wait [#allocation3], 16  }
  0x12   :  { %424 = vsyncadd [#allocation3], 4294967280  ;;  %vm42_vm0 = vcmask 261120   ;;  %v32_v0 = vld [vmem:[%s606_s0] sm:$0xff]  ;;  %v33_v1 = vld [vmem:[%s606_s0 + $0x8] sm:$0xff] }
  0x13   :  { %v36_v2 = vld [vmem:[%s606_s0 + $0x20] sm:$0xff]  ;;  %v43_v3 = vsel %vm42_vm0, %v32_v0, 0.0  ;;  %v46_v4 = vsel %vm42_vm0, %v33_v1, 0.0  ;;  %v37_v5 = vld [vmem:[%s606_s0 + $0x28] sm:$0xff]  ;;  %v34_v8 = vld [vmem:[%s606_s0 + $0x10] sm:$0xff] }
  0x14   :  { %44 = vadd.xlane.f32.xlu0 %v43_v3  ;;  %47 = vadd.xlane.f32.xlu1 %v46_v4  ;;  %v55_v6 = vsel %vm42_vm0, %v36_v2, 0.0  ;;  %v58_v7 = vsel %vm42_vm0, %v37_v5, 0.0  ;;  %v38_v9 = vld [vmem:[%s606_s0 + $0x30] sm:$0xff]  ;;  %v49_v10 = vsel %vm42_vm0, %v34_v8, 0.0  ;;  %v35_v12 = vld [vmem:[%s606_s0 + $0x18] sm:$0xff]  ;;  %v176_v56 = vld [vmem:[%s609_s3] sm:$0xff] }
  0x15   :  { %v61_v11 = vsel %vm42_vm0, %v38_v9, 0.0  ;;  %v39_v13 = vld [vmem:[%s606_s0 + $0x38] sm:$0xff]  ;;  %v52_v14 = vsel %vm42_vm0, %v35_v12, 0.0  ;;  %v177_v57 = vld [vmem:[%s609_s3 + $0x8] sm:$0xff]  ;;  %v178_v59 = vld [vmem:[%s609_s3 + $0x10] sm:$0xff] }
  0x16   :  { %v64_v15 = vsel %vm42_vm0, %v39_v13, 0.0  ;;  %v372_v58 = vpack.c.bf16 %v177_v57, %v176_v56  ;;  %v179_v60 = vld [vmem:[%s609_s3 + $0x18] sm:$0xff] }
  0x17   :  { %v376_v61 = vpack.c.bf16 %v179_v60, %v178_v59 }
  0x18   :  { %56 = vadd.xlane.f32.xlu0 %v55_v6  ;;  %59 = vadd.xlane.f32.xlu1 %v58_v7 }
  0x19   :  { %373 = vmatprep.subr.bf16.mxu0 %v372_v58  ;;  %380 = vmatprep.subr.bf16.mxu1 %v372_v58 }
  0x1a   :  { %375 = vmatpush3.bf16.msra.mxu0 %v372_v58  ;;  %382 = vmatpush3.bf16.msra.mxu1 %v372_v58 }
  0x1b   :  { %377 = vmatprep.subr.bf16.mxu0 %v376_v61  ;;  %381 = vmatprep.subr.bf16.mxu1 %v376_v61 }
  0x1c   :  { %50 = vadd.xlane.f32.xlu0 %v49_v10  ;;  %62 = vadd.xlane.f32.xlu1 %v61_v11 }
  0x1e   :  { %379 = vmatpush3.bf16.msra.mxu0 %v376_v61  ;;  %383 = vmatpush3.bf16.msra.mxu1 %v376_v61 }
  0x20   :  { %53 = vadd.xlane.f32.xlu0 %v52_v14  ;;  %65 = vadd.xlane.f32.xlu1 %v64_v15 }
  0xa1   :  { %v45_v16 = vpop.xlane.xlu0 %44  ;;  %v48_v17 = vpop.xlane.xlu1 %47 }
  0xa2   :  { %v68_v18 = vmul.f32 0.03125, %v45_v16  ;;  %v69_v19 = vmul.f32 0.03125, %v48_v17 }
  0xa4   :  { %v500_v20 = vsub.f32 %v32_v0, %v68_v18  ;;  %v502_v21 = vsub.f32 %v33_v1, %v69_v19 }
  0xa5   :  { %v57_v22 = vpop.xlane.xlu0 %56  ;;  %v60_v23 = vpop.xlane.xlu1 %59 }
  0xa6   :  { %v72_v24 = vmul.f32 0.03125, %v57_v22  ;;  %v73_v25 = vmul.f32 0.03125, %v60_v23  ;;  %v84_v26 = vmul.f32 %v500_v20, %v500_v20  ;;  %v85_v27 = vmul.f32 %v502_v21, %v502_v21  ;;  %v329_v22 = vld [vmem:[%s607_s1] ss:$0 sm:$0xff] }
  0xa8   :  { %v508_v28 = vsub.f32 %v36_v2, %v72_v24  ;;  %v510_v29 = vsub.f32 %v37_v5, %v73_v25  ;;  %v92_v30 = vsel %vm42_vm0, %v84_v26, 0.0  ;;  %v95_v33 = vsel %vm42_vm0, %v85_v27, 0.0  ;;  %v330_v26 = vld [vmem:[%s608_s2] ss:$0 sm:$0xff] }
  0xa9   :  { %93 = vadd.xlane.f32.xlu0 %v92_v30  ;;  %v51_v31 = vpop.xlane.xlu0 %50  ;;  %v63_v32 = vpop.xlane.xlu1 %62 }
  0xaa   :  { %v70_v34 = vmul.f32 0.03125, %v51_v31  ;;  %v74_v35 = vmul.f32 0.03125, %v63_v32  ;;  %v88_v36 = vmul.f32 %v508_v28, %v508_v28  ;;  %v89_v37 = vmul.f32 %v510_v29, %v510_v29 }
  0xac   :  { %v518_v38 = vsub.f32 %v34_v8, %v70_v34  ;;  %v520_v39 = vsub.f32 %v38_v9, %v74_v35  ;;  %v104_v40 = vsel %vm42_vm0, %v88_v36, 0.0  ;;  %v107_v43 = vsel %vm42_vm0, %v89_v37, 0.0 }
  0xad   :  { %96 = vadd.xlane.f32.xlu0 %v95_v33  ;;  %105 = vadd.xlane.f32.xlu1 %v104_v40  ;;  %v54_v41 = vpop.xlane.xlu0 %53  ;;  %v66_v42 = vpop.xlane.xlu1 %65 }
  0xae   :  { %v71_v44 = vmul.f32 0.03125, %v54_v41  ;;  %v75_v45 = vmul.f32 0.03125, %v66_v42  ;;  %v86_v46 = vmul.f32 %v518_v38, %v518_v38  ;;  %v90_v47 = vmul.f32 %v520_v39, %v520_v39 }
  0xb0   :  { %v528_v48 = vsub.f32 %v35_v12, %v71_v44  ;;  %v530_v49 = vsub.f32 %v39_v13, %v75_v45  ;;  %v98_v50 = vsel %vm42_vm0, %v86_v46, 0.0  ;;  %v110_v51 = vsel %vm42_vm0, %v90_v47, 0.0 }
  0xb1   :  { %108 = vadd.xlane.f32.xlu1 %v107_v43  ;;  %99 = vadd.xlane.f32.xlu0 %v98_v50 }
  0xb2   :  { %v87_v52 = vmul.f32 %v528_v48, %v528_v48  ;;  %v91_v53 = vmul.f32 %v530_v49, %v530_v49 }
  0xb4   :  { %v101_v54 = vsel %vm42_vm0, %v87_v52, 0.0  ;;  %v113_v55 = vsel %vm42_vm0, %v91_v53, 0.0 }
  0xb5   :  { %111 = vadd.xlane.f32.xlu1 %v110_v51  ;;  %102 = vadd.xlane.f32.xlu0 %v101_v54 }
  0xb9   :  { %114 = vadd.xlane.f32.xlu1 %v113_v55 }
 0x136   :  { %v94_v62 = vpop.xlane.xlu0 %93 }
 0x137   :  { %v116_v63 = vmul.f32 0.03125, %v94_v62 }
 0x139   :  { %v124_v0 = vadd.f32 1e-06, %v116_v63 }
 0x13a   :  { %v106_v1 = vpop.xlane.xlu1 %105  ;;  %v97_v2 = vpop.xlane.xlu0 %96 }
 0x13b   :  { %385 = vrsqrt.f32 %v124_v0  ;;  %v120_v3 = vmul.f32 0.03125, %v106_v1  ;;  %v117_v4 = vmul.f32 0.03125, %v97_v2 }
 0x13d   :  { %v128_v5 = vadd.f32 1e-06, %v120_v3  ;;  %v125_v6 = vadd.f32 1e-06, %v117_v4 }
 0x13e   :  { %v109_v7 = vpop.xlane.xlu1 %108  ;;  %v100_v8 = vpop.xlane.xlu0 %99 }
 0x13f   :  { %387 = vrsqrt.f32 %v128_v5  ;;  %v121_v9 = vmul.f32 0.03125, %v109_v7  ;;  %v118_v10 = vmul.f32 0.03125, %v100_v8 }
 0x140   :  { %389 = vrsqrt.f32 %v125_v6 }
 0x141   :  { %v129_v11 = vadd.f32 1e-06, %v121_v9  ;;  %v126_v12 = vadd.f32 1e-06, %v118_v10 }
 0x142   :  { %v112_v13 = vpop.xlane.xlu1 %111  ;;  %v103_v14 = vpop.xlane.xlu0 %102 }
 0x143   :  { %391 = vrsqrt.f32 %v129_v11  ;;  %v122_v15 = vmul.f32 0.03125, %v112_v13  ;;  %v119_v16 = vmul.f32 0.03125, %v103_v14 }
 0x144   :  { %393 = vrsqrt.f32 %v126_v12 }
 0x145   :  { %v386_v17 = vpop.eup %385  ;;  %v130_v18 = vadd.f32 1e-06, %v122_v15  ;;  %v127_v19 = vadd.f32 1e-06, %v119_v16 }
 0x146   :  { %v115_v23 = vpop.xlane.xlu1 %114  ;;  %v140_v24 = vmul.f32 %v386_v17, %v500_v20 }
 0x147   :  { %395 = vrsqrt.f32 %v130_v18  ;;  %v123_v25 = vmul.f32 0.03125, %v115_v23 }
 0x148   :  { %397 = vrsqrt.f32 %v127_v19  ;;  %v154_v27 = vmul.f32 %v329_v22, %v140_v24 }
 0x149   :  { %v388_v30 = vpop.eup %387  ;;  %v131_v31 = vadd.f32 1e-06, %v123_v25 }
 0x14a   :  { %v390_v32 = vpop.eup %389  ;;  %v168_v33 = vadd.f32 %v330_v26, %v154_v27  ;;  %v144_v34 = vmul.f32 %v388_v30, %v508_v28 }
 0x14b   :  { %399 = vrsqrt.f32 %v131_v31  ;;  %v141_v35 = vmul.f32 %v390_v32, %v502_v21 }
 0x14c   :  { %360 = vmatprep.mubr.msk.f32.mxu0 %vm42_vm0, %v168_v33  ;;  %v158_v20 = vmul.f32 %v329_v22, %v144_v34 }
 0x14d   :  { %v392_v36 = vpop.eup %391  ;;  %v155_v37 = vmul.f32 %v329_v22, %v141_v35 }
 0x14e   :  { %v394_v40 = vpop.eup %393  ;;  %v172_v41 = vadd.f32 %v330_v26, %v158_v20  ;;  %v145_v42 = vmul.f32 %v392_v36, %v510_v29 }
 0x14f   :  { %v169_v43 = vadd.f32 %v330_v26, %v155_v37  ;;  %v142_v44 = vmul.f32 %v394_v40, %v518_v38 }
 0x150   :  { %366 = vmatprep.mubr.msk.f32.mxu1 %vm42_vm0, %v172_v41  ;;  %v159_v45 = vmul.f32 %v329_v22, %v145_v42 }
 0x151   :  { %v396_v46 = vpop.eup %395  ;;  %361 = vmatmul.mubr.msk.f32.vlgmr.msra.gmra.mrb[0].mxu0 %vm42_vm0, %v169_v43  ;;  %v156_v28 = vmul.f32 %v329_v22, %v142_v44 }
 0x152   :  { %v398_v21 = vpop.eup %397  ;;  %v173_v47 = vadd.f32 %v330_v26, %v159_v45  ;;  %v146_v50 = vmul.f32 %v396_v46, %v520_v39 }
 0x153   :  { %v170_v51 = vadd.f32 %v330_v26, %v156_v28  ;;  %v143_v52 = vmul.f32 %v398_v21, %v528_v48  ;;  %v331_v48 = vld [vmem:[#allocation2] ss:$0 sm:$0xff] }
 0x154   :  { %367 = vmatmul.mubr.msk.f32.vlgmr.msra.gmra.mrb[0].mxu1 %vm42_vm0, %v173_v47  ;;  %v160_v29 = vmul.f32 %v329_v22, %v146_v50 }
 0x155   :  { %v400_v53 = vpop.eup %399  ;;  %363 = vmatprep.mubr.msk.f32.mxu0 %vm42_vm0, %v170_v51  ;;  %v157_v38 = vmul.f32 %v329_v22, %v143_v52 }
 0x156   :  { %v174_v54 = vadd.f32 %v330_v26, %v160_v29  ;;  %v147_v55 = vmul.f32 %v400_v53, %v530_v49 }
 0x157   :  { %v171_v56 = vadd.f32 %v330_v26, %v157_v38 }
 0x158   :  { %369 = vmatprep.mubr.msk.f32.mxu1 %vm42_vm0, %v174_v54  ;;  %v161_v57 = vmul.f32 %v329_v22, %v147_v55 }
 0x159   :  { %364 = vmatmul.mubr.msk.f32.gmra.mrb[2].mxu0 %vm42_vm0, %v171_v56 }
 0x15a   :  { %v175_v39 = vadd.f32 %v330_v26, %v161_v57 }
 0x15c   :  { %370 = vmatmul.mubr.msk.f32.gmra.mrb[2].mxu1 %vm42_vm0, %v175_v39 }
 0x224   :  { %v362_v58 = vpop.f32.mrb[0].mxu0 }
 0x225   :  { %v283_v59 = vadd.f32 %v362_v58, %v331_v48  ;;  %v277_v60 = vpop.f32.mrb[1].mxu0 }
 0x226   :  { %v278_v61 = vadd.f32 %v331_v48, %v277_v60 }
 0x227   :  { %317 = vst.msk [vmem:[%s611_s5 + $0x8] sm:$0xff] %vm42_vm0, %v283_v59  ;;  %v368_v49 = vpop.f32.mrb[0].mxu1 }
 0x228   :  { %316 = vst.msk [vmem:[%s611_s5] sm:$0xff] %vm42_vm0, %v278_v61  ;;  %v303_v62 = vadd.f32 %v368_v49, %v331_v48  ;;  %v297_v63 = vpop.f32.mrb[1].mxu1 }
 0x229   :  { %v298_v0 = vadd.f32 %v331_v48, %v297_v63 }
 0x22a   :  { %321 = vst.msk [vmem:[%s611_s5 + $0x28] sm:$0xff] %vm42_vm0, %v303_v62 }
 0x22b   :  { %320 = vst.msk [vmem:[%s611_s5 + $0x20] sm:$0xff] %vm42_vm0, %v298_v0 }
 0x22c   :  { %v365_v1 = vpop.f32.mrb[2].mxu0 }
 0x22d   :  { %v293_v2 = vadd.f32 %v365_v1, %v331_v48  ;;  %v287_v3 = vpop.f32.mrb[3].mxu0 }
 0x22e   :  { %v288_v4 = vadd.f32 %v331_v48, %v287_v3 }
 0x22f   :  { %319 = vst.msk [vmem:[%s611_s5 + $0x18] sm:$0xff] %vm42_vm0, %v293_v2  ;;  %v371_v5 = vpop.f32.mrb[2].mxu1 }
 0x230   :  { %318 = vst.msk [vmem:[%s611_s5 + $0x10] sm:$0xff] %vm42_vm0, %v288_v4  ;;  %v313_v6 = vadd.f32 %v371_v5, %v331_v48  ;;  %v307_v7 = vpop.f32.mrb[3].mxu1 }
 0x231   :  { %v308_v8 = vadd.f32 %v331_v48, %v307_v7 }
 0x232   :  { %323 = vst.msk [vmem:[%s611_s5 + $0x38] sm:$0xff] %vm42_vm0, %v313_v6 }
 0x233   :  { %322 = vst.msk [vmem:[%s611_s5 + $0x30] sm:$0xff] %vm42_vm0, %v308_v8 }
 0x234   :  { %328 = vsyncpa [#allocation3], 1 }

// kernel: cross3d_block_forward.5
= control target key start
LH: loop header
LB: loop body
LE: loop exit
PB: predicated region body
PF: predicated region fallthrough
CT: control target
= control target key end

     0   :  { %vm30_vm0 = vcmask 261120   ;;  %vm304_vm1 = vcmask 523264   ;;  %s559_s0 = inlined_call_operand.vmem [shape: f32[64,32], index: 0, kind: input, shape index: {}]   ;;  %s560_s3 = inlined_call_operand.vmem [shape: f32[32,64], index: 3, kind: input, shape index: {}]   ;;  %s561_s1 = inlined_call_operand.vmem [shape: f32[1,32], index: 1, kind: input, shape index: {}]   ;;  %s562_s2 = inlined_call_operand.vmem [shape: f32[1,32], index: 2, kind: input, shape index: {}]   ;;  %s563_s4 = inlined_call_operand.vmem [shape: f32[1,64], index: 4, kind: input, shape index: {}]   ;;  %s564_s5 = inlined_call_operand.vmem [shape: f32[64,64], index: 5, kind: output, shape index: {}]  }
   0x1   :  { %v20_v0 = vld [vmem:[%s559_s0] sm:$0xff]  ;;  %v21_v1 = vld [vmem:[%s559_s0 + $0x8] sm:$0xff]  ;;  %v22_v8 = vld [vmem:[%s559_s0 + $0x10] sm:$0xff] }
   0x2   :  { %v24_v2 = vld [vmem:[%s559_s0 + $0x20] sm:$0xff]  ;;  %v31_v3 = vsel %vm30_vm0, %v20_v0, 0.0  ;;  %v34_v4 = vsel %vm30_vm0, %v21_v1, 0.0  ;;  %v25_v5 = vld [vmem:[%s559_s0 + $0x28] sm:$0xff]  ;;  %v26_v9 = vld [vmem:[%s559_s0 + $0x30] sm:$0xff]  ;;  %v37_v10 = vsel %vm30_vm0, %v22_v8, 0.0 }
   0x3   :  { %32 = vadd.xlane.f32.xlu0 %v31_v3  ;;  %35 = vadd.xlane.f32.xlu1 %v34_v4  ;;  %v43_v6 = vsel %vm30_vm0, %v24_v2, 0.0  ;;  %v46_v7 = vsel %vm30_vm0, %v25_v5, 0.0  ;;  %v49_v11 = vsel %vm30_vm0, %v26_v9, 0.0  ;;  %v23_v12 = vld [vmem:[%s559_s0 + $0x18] sm:$0xff]  ;;  %v164_v56 = vld [vmem:[%s560_s3] sm:$0xff]  ;;  %v165_v57 = vld [vmem:[%s560_s3 + $0x8] sm:$0xff] }
   0x4   :  { %v27_v13 = vld [vmem:[%s559_s0 + $0x38] sm:$0xff]  ;;  %v40_v14 = vsel %vm30_vm0, %v23_v12, 0.0  ;;  %v360_v58 = vpack.c.bf16 %v165_v57, %v164_v56  ;;  %v166_v59 = vld [vmem:[%s560_s3 + $0x10] sm:$0xff] }
   0x5   :  { %v52_v15 = vsel %vm30_vm0, %v27_v13, 0.0  ;;  %v167_v60 = vld [vmem:[%s560_s3 + $0x18] sm:$0xff] }
   0x6   :  { %361 = vmatprep.subr.bf16.mxu0 %v360_v58  ;;  %368 = vmatprep.subr.bf16.mxu1 %v360_v58  ;;  %v364_v61 = vpack.c.bf16 %v167_v60, %v166_v59 }
   0x7   :  { %44 = vadd.xlane.f32.xlu0 %v43_v6  ;;  %47 = vadd.xlane.f32.xlu1 %v46_v7 }
   0x8   :  { %363 = vmatpush3.bf16.msra.mxu0 %v360_v58  ;;  %370 = vmatpush3.bf16.msra.mxu1 %v360_v58 }
   0x9   :  { %365 = vmatprep.subr.bf16.mxu0 %v364_v61  ;;  %369 = vmatprep.subr.bf16.mxu1 %v364_v61 }
   0xb   :  { %38 = vadd.xlane.f32.xlu0 %v37_v10  ;;  %50 = vadd.xlane.f32.xlu1 %v49_v11 }
   0xc   :  { %367 = vmatpush3.bf16.msra.mxu0 %v364_v61  ;;  %371 = vmatpush3.bf16.msra.mxu1 %v364_v61 }
   0xf   :  { %41 = vadd.xlane.f32.xlu0 %v40_v14  ;;  %53 = vadd.xlane.f32.xlu1 %v52_v15 }
  0x90   :  { %v33_v16 = vpop.xlane.xlu0 %32  ;;  %v36_v17 = vpop.xlane.xlu1 %35 }
  0x91   :  { %v56_v18 = vmul.f32 0.03125, %v33_v16  ;;  %v57_v19 = vmul.f32 0.03125, %v36_v17 }
  0x93   :  { %v450_v20 = vsub.f32 %v20_v0, %v56_v18  ;;  %v452_v21 = vsub.f32 %v21_v1, %v57_v19 }
  0x94   :  { %v45_v22 = vpop.xlane.xlu0 %44  ;;  %v48_v23 = vpop.xlane.xlu1 %47 }
  0x95   :  { %v60_v24 = vmul.f32 0.03125, %v45_v22  ;;  %v61_v25 = vmul.f32 0.03125, %v48_v23  ;;  %v72_v26 = vmul.f32 %v450_v20, %v450_v20  ;;  %v73_v27 = vmul.f32 %v452_v21, %v452_v21  ;;  %v317_v22 = vld [vmem:[%s561_s1] ss:$0 sm:$0xff] }
  0x97   :  { %v458_v28 = vsub.f32 %v24_v2, %v60_v24  ;;  %v460_v29 = vsub.f32 %v25_v5, %v61_v25  ;;  %v80_v30 = vsel %vm30_vm0, %v72_v26, 0.0  ;;  %v83_v33 = vsel %vm30_vm0, %v73_v27, 0.0  ;;  %v318_v26 = vld [vmem:[%s562_s2] ss:$0 sm:$0xff] }
  0x98   :  { %81 = vadd.xlane.f32.xlu0 %v80_v30  ;;  %v39_v31 = vpop.xlane.xlu0 %38  ;;  %v51_v32 = vpop.xlane.xlu1 %50 }
  0x99   :  { %v58_v34 = vmul.f32 0.03125, %v39_v31  ;;  %v62_v35 = vmul.f32 0.03125, %v51_v32  ;;  %v76_v36 = vmul.f32 %v458_v28, %v458_v28  ;;  %v77_v37 = vmul.f32 %v460_v29, %v460_v29 }
  0x9b   :  { %v468_v38 = vsub.f32 %v22_v8, %v58_v34  ;;  %v470_v39 = vsub.f32 %v26_v9, %v62_v35  ;;  %v92_v40 = vsel %vm30_vm0, %v76_v36, 0.0  ;;  %v95_v43 = vsel %vm30_vm0, %v77_v37, 0.0 }
  0x9c   :  { %84 = vadd.xlane.f32.xlu0 %v83_v33  ;;  %93 = vadd.xlane.f32.xlu1 %v92_v40  ;;  %v42_v41 = vpop.xlane.xlu0 %41  ;;  %v54_v42 = vpop.xlane.xlu1 %53 }
  0x9d   :  { %v59_v44 = vmul.f32 0.03125, %v42_v41  ;;  %v63_v45 = vmul.f32 0.03125, %v54_v42  ;;  %v74_v46 = vmul.f32 %v468_v38, %v468_v38  ;;  %v78_v47 = vmul.f32 %v470_v39, %v470_v39 }
  0x9f   :  { %v478_v48 = vsub.f32 %v23_v12, %v59_v44  ;;  %v480_v49 = vsub.f32 %v27_v13, %v63_v45  ;;  %v86_v50 = vsel %vm30_vm0, %v74_v46, 0.0  ;;  %v98_v51 = vsel %vm30_vm0, %v78_v47, 0.0 }
  0xa0   :  { %96 = vadd.xlane.f32.xlu1 %v95_v43  ;;  %87 = vadd.xlane.f32.xlu0 %v86_v50 }
  0xa1   :  { %v75_v52 = vmul.f32 %v478_v48, %v478_v48  ;;  %v79_v53 = vmul.f32 %v480_v49, %v480_v49 }
  0xa3   :  { %v89_v54 = vsel %vm30_vm0, %v75_v52, 0.0  ;;  %v101_v55 = vsel %vm30_vm0, %v79_v53, 0.0 }
  0xa4   :  { %99 = vadd.xlane.f32.xlu1 %v98_v51  ;;  %90 = vadd.xlane.f32.xlu0 %v89_v54 }
  0xa8   :  { %102 = vadd.xlane.f32.xlu1 %v101_v55 }
 0x125   :  { %v82_v62 = vpop.xlane.xlu0 %81 }
 0x126   :  { %v104_v63 = vmul.f32 0.03125, %v82_v62 }
 0x128   :  { %v112_v0 = vadd.f32 1e-06, %v104_v63 }
 0x129   :  { %v94_v1 = vpop.xlane.xlu1 %93  ;;  %v85_v2 = vpop.xlane.xlu0 %84 }
 0x12a   :  { %372 = vrsqrt.f32 %v112_v0  ;;  %v108_v3 = vmul.f32 0.03125, %v94_v1  ;;  %v105_v4 = vmul.f32 0.03125, %v85_v2 }
 0x12c   :  { %v116_v5 = vadd.f32 1e-06, %v108_v3  ;;  %v113_v6 = vadd.f32 1e-06, %v105_v4 }
 0x12d   :  { %v97_v7 = vpop.xlane.xlu1 %96  ;;  %v88_v8 = vpop.xlane.xlu0 %87 }
 0x12e   :  { %374 = vrsqrt.f32 %v116_v5  ;;  %v109_v9 = vmul.f32 0.03125, %v97_v7  ;;  %v106_v10 = vmul.f32 0.03125, %v88_v8 }
 0x12f   :  { %376 = vrsqrt.f32 %v113_v6 }
 0x130   :  { %v117_v11 = vadd.f32 1e-06, %v109_v9  ;;  %v114_v12 = vadd.f32 1e-06, %v106_v10 }
 0x131   :  { %v100_v13 = vpop.xlane.xlu1 %99  ;;  %v91_v14 = vpop.xlane.xlu0 %90 }
 0x132   :  { %378 = vrsqrt.f32 %v117_v11  ;;  %v110_v15 = vmul.f32 0.03125, %v100_v13  ;;  %v107_v16 = vmul.f32 0.03125, %v91_v14 }
 0x133   :  { %380 = vrsqrt.f32 %v114_v12 }
 0x134   :  { %v373_v17 = vpop.eup %372  ;;  %v118_v18 = vadd.f32 1e-06, %v110_v15  ;;  %v115_v19 = vadd.f32 1e-06, %v107_v16 }
 0x135   :  { %v103_v23 = vpop.xlane.xlu1 %102  ;;  %v128_v24 = vmul.f32 %v373_v17, %v450_v20 }
 0x136   :  { %382 = vrsqrt.f32 %v118_v18  ;;  %v111_v25 = vmul.f32 0.03125, %v103_v23 }
 0x137   :  { %384 = vrsqrt.f32 %v115_v19  ;;  %v142_v27 = vmul.f32 %v317_v22, %v128_v24 }
 0x138   :  { %v375_v30 = vpop.eup %374  ;;  %v119_v31 = vadd.f32 1e-06, %v111_v25 }
 0x139   :  { %v377_v32 = vpop.eup %376  ;;  %v156_v33 = vadd.f32 %v318_v26, %v142_v27  ;;  %v132_v34 = vmul.f32 %v375_v30, %v458_v28 }
 0x13a   :  { %386 = vrsqrt.f32 %v119_v31  ;;  %v129_v35 = vmul.f32 %v377_v32, %v452_v21 }
 0x13b   :  { %348 = vmatprep.mubr.msk.f32.mxu0 %vm30_vm0, %v156_v33  ;;  %v146_v20 = vmul.f32 %v317_v22, %v132_v34 }
 0x13c   :  { %v379_v36 = vpop.eup %378  ;;  %v143_v37 = vmul.f32 %v317_v22, %v129_v35 }
 0x13d   :  { %v381_v40 = vpop.eup %380  ;;  %v160_v41 = vadd.f32 %v318_v26, %v146_v20  ;;  %v133_v42 = vmul.f32 %v379_v36, %v460_v29 }
 0x13e   :  { %v157_v43 = vadd.f32 %v318_v26, %v143_v37  ;;  %v130_v44 = vmul.f32 %v381_v40, %v468_v38 }
 0x13f   :  { %354 = vmatprep.mubr.msk.f32.mxu1 %vm30_vm0, %v160_v41  ;;  %v147_v45 = vmul.f32 %v317_v22, %v133_v42 }
 0x140   :  { %v383_v46 = vpop.eup %382  ;;  %349 = vmatmul.mubr.msk.f32.vlgmr.msra.gmra.mrb[0].mxu0 %vm30_vm0, %v157_v43  ;;  %v144_v28 = vmul.f32 %v317_v22, %v130_v44 }
 0x141   :  { %v385_v21 = vpop.eup %384  ;;  %v161_v47 = vadd.f32 %v318_v26, %v147_v45  ;;  %v134_v50 = vmul.f32 %v383_v46, %v470_v39 }
 0x142   :  { %v158_v51 = vadd.f32 %v318_v26, %v144_v28  ;;  %v131_v52 = vmul.f32 %v385_v21, %v478_v48  ;;  %v319_v48 = vld [vmem:[%s563_s4] ss:$0 sm:$0xff] }
 0x143   :  { %355 = vmatmul.mubr.msk.f32.vlgmr.msra.gmra.mrb[0].mxu1 %vm30_vm0, %v161_v47  ;;  %v148_v29 = vmul.f32 %v317_v22, %v134_v50 }
 0x144   :  { %v387_v53 = vpop.eup %386  ;;  %351 = vmatprep.mubr.msk.f32.mxu0 %vm30_vm0, %v158_v51  ;;  %v145_v38 = vmul.f32 %v317_v22, %v131_v52 }
 0x145   :  { %v162_v54 = vadd.f32 %v318_v26, %v148_v29  ;;  %v135_v55 = vmul.f32 %v387_v53, %v480_v49 }
 0x146   :  { %v159_v56 = vadd.f32 %v318_v26, %v145_v38 }
 0x147   :  { %357 = vmatprep.mubr.msk.f32.mxu1 %vm30_vm0, %v162_v54  ;;  %v149_v57 = vmul.f32 %v317_v22, %v135_v55 }
 0x148   :  { %352 = vmatmul.mubr.msk.f32.gmra.mrb[2].mxu0 %vm30_vm0, %v159_v56 }
 0x149   :  { %v163_v39 = vadd.f32 %v318_v26, %v149_v57 }
 0x14b   :  { %358 = vmatmul.mubr.msk.f32.gmra.mrb[2].mxu1 %vm30_vm0, %v163_v39 }
 0x213   :  { %v350_v58 = vpop.f32.mrb[0].mxu0 }
 0x214   :  { %v271_v59 = vadd.f32 %v350_v58, %v319_v48  ;;  %v265_v60 = vpop.f32.mrb[1].mxu0 }
 0x215   :  { %v266_v61 = vadd.f32 %v319_v48, %v265_v60 }
 0x216   :  { %306 = vst.msk [vmem:[%s564_s5 + $0x8] sm:$0xff] %vm304_vm1, %v271_v59  ;;  %v356_v49 = vpop.f32.mrb[0].mxu1 }
 0x217   :  { %305 = vst.msk [vmem:[%s564_s5] sm:$0xff] %vm304_vm1, %v266_v61  ;;  %v291_v62 = vadd.f32 %v356_v49, %v319_v48  ;;  %v285_v63 = vpop.f32.mrb[1].mxu1 }
 0x218   :  { %v286_v0 = vadd.f32 %v319_v48, %v285_v63 }
 0x219   :  { %310 = vst.msk [vmem:[%s564_s5 + $0x28] sm:$0xff] %vm304_vm1, %v291_v62 }
 0x21a   :  { %309 = vst.msk [vmem:[%s564_s5 + $0x20] sm:$0xff] %vm304_vm1, %v286_v0 }
 0x21b   :  { %v353_v1 = vpop.f32.mrb[2].mxu0 }
 0x21c   :  { %v281_v2 = vadd.f32 %v353_v1, %v319_v48  ;;  %v275_v3 = vpop.f32.mrb[3].mxu0 }
 0x21d   :  { %v276_v4 = vadd.f32 %v319_v48, %v275_v3 }
 0x21e   :  { %308 = vst.msk [vmem:[%s564_s5 + $0x18] sm:$0xff] %vm304_vm1, %v281_v2  ;;  %v359_v5 = vpop.f32.mrb[2].mxu1 }
 0x21f   :  { %307 = vst.msk [vmem:[%s564_s5 + $0x10] sm:$0xff] %vm304_vm1, %v276_v4  ;;  %v301_v6 = vadd.f32 %v359_v5, %v319_v48  ;;  %v295_v7 = vpop.f32.mrb[3].mxu1 }
 0x220   :  { %v296_v8 = vadd.f32 %v319_v48, %v295_v7 }
 0x221   :  { %312 = vst.msk [vmem:[%s564_s5 + $0x38] sm:$0xff] %vm304_vm1, %v301_v6 }
 0x222   :  { %311 = vst.msk [vmem:[%s564_s5 + $0x30] sm:$0xff] %vm304_vm1, %v296_v8 }

// kernel: cross3d_block_forward.7
= control target key start
LH: loop header
LB: loop body
LE: loop exit
PB: predicated region body
PF: predicated region fallthrough
CT: control target
= control target key end

     0   :  { %vm37_vm0 = vcmask 261120   ;;  %s1321_s0 = inlined_call_operand.vmem [shape: f32[64,32], index: 0, kind: input, shape index: {}]   ;;  %s1322_s1 = inlined_call_operand.vmem [shape: f32[1,32], index: 1, kind: input, shape index: {}]   ;;  %s1323_s2 = inlined_call_operand.vmem [shape: f32[1,32], index: 2, kind: input, shape index: {}]   ;;  %s1324_s3 = inlined_call_operand.vmem [shape: f32[32,128], index: 3, kind: input, shape index: {}]   ;;  %s1325_s4 = inlined_call_operand.vmem [shape: f32[1,128], index: 4, kind: input, shape index: {}]   ;;  %s1326_s5 = inlined_call_operand.vmem [shape: f32[128,32], index: 5, kind: input, shape index: {}]   ;;  %s1327_s6 = inlined_call_operand.vmem [shape: f32[1,32], index: 6, kind: input, shape index: {}]   ;;  %s1328_s7 = inlined_call_operand.hbm [shape: f32[64,32], index: 7, kind: output, shape index: {}]  }
   0x1   :  { %v976_v0 = vld [vmem:[%s1321_s0] sm:$0xff]  ;;  %v981_v1 = vld [vmem:[%s1321_s0 + $0x10] sm:$0xff]  ;;  %v986_v2 = vld [vmem:[%s1321_s0 + $0x8] sm:$0xff] }
   0x2   :  { %v38_v3 = vsel %vm37_vm0, %v976_v0, 0.0  ;;  %v44_v4 = vsel %vm37_vm0, %v981_v1, 0.0  ;;  %v995_v5 = vld [vmem:[%s1321_s0 + $0x18] sm:$0xff]  ;;  %v41_v6 = vsel %vm37_vm0, %v986_v2, 0.0 }
   0x3   :  { %39 = vadd.xlane.f32.xlu0 %v38_v3  ;;  %45 = vadd.xlane.f32.xlu1 %v44_v4  ;;  %v47_v7 = vsel %vm37_vm0, %v995_v5, 0.0 }
   0x4   :  { %12 = vsyncpa [#allocation3], 0  ;;  %v1004_v8 = vld [vmem:[%s1321_s0 + $0x20] sm:$0xff]  ;;  %v1009_v9 = vld [vmem:[%s1321_s0 + $0x28] sm:$0xff] }
   0x5   :  { %v50_v10 = vsel %vm37_vm0, %v1004_v8, 0.0  ;;  %v53_v11 = vsel %vm37_vm0, %v1009_v9, 0.0  ;;  %v1018_v12 = vld [vmem:[%s1321_s0 + $0x30] sm:$0xff]  ;;  %v1023_v13 = vld [vmem:[%s1321_s0 + $0x38] sm:$0xff]  ;;  %v171_v56 = vld [vmem:[%s1324_s3] sm:$0xff] }
   0x6   :  { %v56_v14 = vsel %vm37_vm0, %v1018_v12, 0.0  ;;  %v59_v15 = vsel %vm37_vm0, %v1023_v13, 0.0  ;;  %v172_v57 = vld [vmem:[%s1324_s3 + $0x8] sm:$0xff]  ;;  %v173_v59 = vld [vmem:[%s1324_s3 + $0x10] sm:$0xff]  ;;  %v174_v60 = vld [vmem:[%s1324_s3 + $0x18] sm:$0xff] }
   0x7   :  { %42 = vadd.xlane.f32.xlu0 %v41_v6  ;;  %48 = vadd.xlane.f32.xlu1 %v47_v7  ;;  %v799_v58 = vpack.c.bf16 %v172_v57, %v171_v56  ;;  %v803_v61 = vpack.c.bf16 %v174_v60, %v173_v59 }
   0x9   :  { %800 = vmatprep.subr.bf16.mxu0 %v799_v58 }
   0xa   :  { %802 = vmatpush3.bf16.msra.mxu0 %v799_v58 }
   0xb   :  { %51 = vadd.xlane.f32.xlu0 %v50_v10  ;;  %54 = vadd.xlane.f32.xlu1 %v53_v11 }
   0xc   :  { %804 = vmatprep.subr.bf16.mxu0 %v803_v61 }
   0xe   :  { %806 = vmatpush3.bf16.msra.mxu0 %v803_v61 }
   0xf   :  { %57 = vadd.xlane.f32.xlu0 %v56_v14  ;;  %60 = vadd.xlane.f32.xlu1 %v59_v15 }
  0x90   :  { %v40_v16 = vpop.xlane.xlu0 %39  ;;  %v46_v17 = vpop.xlane.xlu1 %45 }
  0x91   :  { %v63_v18 = vmul.f32 0.03125, %v40_v16  ;;  %v65_v19 = vmul.f32 0.03125, %v46_v17 }
  0x93   :  { %v1030_v20 = vsub.f32 %v976_v0, %v63_v18  ;;  %v1033_v21 = vsub.f32 %v981_v1, %v65_v19 }
  0x94   :  { %v43_v22 = vpop.xlane.xlu0 %42  ;;  %v49_v23 = vpop.xlane.xlu1 %48 }
  0x95   :  { %v64_v24 = vmul.f32 0.03125, %v43_v22  ;;  %v66_v25 = vmul.f32 0.03125, %v49_v23  ;;  %v79_v26 = vmul.f32 %v1030_v20, %v1030_v20  ;;  %v81_v27 = vmul.f32 %v1033_v21, %v1033_v21 }
  0x97   :  { %v1040_v28 = vsub.f32 %v986_v2, %v64_v24  ;;  %v1043_v29 = vsub.f32 %v995_v5, %v66_v25  ;;  %v87_v30 = vsel %vm37_vm0, %v79_v26, 0.0  ;;  %v93_v33 = vsel %vm37_vm0, %v81_v27, 0.0 }
  0x98   :  { %88 = vadd.xlane.f32.xlu0 %v87_v30  ;;  %v52_v31 = vpop.xlane.xlu0 %51  ;;  %v55_v32 = vpop.xlane.xlu1 %54 }
  0x99   :  { %v67_v34 = vmul.f32 0.03125, %v52_v31  ;;  %v68_v35 = vmul.f32 0.03125, %v55_v32  ;;  %v80_v36 = vmul.f32 %v1040_v28, %v1040_v28  ;;  %v82_v37 = vmul.f32 %v1043_v29, %v1043_v29  ;;  %v687_v32 = vld [vmem:[%s1322_s1] ss:$0 sm:$0xff] }
  0x9b   :  { %v1052_v38 = vsub.f32 %v1004_v8, %v67_v34  ;;  %v1055_v39 = vsub.f32 %v1009_v9, %v68_v35  ;;  %v90_v40 = vsel %vm37_vm0, %v80_v36, 0.0  ;;  %v96_v43 = vsel %vm37_vm0, %v82_v37, 0.0  ;;  %v688_v36 = vld [vmem:[%s1323_s2] ss:$0 sm:$0xff] }
  0x9c   :  { %94 = vadd.xlane.f32.xlu0 %v93_v33  ;;  %91 = vadd.xlane.f32.xlu1 %v90_v40  ;;  %v58_v41 = vpop.xlane.xlu0 %57  ;;  %v61_v42 = vpop.xlane.xlu1 %60 }
  0x9d   :  { %v69_v44 = vmul.f32 0.03125, %v58_v41  ;;  %v70_v45 = vmul.f32 0.03125, %v61_v42  ;;  %v83_v46 = vmul.f32 %v1052_v38, %v1052_v38  ;;  %v84_v47 = vmul.f32 %v1055_v39, %v1055_v39 }
  0x9f   :  { %v1064_v48 = vsub.f32 %v1018_v12, %v69_v44  ;;  %v1067_v49 = vsub.f32 %v1023_v13, %v70_v45  ;;  %v99_v50 = vsel %vm37_vm0, %v83_v46, 0.0  ;;  %v102_v51 = vsel %vm37_vm0, %v84_v47, 0.0 }
  0xa0   :  { %97 = vadd.xlane.f32.xlu1 %v96_v43  ;;  %100 = vadd.xlane.f32.xlu0 %v99_v50 }
  0xa1   :  { %v85_v52 = vmul.f32 %v1064_v48, %v1064_v48  ;;  %v86_v53 = vmul.f32 %v1067_v49, %v1067_v49 }
  0xa3   :  { %v105_v54 = vsel %vm37_vm0, %v85_v52, 0.0  ;;  %v108_v55 = vsel %vm37_vm0, %v86_v53, 0.0 }
  0xa4   :  { %103 = vadd.xlane.f32.xlu1 %v102_v51  ;;  %106 = vadd.xlane.f32.xlu0 %v105_v54 }
  0xa8   :  { %109 = vadd.xlane.f32.xlu1 %v108_v55 }
 0x125   :  { %v89_v62 = vpop.xlane.xlu0 %88 }
 0x126   :  { %v111_v63 = vmul.f32 0.03125, %v89_v62 }
 0x128   :  { %v119_v3 = vadd.f32 1e-06, %v111_v63 }
 0x129   :  { %v92_v4 = vpop.xlane.xlu1 %91  ;;  %v95_v6 = vpop.xlane.xlu0 %94 }
 0x12a   :  { %858 = vrsqrt.f32 %v119_v3  ;;  %v112_v7 = vmul.f32 0.03125, %v92_v4  ;;  %v113_v10 = vmul.f32 0.03125, %v95_v6  ;;  %v528_v6 = vld [vmem:[%s1326_s5 + $0x8] sm:$0xff] }
 0x12c   :  { %v120_v11 = vadd.f32 1e-06, %v112_v7  ;;  %v121_v14 = vadd.f32 1e-06, %v113_v10  ;;  %v530_v10 = vld [vmem:[%s1326_s5 + $0x18] sm:$0xff] }
 0x12d   :  { %v98_v15 = vpop.xlane.xlu1 %97  ;;  %v101_v16 = vpop.xlane.xlu0 %100 }
 0x12e   :  { %860 = vrsqrt.f32 %v120_v11  ;;  %v114_v17 = vmul.f32 0.03125, %v98_v15  ;;  %v115_v18 = vmul.f32 0.03125, %v101_v16  ;;  %v532_v15 = vld [vmem:[%s1326_s5 + $0x28] sm:$0xff] }
 0x12f   :  { %862 = vrsqrt.f32 %v121_v14  ;;  %v531_v14 = vld [vmem:[%s1326_s5 + $0x20] sm:$0xff] }
 0x130   :  { %v122_v19 = vadd.f32 1e-06, %v114_v17  ;;  %v123_v22 = vadd.f32 1e-06, %v115_v18  ;;  %v815_v16 = vpack.c.bf16 %v532_v15, %v531_v14  ;;  %v533_v17 = vld [vmem:[%s1326_s5 + $0x30] sm:$0xff]  ;;  %v534_v18 = vld [vmem:[%s1326_s5 + $0x38] sm:$0xff] }
 0x131   :  { %v104_v23 = vpop.xlane.xlu1 %103  ;;  %v107_v24 = vpop.xlane.xlu0 %106 }
 0x132   :  { %864 = vrsqrt.f32 %v122_v19  ;;  %v116_v25 = vmul.f32 0.03125, %v104_v23  ;;  %v117_v26 = vmul.f32 0.03125, %v107_v24  ;;  %v819_v19 = vpack.c.bf16 %v534_v18, %v533_v17  ;;  %v536_v23 = vld [vmem:[%s1326_s5 + $0x48] sm:$0xff] }
 0x133   :  { %866 = vrsqrt.f32 %v123_v22  ;;  %v535_v22 = vld [vmem:[%s1326_s5 + $0x40] sm:$0xff] }
 0x134   :  { %v859_v27 = vpop.eup %858  ;;  %v124_v30 = vadd.f32 1e-06, %v116_v25  ;;  %v125_v31 = vadd.f32 1e-06, %v117_v26  ;;  %v823_v24 = vpack.c.bf16 %v536_v23, %v535_v22  ;;  %v537_v25 = vld [vmem:[%s1326_s5 + $0x50] sm:$0xff]  ;;  %v538_v26 = vld [vmem:[%s1326_s5 + $0x58] sm:$0xff] }
 0x135   :  { %v110_v33 = vpop.xlane.xlu1 %109  ;;  %v135_v34 = vmul.f32 %v859_v27, %v1030_v20  ;;  %v827_v27 = vpack.c.bf16 %v538_v26, %v537_v25 }
 0x136   :  { %868 = vrsqrt.f32 %v124_v30  ;;  %v118_v35 = vmul.f32 0.03125, %v110_v33  ;;  %v539_v30 = vld [vmem:[%s1326_s5 + $0x60] sm:$0xff]  ;;  %v541_v33 = vld [vmem:[%s1326_s5 + $0x70] sm:$0xff] }
 0x137   :  { %870 = vrsqrt.f32 %v125_v31  ;;  %v149_v37 = vmul.f32 %v687_v32, %v135_v34  ;;  %v540_v31 = vld [vmem:[%s1326_s5 + $0x68] sm:$0xff]  ;;  %v542_v34 = vld [vmem:[%s1326_s5 + $0x78] sm:$0xff] }
 0x138   :  { %v861_v40 = vpop.eup %860  ;;  %v126_v41 = vadd.f32 1e-06, %v118_v35  ;;  %v835_v35 = vpack.c.bf16 %v542_v34, %v541_v33 }
 0x139   :  { %v863_v42 = vpop.eup %862  ;;  %v163_v43 = vadd.f32 %v688_v36, %v149_v37  ;;  %v136_v44 = vmul.f32 %v861_v40, %v1040_v28 }
 0x13a   :  { %872 = vrsqrt.f32 %v126_v41  ;;  %v137_v45 = vmul.f32 %v863_v42, %v1033_v21 }
 0x13b   :  { %743 = vmatprep.mubr.msk.f32.mxu0 %vm37_vm0, %v163_v43  ;;  %v150_v20 = vmul.f32 %v687_v32, %v136_v44 }
 0x13c   :  { %v865_v46 = vpop.eup %864  ;;  %v151_v47 = vmul.f32 %v687_v32, %v137_v45 }
 0x13d   :  { %v867_v50 = vpop.eup %866  ;;  %v164_v51 = vadd.f32 %v688_v36, %v150_v20  ;;  %v138_v52 = vmul.f32 %v865_v46, %v1043_v29 }
 0x13e   :  { %v165_v53 = vadd.f32 %v688_v36, %v151_v47  ;;  %v139_v54 = vmul.f32 %v867_v50, %v1052_v38 }
 0x13f   :  { %744 = vmatmul.mubr.msk.f32.vlgmr.msra.gmra.mrb[0].mxu0 %vm37_vm0, %v164_v51  ;;  %v152_v55 = vmul.f32 %v687_v32, %v138_v52 }
 0x140   :  { %v869_v56 = vpop.eup %868  ;;  %746 = vmatprep.mubr.msk.f32.mxu0 %vm37_vm0, %v165_v53  ;;  %v153_v28 = vmul.f32 %v687_v32, %v139_v54 }
 0x141   :  { %v871_v21 = vpop.eup %870  ;;  %v166_v57 = vadd.f32 %v688_v36, %v152_v55  ;;  %v140_v58 = vmul.f32 %v869_v56, %v1055_v39 }
 0x142   :  { %v167_v59 = vadd.f32 %v688_v36, %v153_v28  ;;  %v141_v60 = vmul.f32 %v871_v21, %v1064_v48  ;;  %v527_v48 = vld [vmem:[%s1326_s5] sm:$0xff] }
 0x143   :  { %747 = vmatmul.mubr.msk.f32.gmra.mrb[2].mxu0 %vm37_vm0, %v166_v57  ;;  %v154_v29 = vmul.f32 %v687_v32, %v140_v58  ;;  %v807_v7 = vpack.c.bf16 %v528_v6, %v527_v48 }
 0x144   :  { %v873_v61 = vpop.eup %872  ;;  %749 = vmatprep.mubr.msk.f32.mxu0 %vm37_vm0, %v167_v59  ;;  %v155_v38 = vmul.f32 %v687_v32, %v141_v60 }
 0x145   :  { %v168_v62 = vadd.f32 %v688_v36, %v154_v29  ;;  %v142_v63 = vmul.f32 %v873_v61, %v1067_v49  ;;  %808 = vmatprep.subr.bf16.mxu0 %v807_v7  ;;  %839 = vmatprep.subr.bf16.mxu1 %v807_v7  ;;  %v529_v49 = vld [vmem:[%s1326_s5 + $0x10] sm:$0xff] }
 0x146   :  { %v169_v3 = vadd.f32 %v688_v36, %v155_v38  ;;  %810 = vmatpush3.bf16.msra.mxu0 %v807_v7  ;;  %847 = vmatpush3.bf16.msra.mxu1 %v807_v7  ;;  %v811_v11 = vpack.c.bf16 %v530_v10, %v529_v49 }
 0x147   :  { %750 = vmatmul.mubr.msk.f32.gmra.mrb[4].mxu0 %vm37_vm0, %v168_v62  ;;  %v156_v4 = vmul.f32 %v687_v32, %v142_v63  ;;  %v831_v32 = vpack.c.bf16 %v540_v31, %v539_v30 }
 0x148   :  { %752 = vmatprep.mubr.msk.f32.mxu0 %vm37_vm0, %v169_v3  ;;  %812 = vmatprep.subr.bf16.mxu0 %v811_v11 }
 0x149   :  { %v170_v39 = vadd.f32 %v688_v36, %v156_v4  ;;  %840 = vmatprep.subr.bf16.mxu1 %v811_v11  ;;  %v689_v36 = vld [vmem:[%s1325_s4] ss:$0 sm:$0xff] }
 0x14a   :  { %814 = vmatpush3.bf16.msra.mxu0 %v811_v11  ;;  %848 = vmatpush3.bf16.msra.mxu1 %v811_v11 }
 0x14b   :  { %753 = vmatmul.mubr.msk.f32.gmra.mrb[6].mxu0 %vm37_vm0, %v170_v39  ;;  %816 = vmatprep.subr.bf16.mxu0 %v815_v16 }
 0x14c   :  { %841 = vmatprep.subr.bf16.mxu1 %v815_v16 }
 0x14e   :  { %818 = vmatpush3.bf16.msra.mxu0 %v815_v16  ;;  %849 = vmatpush3.bf16.msra.mxu1 %v815_v16 }
 0x14f   :  { %820 = vmatprep.subr.bf16.mxu0 %v819_v19  ;;  %842 = vmatprep.subr.bf16.mxu1 %v819_v19 }
 0x152   :  { %822 = vmatpush3.bf16.msra.mxu0 %v819_v19  ;;  %850 = vmatpush3.bf16.msra.mxu1 %v819_v19 }
 0x153   :  { %824 = vmatprep.subr.bf16.mxu0 %v823_v24  ;;  %843 = vmatprep.subr.bf16.mxu1 %v823_v24 }
 0x156   :  { %826 = vmatpush3.bf16.msra.mxu0 %v823_v24  ;;  %851 = vmatpush3.bf16.msra.mxu1 %v823_v24 }
 0x157   :  { %828 = vmatprep.subr.bf16.mxu0 %v827_v27  ;;  %844 = vmatprep.subr.bf16.mxu1 %v827_v27 }
 0x15a   :  { %830 = vmatpush3.bf16.msra.mxu0 %v827_v27  ;;  %852 = vmatpush3.bf16.msra.mxu1 %v827_v27 }
 0x15b   :  { %832 = vmatprep.subr.bf16.mxu0 %v831_v32  ;;  %845 = vmatprep.subr.bf16.mxu1 %v831_v32 }
 0x15e   :  { %834 = vmatpush3.bf16.msra.mxu0 %v831_v32  ;;  %853 = vmatpush3.bf16.msra.mxu1 %v831_v32 }
 0x15f   :  { %836 = vmatprep.subr.bf16.mxu0 %v835_v35  ;;  %846 = vmatprep.subr.bf16.mxu1 %v835_v35 }
 0x162   :  { %838 = vmatpush3.bf16.msra.mxu0 %v835_v35  ;;  %854 = vmatpush3.bf16.msra.mxu1 %v835_v35 }
 0x212   :  { %v745_v37 = vpop.f32.mrb[0].mxu0 }
 0x213   :  { %v278_v40 = vadd.f32 %v745_v37, %v689_v36  ;;  %v272_v41 = vpop.f32.mrb[1].mxu0 }
 0x214   :  { %v273_v42 = vadd.f32 %v689_v36, %v272_v41 }
 0x215   :  { %v1162_v43 = vmul.f32 0.70710677, %v278_v40  ;;  %v1190_v11 = vmul.f32 0.5, %v278_v40 }
 0x216   :  { %v1164_v44 = vmul.f32 0.70710677, %v273_v42  ;;  %v748_v45 = vpop.f32.mrb[2].mxu0  ;;  %v1195_v16 = vmul.f32 0.5, %v273_v42 }
 0x217   :  { %v328_v20 = vand.u32 2147483647, %v1162_v43  ;;  %v288_v46 = vadd.f32 %v748_v45, %v689_v36  ;;  %v282_v47 = vpop.f32.mrb[3].mxu0  ;;  %vm488_vm1 = vcmp.lt.f32.partialorder %v1162_v43, 0.0 }
 0x218   :  { %v327_v50 = vand.u32 2147483647, %v1164_v44  ;;  %v1168_v51 = vadd.f32 %v689_v36, %v282_v47  ;;  %vm487_vm2 = vcmp.lt.f32.partialorder %v1164_v44, 0.0 }
 0x219   :  { %v336_v52 = vmul.f32 0.3275911, %v328_v20  ;;  %v1170_v53 = vmul.f32 0.70710677, %v288_v46  ;;  %v440_v6 = vsub.f32 0.0, %v328_v20  ;;  %v1207_v34 = vmul.f32 0.5, %v288_v46 }
 0x21a   :  { %v335_v54 = vmul.f32 0.3275911, %v327_v50  ;;  %v1173_v55 = vmul.f32 0.70710677, %v1168_v51  ;;  %v751_v56 = vpop.f32.mrb[4].mxu0  ;;  %v439_v49 = vsub.f32 0.0, %v327_v50 }
 0x21b   :  { %v344_v28 = vadd.f32 1.0, %v336_v52  ;;  %v330_v21 = vand.u32 2147483647, %v1170_v53  ;;  %v292_v57 = vpop.f32.mrb[5].mxu0  ;;  %v1177_v60 = vadd.f32 %v751_v56, %v689_v36  ;;  %v448_v22 = vmul.f32 %v440_v6, %v328_v20 }
 0x21c   :  { %v343_v58 = vadd.f32 1.0, %v335_v54  ;;  %v329_v59 = vand.u32 2147483647, %v1173_v55  ;;  %v1182_v39 = vadd.f32 %v689_v36, %v292_v57  ;;  %v447_v27 = vmul.f32 %v439_v49, %v327_v50 }
 0x21d   :  { %874 = vrcp.f32 %v344_v28  ;;  %v338_v29 = vmul.f32 0.3275911, %v330_v21  ;;  %v1180_v4 = vmul.f32 0.70710677, %v1177_v60  ;;  %v442_v17 = vsub.f32 0.0, %v330_v21 }
 0x21e   :  { %v337_v61 = vmul.f32 0.3275911, %v329_v59  ;;  %v754_v38 = vpop.f32.mrb[6].mxu0  ;;  %876 = vrcp.f32 %v343_v58  ;;  %v1188_v10 = vmul.f32 0.70710677, %v1182_v39  ;;  %v441_v23 = vsub.f32 0.0, %v329_v59 }
 0x21f   :  { %v346_v62 = vadd.f32 1.0, %v338_v29  ;;  %v302_v63 = vpop.f32.mrb[7].mxu0  ;;  %v1184_v48 = vadd.f32 %v754_v38, %v689_v36  ;;  %v332_v7 = vand.u32 2147483647, %v1180_v4  ;;  %v450_v37 = vmul.f32 %v442_v17, %v330_v21 }
 0x220   :  { %v345_v3 = vadd.f32 1.0, %v337_v61  ;;  %v331_v18 = vand.u32 2147483647, %v1188_v10  ;;  %v1198_v19 = vadd.f32 %v689_v36, %v302_v63  ;;  %v457_v20 = vmul.f32 1.442695, %v448_v22 }
 0x221   :  { %878 = vrcp.f32 %v346_v62  ;;  %v340_v14 = vmul.f32 0.3275911, %v332_v7  ;;  %v1193_v15 = vmul.f32 0.70710677, %v1184_v48  ;;  %v444_v30 = vsub.f32 0.0, %v332_v7 }
 0x222   :  { %880 = vrcp.f32 %v345_v3  ;;  %v339_v31 = vmul.f32 0.3275911, %v331_v18  ;;  %v1204_v32 = vmul.f32 0.70710677, %v1198_v19  ;;  %v443_v41 = vsub.f32 0.0, %v331_v18 }
 0x223   :  { %v348_v24 = vadd.f32 1.0, %v340_v14  ;;  %v334_v25 = vand.u32 2147483647, %v1193_v15  ;;  %v449_v47 = vmul.f32 %v441_v23, %v329_v59  ;;  %v455_v54 = vmul.f32 1.442695, %v447_v27 }
 0x224   :  { %v347_v40 = vadd.f32 1.0, %v339_v31  ;;  %v333_v42 = vand.u32 2147483647, %v1204_v32  ;;  %v452_v56 = vmul.f32 %v444_v30, %v332_v7  ;;  %v461_v29 = vmul.f32 1.442695, %v450_v37 }
 0x225   :  { %882 = vrcp.f32 %v348_v24  ;;  %v342_v35 = vmul.f32 0.3275911, %v334_v25  ;;  %v446_v21 = vsub.f32 0.0, %v334_v25  ;;  %v451_v61 = vmul.f32 %v443_v41, %v331_v18 }
 0x226   :  { %884 = vrcp.f32 %v347_v40  ;;  %v341_v46 = vmul.f32 0.3275911, %v333_v42  ;;  %v459_v63 = vmul.f32 1.442695, %v449_v47  ;;  %v465_v6 = vmul.f32 1.442695, %v452_v56 }
 0x227   :  { %v1201_v26 = vpop.eup %874  ;;  %v350_v50 = vadd.f32 1.0, %v342_v35  ;;  %v454_v17 = vmul.f32 %v446_v21, %v334_v25  ;;  %v463_v18 = vmul.f32 1.442695, %v451_v61  ;;  %v445_v31 = vsub.f32 0.0, %v333_v42 }
 0x228   :  { %v368_v33 = vmul.f32 1.0614054, %v1201_v26  ;;  %v1209_v36 = vpop.eup %876  ;;  %v349_v38 = vadd.f32 1.0, %v341_v46  ;;  %v1226_v35 = vmul.f32 0.5, %v1168_v51  ;;  %vm489_vm3 = vcmp.lt.f32.partialorder %v1173_v55, 0.0 }
 0x229   :  { %886 = vrcp.f32 %v350_v50  ;;  %v367_v58 = vmul.f32 1.0614054, %v1209_v36  ;;  %vm490_vm4 = vcmp.lt.f32.partialorder %v1170_v53, 0.0  ;;  %vm492_vm5 = vcmp.lt.f32.partialorder %v1180_v4, 0.0 }
 0x22a   :  { %v376_v45 = vadd.f32 -1.4531521, %v368_v33  ;;  %888 = vpow2.f32 %v457_v20  ;;  %vm491_vm6 = vcmp.lt.f32.partialorder %v1188_v10, 0.0  ;;  %v315_v4 = vmul.f32 0.5, %v1182_v39 }
 0x22b   :  { %v1212_v52 = vpop.eup %878  ;;  %v375_v3 = vadd.f32 -1.4531521, %v367_v58  ;;  %890 = vpow2.f32 %v455_v54  ;;  %vm494_vm7 = vcmp.lt.f32.partialorder %v1193_v15, 0.0  ;;  %vm493_vm8 = vcmp.lt.f32.partialorder %v1204_v32, 0.0  ;;  %v698_v15 = vld [vmem:[%s1327_s6] ss:$0 sm:$0xff] }
 0x22c   :  { %v1214_v28 = vpop.eup %880  ;;  %v384_v57 = vmul.f32 %v1201_v26, %v376_v45  ;;  %v370_v49 = vmul.f32 1.0614054, %v1212_v52  ;;  %892 = vrcp.f32 %v349_v38  ;;  %v469_v45 = vmul.f32 1.442695, %v454_v17  ;;  %s930_s6 = smov [#allocation2]  }
 0x22d   :  { %v369_v59 = vmul.f32 1.0614054, %v1214_v28  ;;  %v383_v22 = vmul.f32 %v1209_v36, %v375_v3  ;;  %894 = vpow2.f32 %v461_v29  ;;  %s676_s9 = sshll.u32 %s930_s6, 4  ;;  %s677_s9 = int_to_ptr.vmem [resolvable:$true] %s676_s9 }
 0x22e   :  { %v392_v62 = vadd.f32 1.4214138, %v384_v57  ;;  %v378_v24 = vadd.f32 -1.4531521, %v370_v49  ;;  %896 = vpow2.f32 %v459_v63  ;;  %v453_v57 = vmul.f32 %v445_v31, %v333_v42  ;;  %s906_s10 = scalar_lea.vmem %s677_s9, 1024  ;;  %p911_p1 = scmp.lt.s32.totalorder %s677_s9, %s677_s9 }
 0x22f   :  { %v377_v7 = vadd.f32 -1.4531521, %v369_v59  ;;  %v1223_v27 = vpop.eup %882  ;;  %v391_v33 = vadd.f32 1.4214138, %v383_v22  ;;  %898 = vpow2.f32 %v465_v6  ;;  %p907_p0 = scmp.ne.s32.totalorder %s677_s9, %s906_s10  ;;  %p912_p2 = scmp.lt.s32.totalorder %s906_s10, %s906_s10 }
 0x230   :  { %v400_v14 = vmul.f32 %v1201_v26, %v392_v62  ;;  %v386_v25 = vmul.f32 %v1212_v52, %v378_v24  ;;  %v372_v40 = vmul.f32 1.0614054, %v1223_v27  ;;  %v1232_v47 = vpop.eup %884  ;;  %900 = vpow2.f32 %v463_v18 }
 0x231   :  { %v385_v23 = vmul.f32 %v1214_v28, %v377_v7  ;;  %v399_v20 = vmul.f32 %v1209_v36, %v391_v33  ;;  %v371_v58 = vmul.f32 1.0614054, %v1232_v47  ;;  %902 = vpow2.f32 %v469_v45  ;;  %p913_p3 = por %p912_p2, %p911_p1 }
 0x232   :  { %v408_v30 = vadd.f32 -0.28449672, %v400_v14  ;;  %v394_v54 = vadd.f32 1.4214138, %v386_v25  ;;  %v380_v56 = vadd.f32 -1.4531521, %v372_v40 }
 0x233   :  { %v393_v37 = vadd.f32 1.4214138, %v385_v23  ;;  %v1235_v51 = vpop.eup %886  ;;  %v407_v21 = vadd.f32 -0.28449672, %v399_v20  ;;  %v379_v6 = vadd.f32 -1.4531521, %v371_v58  ;;  %p914_p4 = pnand %p913_p3, %p907_p0 }
 0x234   :  { %v416_v41 = vmul.f32 %v1201_v26, %v408_v30  ;;  %v402_v61 = vmul.f32 %v1212_v52, %v394_v54  ;;  %v388_v38 = vmul.f32 %v1223_v27, %v380_v56  ;;  %v374_v59 = vmul.f32 1.0614054, %v1235_v51  ;;  %v889_v62 = vpop.eup %888 }
 0x235   :  { %v401_v50 = vmul.f32 %v1214_v28, %v393_v37  ;;  %v415_v3 = vmul.f32 %v1209_v36, %v407_v21  ;;  %v891_v42 = vpop.eup %890  ;;  %v467_v23 = vmul.f32 1.442695, %v453_v57  ;;  %v387_v30 = vmul.f32 %v1232_v47, %v379_v6 }
 0x236   :  { %v424_v46 = vadd.f32 0.2548296, %v416_v41  ;;  %v410_v49 = vadd.f32 -0.28449672, %v402_v61  ;;  %v396_v14 = vadd.f32 1.4214138, %v388_v38  ;;  %v1245_v22 = vpop.eup %892 }
 0x237   :  { %v409_v29 = vadd.f32 -0.28449672, %v401_v50  ;;  %v382_v17 = vadd.f32 -1.4531521, %v374_v59  ;;  %v423_v24 = vadd.f32 0.2548296, %v415_v3  ;;  %v895_v31 = vpop.eup %894  ;;  %904 = vpow2.f32 %v467_v23 }
 0x238   :  { %v432_v63 = vmul.f32 %v1201_v26, %v424_v46  ;;  %v418_v33 = vmul.f32 %v1212_v52, %v410_v49  ;;  %v404_v37 = vmul.f32 %v1223_v27, %v396_v14  ;;  %v373_v25 = vmul.f32 1.0614054, %v1245_v22  ;;  %v897_v40 = vpop.eup %896 }
 0x239   :  { %v417_v7 = vmul.f32 %v1214_v28, %v409_v29  ;;  %v431_v45 = vmul.f32 %v1209_v36, %v423_v24  ;;  %v395_v20 = vadd.f32 1.4214138, %v387_v30  ;;  %v390_v50 = vmul.f32 %v1235_v51, %v382_v17  ;;  %v899_v21 = vpop.eup %898 }
 0x23a   :  { %v472_v18 = vmul.f32 %v889_v62, %v432_v63  ;;  %v426_v56 = vadd.f32 0.2548296, %v418_v33  ;;  %v412_v46 = vadd.f32 -0.28449672, %v404_v37  ;;  %v381_v57 = vadd.f32 -1.4531521, %v373_v25  ;;  %v901_v59 = vpop.eup %900 }
 0x23b   :  { %v425_v26 = vadd.f32 0.2548296, %v417_v7  ;;  %v471_v29 = vmul.f32 %v891_v42, %v431_v45  ;;  %v403_v61 = vmul.f32 %v1232_v47, %v395_v20  ;;  %v398_v38 = vadd.f32 1.4214138, %v390_v50 }
 0x23c   :  { %v480_v41 = vsub.f32 1.0, %v472_v18  ;;  %v434_v62 = vmul.f32 %v1212_v52, %v426_v56  ;;  %v420_v63 = vmul.f32 %v1223_v27, %v412_v46  ;;  %v389_v3 = vmul.f32 %v1245_v22, %v381_v57  ;;  %v903_v18 = vpop.eup %902 }
 0x23d   :  { %v433_v54 = vmul.f32 %v1214_v28, %v425_v26  ;;  %v479_v6 = vsub.f32 1.0, %v471_v29  ;;  %v411_v7 = vadd.f32 -0.28449672, %v403_v61  ;;  %v406_v49 = vmul.f32 %v1235_v51, %v398_v38 }
 0x23e   :  { %v496_v58 = vsub.f32 0.0, %v480_v41  ;;  %v474_v14 = vmul.f32 %v895_v31, %v434_v62  ;;  %v428_v17 = vadd.f32 0.2548296, %v420_v63  ;;  %v397_v52 = vadd.f32 1.4214138, %v389_v3 }
 0x23f   :  { %v473_v36 = vmul.f32 %v897_v40, %v433_v54  ;;  %v495_v24 = vsub.f32 0.0, %v479_v6  ;;  %v419_v30 = vmul.f32 %v1232_v47, %v411_v7  ;;  %v414_v26 = vadd.f32 -0.28449672, %v406_v49 }
 0x240   :  { %v504_v28 = vsel %vm488_vm1, %v496_v58, %v480_v41  ;;  %v482_v25 = vsub.f32 1.0, %v474_v14  ;;  %v436_v43 = vmul.f32 %v1223_v27, %v428_v17  ;;  %v405_v23 = vmul.f32 %v1245_v22, %v397_v52 }
 0x241   :  { %v481_v42 = vsub.f32 1.0, %v473_v36  ;;  %v512_v33 = vadd.f32 1.0, %v504_v28  ;;  %v503_v40 = vsel %vm487_vm2, %v495_v24, %v479_v6  ;;  %v427_v41 = vadd.f32 0.2548296, %v419_v30  ;;  %v905_v63 = vpop.eup %904 }
 0x242   :  { %v422_v31 = vmul.f32 %v1235_v51, %v414_v26  ;;  %v511_v45 = vadd.f32 1.0, %v503_v40  ;;  %v498_v50 = vsub.f32 0.0, %v482_v25  ;;  %v476_v54 = vmul.f32 %v899_v21, %v436_v43 }
 0x243   :  { %v497_v37 = vsub.f32 0.0, %v481_v42  ;;  %v435_v46 = vmul.f32 %v1232_v47, %v427_v41  ;;  %v413_v57 = vadd.f32 -0.28449672, %v405_v23  ;;  %v520_v27 = vmul.f32 %v512_v33, %v1190_v11 }
 0x244   :  { %v430_v58 = vadd.f32 0.2548296, %v422_v31  ;;  %v519_v44 = vmul.f32 %v511_v45, %v1195_v16  ;;  %v506_v29 = vsel %vm490_vm4, %v498_v50, %v482_v25  ;;  %v484_v61 = vsub.f32 1.0, %v476_v54 }
 0x245   :  { %v505_v20 = vsel %vm489_vm3, %v497_v37, %v481_v42  ;;  %v514_v36 = vadd.f32 1.0, %v506_v29  ;;  %v475_v55 = vmul.f32 %v901_v59, %v435_v46  ;;  %v421_v62 = vmul.f32 %v1245_v22, %v413_v57 }
 0x246   :  { %v513_v56 = vadd.f32 1.0, %v505_v20  ;;  %787 = vmatprep.mubr.f32.mxu0 %v519_v44  ;;  %v500_v21 = vsub.f32 0.0, %v484_v61  ;;  %v438_v47 = vmul.f32 %v1235_v51, %v430_v58  ;;  %v317_v26 = vmul.f32 0.5, %v1198_v19 }
 0x247   :  { %788 = vmatmul.mubr.f32.vlgmr.msra.gmra.mrb[8].mxu0 %v520_v27  ;;  %v522_v11 = vmul.f32 %v514_v36, %v1207_v34  ;;  %v483_v16 = vsub.f32 1.0, %v475_v55  ;;  %v429_v53 = vadd.f32 0.2548296, %v421_v62  ;;  %v316_v34 = vmul.f32 0.5, %v1177_v60 }
 0x248   :  { %v521_v38 = vmul.f32 %v513_v56, %v1226_v35  ;;  %v508_v3 = vsel %vm492_vm5, %v500_v21, %v484_v61  ;;  %v478_v28 = vmul.f32 %v903_v18, %v438_v47  ;;  %v318_v33 = vmul.f32 0.5, %v1184_v48 }
 0x249   :  { %v499_v35 = vsub.f32 0.0, %v483_v16  ;;  %v437_v59 = vmul.f32 %v1245_v22, %v429_v53  ;;  %v516_v51 = vadd.f32 1.0, %v508_v3 }
 0x24a   :  { %790 = vmatprep.mubr.f32.mxu1 %v521_v38  ;;  %v486_v6 = vsub.f32 1.0, %v478_v28 }
 0x24b   :  { %791 = vmatmul.mubr.f32.vlgmr.msra.gmra.mrb[0].mxu1 %v522_v11  ;;  %v507_v7 = vsel %vm491_vm6, %v499_v35, %v483_v16  ;;  %v477_v49 = vmul.f32 %v905_v63, %v437_v59  ;;  %v524_v30 = vmul.f32 %v516_v51, %v316_v34 }
 0x24c   :  { %v515_v42 = vadd.f32 1.0, %v507_v7  ;;  %v502_v14 = vsub.f32 0.0, %v486_v6 }
 0x24d   :  { %v485_v17 = vsub.f32 1.0, %v477_v49 }
 0x24e   :  { %v523_v18 = vmul.f32 %v515_v42, %v315_v4  ;;  %v510_v24 = vsel %vm494_vm7, %v502_v14, %v486_v6 }
 0x24f   :  { %v501_v52 = vsub.f32 0.0, %v485_v17  ;;  %v518_v22 = vadd.f32 1.0, %v510_v24 }
 0x250   :  { %793 = vmatprep.mubr.f32.mxu1 %v523_v18 }
 0x251   :  { %794 = vmatmul.mubr.f32.gmra.mrb[2].mxu1 %v524_v30  ;;  %v509_v10 = vsel %vm493_vm8, %v501_v52, %v485_v17  ;;  %v526_v60 = vmul.f32 %v518_v22, %v318_v33 }
 0x252   :  { %v517_v39 = vadd.f32 1.0, %v509_v10 }
 0x254   :  { %v525_v37 = vmul.f32 %v517_v39, %v317_v26 }
 0x256   :  { %796 = vmatprep.mubr.f32.mxu1 %v525_v37 }
 0x257   :  { %797 = vmatmul.mubr.f32.gmra.mrb[4].mxu1 %v526_v60 }
 0x31a   :  { %v789_v25 = vpop.f32.mrb[8].mxu0 }
 0x31b   :  { %v622_v43 = vadd.f32 %v789_v25, %v698_v15  ;;  %v616_v32 = vpop.f32.mrb[9].mxu0 }
 0x31c   :  { %v617_v40 = vadd.f32 %v698_v15, %v616_v32 }
 0x31d   :  { %v656_v23 = vadd.f32 %v622_v43, %v986_v2 }
 0x31e   :  { %v792_v41 = vpop.f32.mrb[0].mxu1  ;;  %v655_v45 = vadd.f32 %v617_v40, %v976_v0 }
 0x31f   :  { %v632_v31 = vadd.f32 %v792_v41, %v698_v15  ;;  %v626_v19 = vpop.f32.mrb[1].mxu1  ;;  %664 = vst.msk [vmem:[#allocation2 + $0x8] sm:$0xff] %vm37_vm0, %v656_v23 }
 0x320   :  { %v627_v48 = vadd.f32 %v698_v15, %v626_v19  ;;  %663 = vst.msk [vmem:[#allocation2] sm:$0xff] %vm37_vm0, %v655_v45 }
 0x321   :  { %v658_v20 = vadd.f32 %v632_v31, %v995_v5 }
 0x322   :  { %v657_v50 = vadd.f32 %v627_v48, %v981_v1 }
 0x323   :  { %666 = vst.msk [vmem:[#allocation2 + $0x18] sm:$0xff] %vm37_vm0, %v658_v20 }
 0x324   :  { %665 = vst.msk [vmem:[#allocation2 + $0x10] sm:$0xff] %vm37_vm0, %v657_v50  ;;  %v795_v54 = vpop.f32.mrb[2].mxu1 }
 0x325   :  { %v642_v56 = vadd.f32 %v795_v54, %v698_v15  ;;  %v636_v2 = vpop.f32.mrb[3].mxu1 }
 0x326   :  { %v637_v46 = vadd.f32 %v698_v15, %v636_v2 }
 0x327   :  { %v660_v57 = vadd.f32 %v642_v56, %v1009_v9 }
 0x328   :  { %v659_v0 = vadd.f32 %v637_v46, %v1004_v8 }
 0x329   :  { %668 = vst.msk [vmem:[#allocation2 + $0x28] sm:$0xff] %vm37_vm0, %v660_v57 }
 0x32a   :  { %667 = vst.msk [vmem:[#allocation2 + $0x20] sm:$0xff] %vm37_vm0, %v659_v0  ;;  %v798_v5 = vpop.f32.mrb[4].mxu1 }
 0x32b   :  { %v652_v58 = vadd.f32 %v798_v5, %v698_v15  ;;  %v646_v27 = vpop.f32.mrb[5].mxu1 }
 0x32c   :  { %v647_v1 = vadd.f32 %v698_v15, %v646_v27 }
 0x32d   :  { %v662_v44 = vadd.f32 %v652_v58, %v1023_v13 }
 0x32e   :  { %v661_v29 = vadd.f32 %v647_v1, %v1018_v12 }
 0x32f   :  { %670 = vst.msk [vmem:[#allocation2 + $0x38] sm:$0xff] %vm37_vm0, %v662_v44 }
 0x330   :  { %669 = vst.msk [vmem:[#allocation2 + $0x30] sm:$0xff] %vm37_vm0, %v661_v29 }
 0x331   :  { %917 = shalt.err (!%p914_p4)
}
 0x332   :  { %s918_s13 = scalar_lea.hbm %s1328_s7, 1024 }
 0x333   :  { %p919_p5 = scmp.ne.s32.totalorder %s1328_s7, %s918_s13  ;;  %p922_p6 = scmp.lt.u32.totalorder %s918_s13, %s1328_s7 }
 0x335   :  { %p924_p7 = pnand %p922_p6, %p919_p5 }
 0x337   :  { %927 = shalt.err (!%p924_p7)
}
 0x338   :  { %s931_s17 = smov 128   ;;  %s932_s18 = smov 8  }
 0x339   :  { %682 = dma.vmem_to_hbm [thread:$0]  %s677_s9, 1024, %s1328_s7, [#allocation3], %s931_s17, %s931_s17, %s932_s18  }
 0x33a   :  { %928 = dma.done.wait [#allocation3], 1024  }
 0x33b   :  { %929 = vsyncadd [#allocation3], 4294966272 }
 0x33c   :  { %686 = vsyncpa [#allocation3], 1 }

// kernel: cross3d_block_forward.6
= control target key start
LH: loop header
LB: loop body
LE: loop exit
PB: predicated region body
PF: predicated region fallthrough
CT: control target
= control target key end

     0   :  { %s3110_s24 = smov 0   ;;  %s3407_s0 = inlined_call_operand.vmem [shape: f32[2,32,32], index: 0, kind: input, shape index: {}]   ;;  %s3408_s1 = inlined_call_operand.vmem [shape: f32[2,32,64], index: 1, kind: input, shape index: {}]   ;;  %s3409_s2 = inlined_call_operand.vmem [shape: f32[2,4,32,10], index: 2, kind: input, shape index: {}]   ;;  %s3410_s3 = inlined_call_operand.vmem [shape: f32[10,32], index: 3, kind: input, shape index: {}]   ;;  %s3411_s4 = inlined_call_operand.vmem [shape: f32[32,32], index: 4, kind: input, shape index: {}]   ;;  %s3412_s5 = inlined_call_operand.vmem [shape: f32[1,32], index: 5, kind: input, shape index: {}]   ;;  %s3413_s6 = inlined_call_operand.vmem [shape: f32[2,32,32], index: 6, kind: input, shape index: {}]   ;;  %s3414_s7 = inlined_call_operand.vmem [shape: f32[2,32,32], index: 7, kind: output, shape index: {}]  }
   0x1 LB: > { %s2357_s25 = sadd.s32 4294967295, %s3060_s24   ;;  %p2361_p0 = scmp.ge.s32.totalorder %s3060_s24, 1  ;;  %s3060_s24 = sphi %s3110_s24, %s17_s24  }
   0x2   : > { %p267_p1 = scmp.lt.s32.totalorder %s3060_s24, 3 }
   0x4   : > { %p268_p2 = pnand %p2361_p0, %p267_p1 }
   0x5   : > { %v347_v0 = vld [vmem:[%s3410_s3] sm:$0xff] (!%p268_p2)  ;;  %v348_v1 = vld [vmem:[%s3410_s3 + $0x8] sm:$0x3] (!%p268_p2)  ;;  %vm389_vm0 = vcmask (!%p268_p2), 1041408   ;;  %p314_p3 = scmp.lt.s32.totalorder (!%p268_p2), %s2357_s25, 1  ;;  %vm3062_vm1 = vmmov (!%p268_p2), 1  }
   0x6   : > { %271 = sbr.rel (%p268_p2) target bundleno = 2094 (0x82e), region = 48  ;;  %v3124_v2 = vpack.c.bf16 (!%p268_p2), %v348_v1, %v347_v0  ;;  %vm3126_vm2 = vmpackc.low (!%p268_p2), %vm389_vm0, %vm3062_vm1  ;;  %vm478_vm3 = vcmask (!%p268_p2), 64512   ;;  %vm376_vm4 = vcmask (!%p268_p2), 80896   ;;  %vm588_vm6 = vcmask (!%p268_p2), 261120   ;;  %s3063_s18 = smov (!%p268_p2), 96   ;;  %v349_v61 = vld [vmem:[%s3411_s4] sm:$0xff] (!%p268_p2) }
   0x7   : > { %vm3149_vm5 = vmpackc.low (!%p268_p2), %vm478_vm3, %vm478_vm3  ;;  %s3064_s21 = smov (!%p268_p2), 120   ;;  %s3065_s22 = smov (!%p268_p2), 88  }
   0x8   : > { %2770 = vmatprep.subr.msk.bf16.mxu0 (!%p268_p2), %vm3126_vm2, %v3124_v2  ;;  %s3066_s23 = smov (!%p268_p2), 112   ;;  %s3068_s28 = smov (!%p268_p2), 80  }
   0x9   : > { %2773 = vmatpush3.bf16.msk.msra.mxu0 (!%p268_p2), %vm3126_vm2, %v3124_v2  ;;  %s3069_s29 = smov (!%p268_p2), 72  }
   0xd   : > { %s3420_s25 = smov (!%p314_p3, %s2357_s25), 1 }
   0xe   : > { %s2473_s30 = sshll.u32 %s3420_s25, 7  ;;  %s3136_s8 = sshll.u32 %s3420_s25, 5 }
   0xf   : > { %s3141_s11 = scalar_lea.vmem %s3409_s2, %s2473_s30  ;;  %s323_s14 = scalar_lea.vmem %s3408_s1, %s3136_s8 }
  0x10   : > { %v372_v5 = vld [vmem:[%s3141_s11] sm:$0xff]  ;;  %v344_v7 = vld [vmem:[%s323_s14 + $0x8] sm:$0xff]  ;;  %s318_s17 = scalar_lea.vmem %s3407_s0, %s3136_s8  ;;  %v345_v10 = vld [vmem:[%s323_s14 + $0x10] sm:$0xff]  ;;  %s3067_s25 = smov 104  }
  0x11   : > { %v343_v6 = vld [vmem:[%s323_s14] sm:$0xff]  ;;  %2588 = vmatprep.mubr.msk.f32.mxu0 %vm376_vm4, %v372_v5  ;;  %v373_v9 = vld [vmem:[%s3141_s11 + $0x8] sm:$0xff]  ;;  %v346_v11 = vld [vmem:[%s323_s14 + $0x18] sm:$0xff]  ;;  %s333_s14 = scalar_lea.vmem %s3413_s6, %s3136_s8  ;;  %s338_s19 = scalar_lea.vmem %s3414_s7, %s3136_s8 }
  0x12   : > { %v2774_v8 = vpack.c.bf16 %v344_v7, %v343_v6  ;;  %2589 = vmatmul.mubr.msk.f32.vlgmr.msra.gmra.mrb[0].mxu0 %vm376_vm4, %v373_v9  ;;  %v374_v12 = vld [vmem:[%s3141_s11 + $0x10] sm:$0xff]  ;;  %v339_v13 = vld [vmem:[%s318_s17] sm:$0xff]  ;;  %v375_v14 = vld [vmem:[%s3141_s11 + $0x18] sm:$0xff]  ;;  %v2780_v16 = vpack.c.bf16 %v346_v11, %v345_v10  ;;  %v3193_v31 = vpack.i.bf16 %v346_v11, %v345_v10  ;;  %v3195_v32 = vpack.i.bf16 %v344_v7, %v343_v6 }
  0x13   : > { %2591 = vmatprep.mubr.msk.f32.mxu0 %vm376_vm4, %v374_v12  ;;  %v3166_v15 = vmul.f32 0.35355338, %v339_v13  ;;  %v340_v17 = vld [vmem:[%s318_s17 + $0x8] sm:$0xff]  ;;  %v341_v18 = vld [vmem:[%s318_s17 + $0x10] sm:$0xff]  ;;  %v342_v21 = vld [vmem:[%s318_s17 + $0x18] sm:$0xff] }
  0x14   : > { %2776 = vmatprep.subr.msk.bf16.mxu0 %vm3149_vm5, %v2774_v8  ;;  %v3177_v19 = vmul.f32 0.35355338, %v340_v17  ;;  %v3179_v20 = vmul.f32 0.35355338, %v341_v18  ;;  %v3183_v22 = vmul.f32 0.35355338, %v342_v21 }
  0x15   : > { %2779 = vmatpush3.bf16.xpose.msk.msra.mxu0 %vm3149_vm5, %v2774_v8 }
  0x16   : > { %2592 = vmatmul.mubr.msk.f32.gmra.mrb[2].mxu0 %vm376_vm4, %v375_v14  ;;  %2782 = vmatprep.subr.msk.bf16.mxu0 %vm3149_vm5, %v2780_v16 }
  0x17   : > { %2602 = vmatprep.mubr.msk.f32.mxu0 %vm478_vm3, %v3166_v15 }
  0x1d   : > { %2785 = vmatpush3.bf16.xpose.msk.msra.mxu0 %vm3149_vm5, %v2780_v16 }
  0x24   : > { %2603 = vmatmul.mubr.msk.f32.vlgmr.msra.gmra.mrb[0].mxu0 %vm478_vm3, %v3177_v19 }
  0x25   : > { %2605 = vmatprep.mubr.msk.f32.mxu0 %vm478_vm3, %v3179_v20 }
  0x28   : > { %2606 = vmatmul.mubr.msk.f32.gmra.mrb[2].mxu0 %vm478_vm3, %v3183_v22 }
  0xf7   : > { %v2604_v23 = vpop.f32.mrb[0].mxu0 }
  0xf8   : > { %v569_v24 = vpop.f32.mrb[1].mxu0  ;;  %v592_v25 = vsel %vm588_vm6, %v2604_v23, -inf }
  0xf9   : > { %593 = vmax.xlane.f32.xlu0 %v592_v25  ;;  %v589_v28 = vsel %vm588_vm6, %v569_v24, -inf }
  0xfb   : > { %v2607_v26 = vpop.f32.mrb[2].mxu0 }
  0xfc   : > { %v579_v27 = vpop.f32.mrb[3].mxu0  ;;  %v598_v29 = vsel %vm588_vm6, %v2607_v26, -inf }
  0xfd   : > { %590 = vmax.xlane.f32.xlu0 %v589_v28  ;;  %599 = vmax.xlane.f32.xlu1 %v598_v29  ;;  %v595_v30 = vsel %vm588_vm6, %v579_v27, -inf  ;;  %v2395_v29 = vld [vmem:[%s3141_s11 + $0x28] sm:$0xff] }
 0x101   : > { %596 = vmax.xlane.f32.xlu1 %v595_v30 }
 0x112   : > { %2926 = vrot.lane.b32.xlu1 %v3193_v31, %s3063_s18 }
 0x113   : > { %2921 = vrot.lane.b32.xlu0 %v3195_v32, %s3063_s18 }
 0x186   : > { %v594_v33 = vpop.xlane.xlu0 %593 }
 0x187   : > { %v602_v34 = vsub.f32 %v2604_v23, %v594_v33  ;;  %v2396_v33 = vld [vmem:[%s3141_s11 + $0x30] sm:$0xff] }
 0x189   : > { %v607_v35 = vmul.f32 1.442695, %v602_v34  ;;  %v2397_v34 = vld [vmem:[%s3141_s11 + $0x38] sm:$0xff] }
 0x18a   : > { %v591_v36 = vpop.xlane.xlu0 %590  ;;  %v600_v37 = vpop.xlane.xlu1 %599 }
 0x18b   : > { %2990 = vpow2.f32 %v607_v35  ;;  %v601_v38 = vsub.f32 %v569_v24, %v591_v36  ;;  %v604_v39 = vsub.f32 %v2607_v26, %v600_v37  ;;  %v2394_v26 = vld [vmem:[%s3141_s11 + $0x20] sm:$0xff] }
 0x18d   : > { %v605_v40 = vmul.f32 1.442695, %v601_v38  ;;  %v611_v41 = vmul.f32 1.442695, %v604_v39 }
 0x18e   : > { %v2922_v42 = vpop.permute.xlu0 %2921  ;;  %v597_v43 = vpop.xlane.xlu1 %596 }
 0x18f   : > { %2992 = vpow2.f32 %v605_v40  ;;  %v2924_v44 = vunpack.i.h.bf16 %v2922_v42  ;;  %v2923_v45 = vunpack.i.l.bf16 %v2922_v42  ;;  %v603_v46 = vsub.f32 %v579_v27, %v597_v43 }
 0x190   : > { %2994 = vpow2.f32 %v611_v41 }
 0x191   : > { %v609_v47 = vmul.f32 1.442695, %v603_v46  ;;  %v2786_v48 = vpack.c.bf16 %v2924_v44, %v2923_v45 }
 0x192   : > { %v2927_v49 = vpop.permute.xlu1 %2926 }
 0x193   : > { %2996 = vpow2.f32 %v609_v47  ;;  %v2929_v50 = vunpack.i.h.bf16 %v2927_v49  ;;  %v2928_v51 = vunpack.i.l.bf16 %v2927_v49  ;;  %2787 = vmatprep.subr.bf16.mxu1 %v2786_v48 }
 0x194   : > { %2789 = vmatpush3.bf16.msra.mxu1 %v2786_v48 }
 0x195   : > { %v2991_v52 = vpop.eup %2990  ;;  %v2790_v53 = vpack.c.bf16 %v2929_v50, %v2928_v51 }
 0x196   : > { %v616_v54 = vsel %vm588_vm6, %v2991_v52, 0.0 }
 0x197   : > { %617 = vadd.xlane.f32.xlu0 %v616_v54  ;;  %2791 = vmatprep.subr.bf16.mxu1 %v2790_v53 }
 0x198   : > { %2793 = vmatpush3.bf16.msra.mxu1 %v2790_v53 }
 0x199   : > { %v2993_v55 = vpop.eup %2992  ;;  %2622 = vmatprep.subr.mxu1 %v349_v61 }
 0x19a   : > { %2616 = vmatprep.mubr.msk.f32.mxu1 %vm588_vm6, %v2993_v55  ;;  %v613_v56 = vsel %vm588_vm6, %v2993_v55, 0.0  ;;  %v2995_v57 = vpop.eup %2994 }
 0x19b   : > { %614 = vadd.xlane.f32.xlu1 %v613_v56  ;;  %2617 = vmatmul.mubr.msk.f32.vlgmr.msra.gmra.mrb[0].mxu1 %vm588_vm6, %v2991_v52  ;;  %v622_v59 = vsel %vm588_vm6, %v2995_v57, 0.0 }
 0x19c   : > { %2623 = vmatpush3.msra.mxu1 %v349_v61 }
 0x19d   : > { %v2997_v58 = vpop.eup %2996  ;;  %2796 = vmatprep.subr.msk.bf16.mxu1 %vm3126_vm2, %v3124_v2 }
 0x19e   : > { %2619 = vmatprep.mubr.msk.f32.mxu1 %vm588_vm6, %v2997_v58  ;;  %v619_v60 = vsel %vm588_vm6, %v2997_v58, 0.0 }
 0x19f   : > { %623 = vadd.xlane.f32.xlu1 %v622_v59  ;;  %620 = vadd.xlane.f32.xlu0 %v619_v60 }
 0x1a0   : > { %2620 = vmatmul.mubr.msk.f32.gmra.mrb[2].mxu1 %vm588_vm6, %v2995_v57 }
 0x1b0   : > { %2936 = vrot.lane.b32.xlu1 %v3193_v31, %s3064_s21 }
 0x1b4   : > { %945 = vrot.lane.b32.xlu1 %v3166_v15, %s3064_s21 }
 0x1b5   : > { %2931 = vrot.lane.b32.xlu0 %v3195_v32, %s3064_s21 }
 0x1b8   : > { %947 = vrot.lane.b32.xlu1 %v3177_v19, %s3064_s21 }
 0x1b9   : > { %949 = vrot.lane.b32.xlu0 %v3179_v20, %s3064_s21 }
 0x1bc   : > { %951 = vrot.lane.b32.xlu1 %v3183_v22, %s3064_s21 }
 0x224   : > { %v618_v62 = vpop.xlane.xlu0 %617 }
 0x228   : > { %v615_v63 = vpop.xlane.xlu1 %614 }
 0x229   : > { %2998 = vrcp.f32 %v615_v63 }
 0x22a   : > { %3000 = vrcp.f32 %v618_v62 }
 0x22c   : > { %v621_v0 = vpop.xlane.xlu0 %620  ;;  %v624_v1 = vpop.xlane.xlu1 %623 }
 0x22d   : > { %3002 = vrcp.f32 %v621_v0 }
 0x22e   : > { %3004 = vrcp.f32 %v624_v1 }
 0x230   : > { %v2932_v5 = vpop.permute.xlu0 %2931  ;;  %v2937_v17 = vpop.permute.xlu1 %2936 }
 0x231   : > { %v2934_v6 = vunpack.i.h.bf16 %v2932_v5  ;;  %v2933_v7 = vunpack.i.l.bf16 %v2932_v5  ;;  %v2939_v27 = vunpack.i.h.bf16 %v2937_v17  ;;  %v2938_v28 = vunpack.i.l.bf16 %v2937_v17 }
 0x233   : > { %v2999_v9 = vpop.eup %2998  ;;  %v2800_v14 = vpack.c.bf16 %v2934_v6, %v2933_v7  ;;  %v2806_v30 = vpack.c.bf16 %v2939_v27, %v2938_v28 }
 0x234   : > { %v3001_v11 = vpop.eup %3000  ;;  %v946_v35 = vpop.permute.xlu1 %945 }
 0x235   : > { %v950_v37 = vpop.permute.xlu0 %949 }
 0x237   : > { %v3003_v18 = vpop.eup %3002 }
 0x238   : > { %v3005_v23 = vpop.eup %3004  ;;  %v948_v36 = vpop.permute.xlu1 %947 }
 0x23c   : > { %v952_v38 = vpop.permute.xlu1 %951 }
 0x26e   : > { %v2618_v8 = vpop.f32.mrb[0].mxu1 }
 0x26f   : > { %v715_v10 = vpop.f32.mrb[1].mxu1  ;;  %v739_v13 = vmul.f32 %v3001_v11, %v2618_v8 }
 0x270   : > { %v738_v12 = vmul.f32 %v2999_v9, %v715_v10 }
 0x272   : > { %2624 = vmatprep.mubr.msk.f32.mxu1 %vm478_vm3, %v738_v12 }
 0x273   : > { %v2621_v16 = vpop.f32.mrb[2].mxu1  ;;  %2625 = vmatmul.mubr.msk.f32.vlgmr.msra.gmra.mrb[4].mxu1 %vm478_vm3, %v739_v13 }
 0x274   : > { %v725_v21 = vpop.f32.mrb[3].mxu1  ;;  %2799 = vmatpush3.bf16.msk.msra.mxu1 %vm3126_vm2, %v3124_v2  ;;  %v741_v25 = vmul.f32 %v3005_v23, %v2621_v16  ;;  %v2419_v16 = vld [vmem:[%s3141_s11 + $0x40] sm:$0xff]  ;;  %v2421_v23 = vld [vmem:[%s3141_s11 + $0x50] sm:$0xff] }
 0x275   : > { %v740_v24 = vmul.f32 %v3003_v18, %v725_v21  ;;  %2802 = vmatprep.subr.msk.bf16.mxu1 %vm3149_vm5, %v2800_v14  ;;  %v2420_v21 = vld [vmem:[%s3141_s11 + $0x48] sm:$0xff] }
 0x277   : > { %2627 = vmatprep.mubr.msk.f32.mxu1 %vm478_vm3, %v740_v24 }
 0x278   : > { %2628 = vmatmul.mubr.msk.f32.gmra.mrb[6].mxu1 %vm478_vm3, %v741_v25 }
 0x279   : > { %2634 = vmatprep.mubr.msk.f32.mxu1 %vm376_vm4, %v2394_v26  ;;  %v2422_v26 = vld [vmem:[%s3141_s11 + $0x58] sm:$0xff] }
 0x27c   : > { %2635 = vmatmul.mubr.msk.f32.vlgmr.msra.gmra.mrb[8].mxu1 %vm376_vm4, %v2395_v29 }
 0x27d   : > { %2805 = vmatpush3.bf16.xpose.msk.msra.mxu1 %vm3149_vm5, %v2800_v14  ;;  %2637 = vmatprep.mubr.msk.f32.mxu1 %vm376_vm4, %v2396_v33 }
 0x27e   : > { %2808 = vmatprep.subr.msk.bf16.mxu1 %vm3149_vm5, %v2806_v30 }
 0x280   : > { %2638 = vmatmul.mubr.msk.f32.gmra.mrb[10].mxu1 %vm376_vm4, %v2397_v34 }
 0x281   : > { %2648 = vmatprep.mubr.msk.f32.mxu1 %vm478_vm3, %v946_v35 }
 0x285   : > { %2811 = vmatpush3.bf16.xpose.msk.msra.mxu1 %vm3149_vm5, %v2806_v30 }
 0x28c   : > { %2649 = vmatmul.mubr.msk.f32.vlgmr.msra.gmra.mrb[8].mxu1 %vm478_vm3, %v948_v36 }
 0x28d   : > { %2651 = vmatprep.mubr.msk.f32.mxu1 %vm478_vm3, %v950_v37  ;;  %v2444_v37 = vld [vmem:[%s3141_s11 + $0x60] sm:$0xff] }
 0x290   : > { %2652 = vmatmul.mubr.msk.f32.gmra.mrb[10].mxu1 %vm478_vm3, %v952_v38 }
 0x35f   : > { %v2650_v39 = vpop.f32.mrb[8].mxu1 }
 0x360   : > { %v1043_v40 = vpop.f32.mrb[9].mxu1  ;;  %v1065_v41 = vsel %vm588_vm6, %v2650_v39, -inf }
 0x361   : > { %1066 = vmax.xlane.f32.xlu1 %v1065_v41  ;;  %v1062_v42 = vsel %vm588_vm6, %v1043_v40, -inf  ;;  %v2446_v41 = vld [vmem:[%s3141_s11 + $0x70] sm:$0xff] }
 0x362   : > { %1063 = vmax.xlane.f32.xlu0 %v1062_v42 }
 0x363   : > { %v2653_v43 = vpop.f32.mrb[10].mxu1 }
 0x364   : > { %v1053_v44 = vpop.f32.mrb[11].mxu1  ;;  %v1071_v45 = vsel %vm588_vm6, %v2653_v43, -inf }
 0x365   : > { %v1068_v46 = vsel %vm588_vm6, %v1053_v44, -inf }
 0x366   : > { %1072 = vmax.xlane.f32.xlu0 %v1071_v45 }
 0x36a   : > { %1069 = vmax.xlane.f32.xlu0 %v1068_v46  ;;  %v350_v46 = vld [vmem:[%s3411_s4 + $0x8] sm:$0xff] }
 0x36b   : > { %2668 = vmatprep.subr.mxu1 %v350_v46 }
 0x36c   : > { %2669 = vmatpush3.msra.mxu1 %v350_v46 }
 0x372   : > { %2946 = vrot.lane.b32.xlu1 %v3193_v31, %s3065_s22 }
 0x376   : > { %2951 = vrot.lane.b32.xlu1 %v3195_v32, %s3066_s23 }
 0x37a   : > { %2956 = vrot.lane.b32.xlu1 %v3193_v31, %s3066_s23 }
 0x37e   : > { %1420 = vrot.lane.b32.xlu1 %v3177_v19, %s3066_s23 }
 0x380   : > { %2941 = vrot.lane.b32.xlu0 %v3195_v32, %s3065_s22 }
 0x382   : > { %1424 = vrot.lane.b32.xlu1 %v3183_v22, %s3066_s23 }
 0x384   : > { %1418 = vrot.lane.b32.xlu0 %v3166_v15, %s3066_s23 }
 0x386   : > { %2966 = vrot.lane.b32.xlu1 %v3193_v31, %s3067_s25 }
 0x388   : > { %1422 = vrot.lane.b32.xlu0 %v3179_v20, %s3066_s23 }
 0x38a   : > { %1893 = vrot.lane.b32.xlu1 %v3177_v19, %s3067_s25 }
 0x38c   : > { %2961 = vrot.lane.b32.xlu0 %v3195_v32, %s3067_s25 }
 0x38e   : > { %1897 = vrot.lane.b32.xlu1 %v3183_v22, %s3067_s25 }
 0x390   : > { %1891 = vrot.lane.b32.xlu0 %v3166_v15, %s3067_s25 }
 0x394   : > { %1895 = vrot.lane.b32.xlu0 %v3179_v20, %s3067_s25 }
 0x3ee   : > { %v1067_v47 = vpop.xlane.xlu1 %1066 }
 0x3ef   : > { %v1075_v48 = vsub.f32 %v2650_v39, %v1067_v47  ;;  %v1064_v49 = vpop.xlane.xlu0 %1063 }
 0x3f0   : > { %v1074_v50 = vsub.f32 %v1043_v40, %v1064_v49  ;;  %v2445_v40 = vld [vmem:[%s3141_s11 + $0x68] sm:$0xff] }
 0x3f1   : > { %v1080_v51 = vmul.f32 1.442695, %v1075_v48 }
 0x3f2   : > { %v1078_v52 = vmul.f32 1.442695, %v1074_v50  ;;  %v2947_v56 = vpop.permute.xlu1 %2946 }
 0x3f3   : > { %3006 = vpow2.f32 %v1080_v51  ;;  %v1073_v53 = vpop.xlane.xlu0 %1072  ;;  %v2949_v58 = vunpack.i.h.bf16 %v2947_v56  ;;  %v2948_v15 = vunpack.i.l.bf16 %v2947_v56 }
 0x3f4   : > { %3008 = vpow2.f32 %v1078_v52  ;;  %v1077_v54 = vsub.f32 %v2653_v43, %v1073_v53  ;;  %v2447_v43 = vld [vmem:[%s3141_s11 + $0x78] sm:$0xff] }
 0x3f5   : > { %v2816_v1 = vpack.c.bf16 %v2949_v58, %v2948_v15 }
 0x3f6   : > { %v1084_v55 = vmul.f32 1.442695, %v1077_v54  ;;  %v2952_v6 = vpop.permute.xlu1 %2951 }
 0x3f7   : > { %v1070_v19 = vpop.xlane.xlu0 %1069  ;;  %v2954_v8 = vunpack.i.h.bf16 %v2952_v6  ;;  %v2953_v9 = vunpack.i.l.bf16 %v2952_v6 }
 0x3f8   : > { %3010 = vpow2.f32 %v1084_v55  ;;  %v1076_v57 = vsub.f32 %v1053_v44, %v1070_v19 }
 0x3f9   : > { %v2826_v12 = vpack.c.bf16 %v2954_v8, %v2953_v9 }
 0x3fa   : > { %v1082_v22 = vmul.f32 1.442695, %v1076_v57  ;;  %v2957_v14 = vpop.permute.xlu1 %2956 }
 0x3fb   : > { %v2942_v59 = vpop.permute.xlu0 %2941  ;;  %v2959_v17 = vunpack.i.h.bf16 %v2957_v14  ;;  %v2958_v18 = vunpack.i.l.bf16 %v2957_v14 }
 0x3fc   : > { %3012 = vpow2.f32 %v1082_v22  ;;  %v2944_v20 = vunpack.i.h.bf16 %v2942_v59  ;;  %v2943_v60 = vunpack.i.l.bf16 %v2942_v59 }
 0x3fd   : > { %v3007_v61 = vpop.eup %3006  ;;  %v2832_v25 = vpack.c.bf16 %v2959_v17, %v2958_v18 }
 0x3fe   : > { %v3009_v62 = vpop.eup %3008  ;;  %v2812_v63 = vpack.c.bf16 %v2944_v20, %v2943_v60  ;;  %v1089_v0 = vsel %vm588_vm6, %v3007_v61, 0.0  ;;  %v1421_v28 = vpop.permute.xlu1 %1420 }
 0x3ff   : > { %1090 = vadd.xlane.f32.xlu1 %v1089_v0  ;;  %2662 = vmatprep.mubr.msk.f32.mxu0 %vm588_vm6, %v3009_v62  ;;  %v1086_v5 = vsel %vm588_vm6, %v3009_v62, 0.0  ;;  %v1419_v24 = vpop.permute.xlu0 %1418 }
 0x400   : > { %1087 = vadd.xlane.f32.xlu0 %v1086_v5  ;;  %2813 = vmatprep.subr.bf16.mxu0 %v2812_v63 }
 0x401   : > { %2815 = vmatpush3.bf16.msra.mxu0 %v2812_v63 }
 0x402   : > { %v3011_v7 = vpop.eup %3010  ;;  %2817 = vmatprep.subr.bf16.mxu0 %v2816_v1  ;;  %v1425_v34 = vpop.permute.xlu1 %1424 }
 0x403   : > { %v1095_v10 = vsel %vm588_vm6, %v3011_v7, 0.0  ;;  %v1423_v27 = vpop.permute.xlu0 %1422 }
 0x404   : > { %1096 = vadd.xlane.f32.xlu0 %v1095_v10 }
 0x405   : > { %2819 = vmatpush3.bf16.msra.mxu0 %v2816_v1 }
 0x406   : > { %v3013_v11 = vpop.eup %3012  ;;  %2822 = vmatprep.subr.msk.bf16.mxu0 %vm3126_vm2, %v3124_v2  ;;  %v2967_v36 = vpop.permute.xlu1 %2966 }
 0x407   : > { %v1092_v13 = vsel %vm588_vm6, %v3013_v11, 0.0  ;;  %v2962_v29 = vpop.permute.xlu0 %2961  ;;  %v2969_v38 = vunpack.i.h.bf16 %v2967_v36  ;;  %v2968_v39 = vunpack.i.l.bf16 %v2967_v36 }
 0x408   : > { %1093 = vadd.xlane.f32.xlu0 %v1092_v13  ;;  %2663 = vmatmul.mubr.msk.f32.vlgmr.msra.gmra.mrb[4].mxu0 %vm588_vm6, %v3007_v61  ;;  %v2964_v30 = vunpack.i.h.bf16 %v2962_v29  ;;  %v2963_v33 = vunpack.i.l.bf16 %v2962_v29 }
 0x409   : > { %2665 = vmatprep.mubr.msk.f32.mxu0 %vm588_vm6, %v3013_v11  ;;  %2825 = vmatpush3.bf16.msk.msra.mxu0 %vm3126_vm2, %v3124_v2  ;;  %v2858_v42 = vpack.c.bf16 %v2969_v38, %v2968_v39 }
 0x40a   : > { %2828 = vmatprep.subr.msk.bf16.mxu0 %vm3149_vm5, %v2826_v12  ;;  %v2852_v35 = vpack.c.bf16 %v2964_v30, %v2963_v33  ;;  %v1894_v3 = vpop.permute.xlu1 %1893 }
 0x40c   : > { %2666 = vmatmul.mubr.msk.f32.gmra.mrb[6].mxu0 %vm588_vm6, %v3011_v7 }
 0x40d   : > { %2680 = vmatprep.mubr.msk.f32.mxu0 %vm376_vm4, %v2419_v16 }
 0x40e   : > { %v1898_v45 = vpop.permute.xlu1 %1897 }
 0x410   : > { %2681 = vmatmul.mubr.msk.f32.vlgmr.msra.gmra.mrb[8].mxu0 %vm376_vm4, %v2420_v21 }
 0x411   : > { %2683 = vmatprep.mubr.msk.f32.mxu0 %vm376_vm4, %v2421_v23 }
 0x412   : > { %2831 = vmatpush3.bf16.xpose.msk.msra.mxu0 %vm3149_vm5, %v2826_v12 }
 0x413   : > { %2834 = vmatprep.subr.msk.bf16.mxu0 %vm3149_vm5, %v2832_v25 }
 0x414   : > { %2684 = vmatmul.mubr.msk.f32.gmra.mrb[10].mxu0 %vm376_vm4, %v2422_v26 }
 0x415   : > { %2694 = vmatprep.mubr.msk.f32.mxu0 %vm478_vm3, %v1419_v24 }
 0x41a   : > { %2837 = vmatpush3.bf16.xpose.msk.msra.mxu0 %vm3149_vm5, %v2832_v25 }
 0x41b   : > { %2848 = vmatprep.subr.msk.bf16.mxu0 %vm3126_vm2, %v3124_v2 }
 0x421   : > { %2695 = vmatmul.mubr.msk.f32.vlgmr.msra.gmra.mrb[8].mxu0 %vm478_vm3, %v1421_v28 }
 0x422   : > { %2697 = vmatprep.mubr.msk.f32.mxu0 %vm478_vm3, %v1423_v27  ;;  %2851 = vmatpush3.bf16.msk.msra.mxu0 %vm3126_vm2, %v3124_v2  ;;  %v1892_v2 = vpop.permute.xlu0 %1891 }
 0x423   : > { %2854 = vmatprep.subr.msk.bf16.mxu0 %vm3149_vm5, %v2852_v35 }
 0x425   : > { %2698 = vmatmul.mubr.msk.f32.gmra.mrb[10].mxu0 %vm478_vm3, %v1425_v34 }
 0x426   : > { %2726 = vmatprep.mubr.msk.f32.mxu0 %vm376_vm4, %v2444_v37  ;;  %v1896_v44 = vpop.permute.xlu0 %1895 }
 0x429   : > { %2727 = vmatmul.mubr.msk.f32.vlgmr.msra.gmra.mrb[12].mxu0 %vm376_vm4, %v2445_v40 }
 0x42a   : > { %2729 = vmatprep.mubr.msk.f32.mxu0 %vm376_vm4, %v2446_v41 }
 0x42b   : > { %2857 = vmatpush3.bf16.xpose.msk.msra.mxu0 %vm3149_vm5, %v2852_v35 }
 0x42c   : > { %2860 = vmatprep.subr.msk.bf16.mxu0 %vm3149_vm5, %v2858_v42 }
 0x42d   : > { %2730 = vmatmul.mubr.msk.f32.gmra.mrb[14].mxu0 %vm376_vm4, %v2447_v43 }
 0x42e   : > { %2740 = vmatprep.mubr.msk.f32.mxu0 %vm478_vm3, %v1892_v2 }
 0x433   : > { %2863 = vmatpush3.bf16.xpose.msk.msra.mxu0 %vm3149_vm5, %v2858_v42 }
 0x43a   : > { %2741 = vmatmul.mubr.msk.f32.vlgmr.msra.gmra.mrb[12].mxu0 %vm478_vm3, %v1894_v3 }
 0x43b   : > { %2743 = vmatprep.mubr.msk.f32.mxu0 %vm478_vm3, %v1896_v44 }
 0x43e   : > { %2744 = vmatmul.mubr.msk.f32.gmra.mrb[14].mxu0 %vm478_vm3, %v1898_v45 }
 0x48c   : > { %v1091_v49 = vpop.xlane.xlu1 %1090 }
 0x48d   : > { %v1088_v47 = vpop.xlane.xlu0 %1087 }
 0x48e   : > { %3014 = vrcp.f32 %v1088_v47 }
 0x48f   : > { %3016 = vrcp.f32 %v1091_v49 }
 0x491   : > { %v1097_v48 = vpop.xlane.xlu0 %1096 }
 0x495   : > { %v1094_v4 = vpop.xlane.xlu0 %1093 }
 0x496   : > { %3018 = vrcp.f32 %v1094_v4 }
 0x497   : > { %3020 = vrcp.f32 %v1097_v48 }
 0x498   : > { %v3015_v51 = vpop.eup %3014 }
 0x499   : > { %v3017_v53 = vpop.eup %3016 }
 0x4a0   : > { %v3019_v56 = vpop.eup %3018 }
 0x4a1   : > { %v3021_v22 = vpop.eup %3020 }
 0x4db   : > { %v2664_v50 = vpop.f32.mrb[4].mxu0 }
 0x4dc   : > { %v1188_v52 = vpop.f32.mrb[5].mxu0  ;;  %v1212_v55 = vmul.f32 %v3017_v53, %v2664_v50 }
 0x4dd   : > { %v1211_v54 = vmul.f32 %v3015_v51, %v1188_v52 }
 0x4df   : > { %v2667_v19 = vpop.f32.mrb[6].mxu0  ;;  %2670 = vmatprep.mubr.msk.f32.mxu1 %vm478_vm3, %v1211_v54 }
 0x4e0   : > { %v1198_v57 = vpop.f32.mrb[7].mxu0  ;;  %2671 = vmatmul.mubr.msk.f32.vlgmr.msra.gmra.mrb[4].mxu1 %vm478_vm3, %v1212_v55  ;;  %v1214_v15 = vmul.f32 %v3021_v22, %v2667_v19 }
 0x4e1   : > { %v1213_v58 = vmul.f32 %v3019_v56, %v1198_v57 }
 0x4e3   : > { %2673 = vmatprep.mubr.msk.f32.mxu1 %vm478_vm3, %v1213_v58 }
 0x4e4   : > { %2674 = vmatmul.mubr.msk.f32.gmra.mrb[6].mxu1 %vm478_vm3, %v1214_v15 }
 0x4f4   : > { %v2696_v59 = vpop.f32.mrb[8].mxu0 }
 0x4f5   : > { %v1516_v20 = vpop.f32.mrb[9].mxu0  ;;  %v1538_v60 = vsel %vm588_vm6, %v2696_v59, -inf }
 0x4f6   : > { %1539 = vmax.xlane.f32.xlu1 %v1538_v60  ;;  %v1535_v61 = vsel %vm588_vm6, %v1516_v20, -inf }
 0x4f7   : > { %1536 = vmax.xlane.f32.xlu0 %v1535_v61 }
 0x4f8   : > { %v2699_v62 = vpop.f32.mrb[10].mxu0 }
 0x4f9   : > { %v1526_v63 = vpop.f32.mrb[11].mxu0  ;;  %v1544_v0 = vsel %vm588_vm6, %v2699_v62, -inf }
 0x4fa   : > { %1545 = vmax.xlane.f32.xlu1 %v1544_v0  ;;  %v1541_v1 = vsel %vm588_vm6, %v1526_v63, -inf }
 0x4fb   : > { %1542 = vmax.xlane.f32.xlu0 %v1541_v1 }
 0x50b   : > { %2976 = vrot.lane.b32.xlu1 %v3193_v31, %s3068_s28 }
 0x50d   : > { %v3336_v5 = vpop.f32.mrb[12].mxu0 }
 0x50e   : > { %v3338_v6 = vpop.f32.mrb[13].mxu0  ;;  %v2011_v9 = vsel %vm588_vm6, %v3336_v5, -inf }
 0x50f   : > { %v2008_v10 = vsel %vm588_vm6, %v3338_v6, -inf }
 0x511   : > { %2971 = vrot.lane.b32.xlu0 %v3195_v32, %s3068_s28  ;;  %v3341_v7 = vpop.f32.mrb[14].mxu0 }
 0x512   : > { %v3343_v8 = vpop.f32.mrb[15].mxu0  ;;  %v2017_v11 = vsel %vm588_vm6, %v3341_v7, -inf }
 0x513   : > { %v2014_v12 = vsel %vm588_vm6, %v3343_v8, -inf }
 0x52f   : > { %2012 = vmax.xlane.f32.xlu1 %v2011_v9 }
 0x530   : > { %2009 = vmax.xlane.f32.xlu0 %v2008_v10 }
 0x533   : > { %2018 = vmax.xlane.f32.xlu1 %v2017_v11 }
 0x534   : > { %2015 = vmax.xlane.f32.xlu0 %v2014_v12 }
 0x583   : > { %v1540_v13 = vpop.xlane.xlu1 %1539 }
 0x584   : > { %v1548_v14 = vsub.f32 %v2696_v59, %v1540_v13  ;;  %v1537_v16 = vpop.xlane.xlu0 %1536  ;;  %v351_v59 = vld [vmem:[%s3411_s4 + $0x10] sm:$0xff] }
 0x585   : > { %v1547_v17 = vsub.f32 %v1516_v20, %v1537_v16 }
 0x586   : > { %v1553_v18 = vmul.f32 1.442695, %v1548_v14 }
 0x587   : > { %v1551_v21 = vmul.f32 1.442695, %v1547_v17  ;;  %v1546_v23 = vpop.xlane.xlu1 %1545 }
 0x588   : > { %3022 = vpow2.f32 %v1553_v18  ;;  %v1550_v24 = vsub.f32 %v2699_v62, %v1546_v23  ;;  %v1543_v25 = vpop.xlane.xlu0 %1542 }
 0x589   : > { %3024 = vpow2.f32 %v1551_v21  ;;  %v1549_v26 = vsub.f32 %v1526_v63, %v1543_v25 }
 0x58a   : > { %v1557_v27 = vmul.f32 1.442695, %v1550_v24 }
 0x58b   : > { %v1555_v28 = vmul.f32 1.442695, %v1549_v26  ;;  %v2977_v29 = vpop.permute.xlu1 %2976  ;;  %v352_v26 = vld [vmem:[%s3411_s4 + $0x18] sm:$0xff] }
 0x58c   : > { %3026 = vpow2.f32 %v1557_v27  ;;  %v2972_v30 = vpop.permute.xlu0 %2971  ;;  %v2979_v33 = vunpack.i.h.bf16 %v2977_v29  ;;  %v2978_v34 = vunpack.i.l.bf16 %v2977_v29 }
 0x58d   : > { %3028 = vpow2.f32 %v1555_v28  ;;  %v2974_v35 = vunpack.i.h.bf16 %v2972_v30  ;;  %v2973_v36 = vunpack.i.l.bf16 %v2972_v30 }
 0x58e   : > { %v2842_v38 = vpack.c.bf16 %v2979_v33, %v2978_v34 }
 0x58f   : > { %v2838_v37 = vpack.c.bf16 %v2974_v35, %v2973_v36 }
 0x591   : > { %2839 = vmatprep.subr.bf16.mxu1 %v2838_v37 }
 0x592   : > { %v3023_v39 = vpop.eup %3022  ;;  %2841 = vmatpush3.bf16.msra.mxu1 %v2838_v37 }
 0x593   : > { %v3025_v40 = vpop.eup %3024  ;;  %v1562_v41 = vsel %vm588_vm6, %v3023_v39, 0.0  ;;  %2843 = vmatprep.subr.bf16.mxu1 %v2842_v38 }
 0x594   : > { %1563 = vadd.xlane.f32.xlu0 %v1562_v41  ;;  %2708 = vmatprep.mubr.msk.f32.mxu1 %vm588_vm6, %v3025_v40  ;;  %v1559_v42 = vsel %vm588_vm6, %v3025_v40, 0.0 }
 0x595   : > { %1560 = vadd.xlane.f32.xlu1 %v1559_v42 }
 0x596   : > { %v3027_v43 = vpop.eup %3026  ;;  %2845 = vmatpush3.bf16.msra.mxu1 %v2842_v38 }
 0x597   : > { %v3029_v2 = vpop.eup %3028  ;;  %v1568_v3 = vsel %vm588_vm6, %v3027_v43, 0.0  ;;  %2714 = vmatprep.subr.mxu1 %v351_v59 }
 0x598   : > { %v1565_v44 = vsel %vm588_vm6, %v3029_v2, 0.0 }
 0x599   : > { %1569 = vadd.xlane.f32.xlu1 %v1568_v3  ;;  %1566 = vadd.xlane.f32.xlu0 %v1565_v44  ;;  %v354_v3 = vld [vmem:[%s333_s14 + $0x8] sm:$0xff]  ;;  %v2372_v44 = vld [vmem:[%s3412_s5] ss:$0 sm:$0xff] }
 0x59a   : > { %2709 = vmatmul.mubr.msk.f32.vlgmr.msra.gmra.mrb[12].mxu1 %vm588_vm6, %v3023_v39 }
 0x59b   : > { %2711 = vmatprep.mubr.msk.f32.mxu1 %vm588_vm6, %v3029_v2  ;;  %2715 = vmatpush3.msra.mxu1 %v351_v59 }
 0x59e   : > { %2712 = vmatmul.mubr.msk.f32.gmra.mrb[14].mxu1 %vm588_vm6, %v3027_v43 }
 0x5aa   : > { %2986 = vrot.lane.b32.xlu1 %v3193_v31, %s3069_s29 }
 0x5af   : > { %2981 = vrot.lane.b32.xlu0 %v3195_v32, %s3069_s29 }
 0x5bc   : > { %v2013_v45 = vpop.xlane.xlu1 %2012 }
 0x5bd   : > { %v2021_v46 = vsub.f32 %v3336_v5, %v2013_v45  ;;  %v2010_v47 = vpop.xlane.xlu0 %2009  ;;  %v353_v45 = vld [vmem:[%s333_s14] sm:$0xff] }
 0x5be   : > { %v2020_v48 = vsub.f32 %v3338_v6, %v2010_v47  ;;  %v364_v47 = vadd.f32 %v2372_v44, %v353_v45 }
 0x5bf   : > { %v2026_v49 = vmul.f32 1.442695, %v2021_v46  ;;  %v365_v46 = vadd.f32 %v2372_v44, %v354_v3 }
 0x5c0   : > { %v2024_v4 = vmul.f32 1.442695, %v2020_v48  ;;  %v2019_v50 = vpop.xlane.xlu1 %2018  ;;  %v356_v48 = vld [vmem:[%s333_s14 + $0x18] sm:$0xff] }
 0x5c1   : > { %3030 = vpow2.f32 %v2026_v49  ;;  %v2023_v51 = vsub.f32 %v3341_v7, %v2019_v50  ;;  %v2016_v52 = vpop.xlane.xlu0 %2015  ;;  %v355_v49 = vld [vmem:[%s333_s14 + $0x10] sm:$0xff] }
 0x5c2   : > { %3032 = vpow2.f32 %v2024_v4  ;;  %v2022_v53 = vsub.f32 %v3343_v8, %v2016_v52  ;;  %v367_v52 = vadd.f32 %v2372_v44, %v356_v48 }
 0x5c3   : > { %v2030_v54 = vmul.f32 1.442695, %v2023_v51 }
 0x5c4   : > { %v2028_v31 = vmul.f32 1.442695, %v2022_v53 }
 0x5c5   : > { %3034 = vpow2.f32 %v2030_v54  ;;  %v366_v54 = vadd.f32 %v2372_v44, %v355_v49 }
 0x5c6   : > { %3036 = vpow2.f32 %v2028_v31 }
 0x5cb   : > { %v3031_v32 = vpop.eup %3030 }
 0x5cc   : > { %v3033_v55 = vpop.eup %3032  ;;  %v2035_v19 = vsel %vm588_vm6, %v3031_v32, 0.0 }
 0x5cd   : > { %v2032_v56 = vsel %vm588_vm6, %v3033_v55, 0.0 }
 0x5ce   : > { %2036 = vadd.xlane.f32.xlu0 %v2035_v19  ;;  %2033 = vadd.xlane.f32.xlu1 %v2032_v56 }
 0x5cf   : > { %v3035_v57 = vpop.eup %3034 }
 0x5d0   : > { %v3037_v22 = vpop.eup %3036  ;;  %v2041_v58 = vsel %vm588_vm6, %v3035_v57, 0.0 }
 0x5d1   : > { %v2038_v15 = vsel %vm588_vm6, %v3037_v22, 0.0 }
 0x5d2   : > { %2042 = vadd.xlane.f32.xlu1 %v2041_v58  ;;  %2039 = vadd.xlane.f32.xlu0 %v2038_v15 }
 0x621   : > { %v1564_v20 = vpop.xlane.xlu0 %1563 }
 0x622   : > { %v1561_v1 = vpop.xlane.xlu1 %1560  ;;  %3038 = vrcp.f32 %v1564_v20 }
 0x623   : > { %3040 = vrcp.f32 %v1561_v1 }
 0x626   : > { %v1567_v60 = vpop.xlane.xlu0 %1566  ;;  %v1570_v5 = vpop.xlane.xlu1 %1569 }
 0x627   : > { %3042 = vrcp.f32 %v1567_v60 }
 0x628   : > { %3044 = vrcp.f32 %v1570_v5 }
 0x62a   : > { %v2982_v61 = vpop.permute.xlu0 %2981  ;;  %v2987_v6 = vpop.permute.xlu1 %2986 }
 0x62b   : > { %v2984_v62 = vunpack.i.h.bf16 %v2982_v61  ;;  %v2983_v63 = vunpack.i.l.bf16 %v2982_v61  ;;  %v2989_v7 = vunpack.i.h.bf16 %v2987_v6  ;;  %v2988_v8 = vunpack.i.l.bf16 %v2987_v6 }
 0x62c   : > { %v3039_v9 = vpop.eup %3038 }
 0x62d   : > { %v2864_v0 = vpack.c.bf16 %v2984_v62, %v2983_v63  ;;  %v3041_v11 = vpop.eup %3040  ;;  %v2868_v16 = vpack.c.bf16 %v2989_v7, %v2988_v8 }
 0x62f   : > { %2865 = vmatprep.subr.bf16.mxu1 %v2864_v0 }
 0x631   : > { %v3043_v18 = vpop.eup %3042 }
 0x632   : > { %v3045_v23 = vpop.eup %3044 }
 0x65b   : > { %v2034_v27 = vpop.xlane.xlu1 %2033  ;;  %v2037_v28 = vpop.xlane.xlu0 %2036 }
 0x65c   : > { %3046 = vrcp.f32 %v2034_v27 }
 0x65d   : > { %3048 = vrcp.f32 %v2037_v28 }
 0x65f   : > { %v2040_v29 = vpop.xlane.xlu0 %2039  ;;  %v2043_v30 = vpop.xlane.xlu1 %2042 }
 0x660   : > { %3050 = vrcp.f32 %v2040_v29 }
 0x661   : > { %3052 = vrcp.f32 %v2043_v30 }
 0x666   : > { %v3047_v34 = vpop.eup %3046 }
 0x667   : > { %v3049_v36 = vpop.eup %3048 }
 0x66a   : > { %v3051_v40 = vpop.eup %3050 }
 0x66b   : > { %v3053_v42 = vpop.eup %3052 }
 0x66d   : > { %v2710_v10 = vpop.f32.mrb[12].mxu1 }
 0x66e   : > { %v1685_v12 = vmul.f32 %v3039_v9, %v2710_v10  ;;  %v1661_v13 = vpop.f32.mrb[13].mxu1 }
 0x66f   : > { %v1684_v14 = vmul.f32 %v3041_v11, %v1661_v13 }
 0x671   : > { %v2713_v17 = vpop.f32.mrb[14].mxu1  ;;  %2716 = vmatprep.mubr.msk.f32.mxu1 %vm478_vm3, %v1684_v14 }
 0x672   : > { %v1671_v21 = vpop.f32.mrb[15].mxu1  ;;  %2717 = vmatmul.mubr.msk.f32.vlgmr.msra.gmra.mrb[4].mxu1 %vm478_vm3, %v1685_v12  ;;  %v1687_v25 = vmul.f32 %v3045_v23, %v2713_v17 }
 0x673   : > { %v1686_v24 = vmul.f32 %v3043_v18, %v1671_v21  ;;  %2867 = vmatpush3.bf16.msra.mxu1 %v2864_v0 }
 0x674   : > { %2869 = vmatprep.subr.bf16.mxu1 %v2868_v16 }
 0x675   : > { %2719 = vmatprep.mubr.msk.f32.mxu1 %vm478_vm3, %v1686_v24 }
 0x676   : > { %2720 = vmatmul.mubr.msk.f32.gmra.mrb[6].mxu1 %vm478_vm3, %v1687_v25 }
 0x677   : > { %2871 = vmatpush3.bf16.msra.mxu1 %v2868_v16  ;;  %2754 = vmatprep.mubr.msk.f32.mxu1 %vm588_vm6, %v3033_v55 }
 0x678   : > { %2760 = vmatprep.subr.mxu1 %v352_v26 }
 0x67a   : > { %2755 = vmatmul.mubr.msk.f32.vlgmr.msra.gmra.mrb[16].mxu1 %vm588_vm6, %v3031_v32 }
 0x67b   : > { %2757 = vmatprep.mubr.msk.f32.mxu1 %vm588_vm6, %v3037_v22  ;;  %2761 = vmatpush3.msra.mxu1 %v352_v26 }
 0x67e   : > { %2758 = vmatmul.mubr.msk.f32.gmra.mrb[18].mxu1 %vm588_vm6, %v3035_v57 }
 0x74d   : > { %v2756_v33 = vpop.f32.mrb[16].mxu1 }
 0x74e   : > { %v2134_v35 = vpop.f32.mrb[17].mxu1  ;;  %v2158_v38 = vmul.f32 %v3049_v36, %v2756_v33 }
 0x74f   : > { %v2157_v37 = vmul.f32 %v3047_v34, %v2134_v35 }
 0x751   : > { %v2759_v39 = vpop.f32.mrb[18].mxu1  ;;  %2762 = vmatprep.mubr.msk.f32.mxu1 %vm478_vm3, %v2157_v37 }
 0x752   : > { %v2144_v41 = vpop.f32.mrb[19].mxu1  ;;  %2763 = vmatmul.mubr.msk.f32.vlgmr.msra.gmra.mrb[4].mxu1 %vm478_vm3, %v2158_v38  ;;  %v2160_v2 = vmul.f32 %v3053_v42, %v2759_v39 }
 0x753   : > { %v2159_v43 = vmul.f32 %v3051_v40, %v2144_v41 }
 0x755   : > { %2765 = vmatprep.mubr.msk.f32.mxu1 %vm478_vm3, %v2159_v43 }
 0x756   : > { %2766 = vmatmul.mubr.msk.f32.gmra.mrb[6].mxu1 %vm478_vm3, %v2160_v2 }
 0x825   : > { %v2764_v4 = vpop.f32.mrb[4].mxu1 }
 0x826   : > { %v2872_v50 = vadd.f32 %v2764_v4, %v365_v46  ;;  %v2239_v51 = vpop.f32.mrb[5].mxu1 }
 0x827   : > { %v2873_v53 = vadd.f32 %v2239_v51, %v364_v47 }
 0x828   : > { %2263 = vst.msk [vmem:[%s338_s19 + $0x8] sm:$0xff] %vm588_vm6, %v2872_v50 }
 0x829   : > { %2262 = vst.msk [vmem:[%s338_s19] sm:$0xff] %vm588_vm6, %v2873_v53  ;;  %v2767_v31 = vpop.f32.mrb[6].mxu1 }
 0x82a   : > { %v2874_v32 = vadd.f32 %v2767_v31, %v367_v52  ;;  %v2249_v55 = vpop.f32.mrb[7].mxu1 }
 0x82b   : > { %v2875_v19 = vadd.f32 %v2249_v55, %v366_v54 }
 0x82c   : > { %2265 = vst.msk [vmem:[%s338_s19 + $0x18] sm:$0xff] %vm588_vm6, %v2874_v32 }
 0x82d   : > { %2264 = vst.msk [vmem:[%s338_s19 + $0x10] sm:$0xff] %vm588_vm6, %v2875_v19 }
 0x82e PF: > { %s17_s24 = sadd.s32 1, %s3060_s24  }
 0x82f   : > { %p14_p4 = scmp.ge.s32.totalorder %s17_s24, 4  }
 0x831   :  { %16 = sbr.rel (!%p14_p4) target bundleno = 1 (0x1), region = 90 }

</bundles_post_ra>
